<compile_context>
chip_gen: v7x
topology: tpu7x:2x2x1
jax: 0.10.0
libtpu: 0.0.40
codegen_flags: <defaults>
</compile_context>

<pallas_src>
import jax
import jax.numpy as jnp
from jax import lax
from jax.experimental import pallas as pl
from jax.experimental.pallas import tpu as pltpu

_VMEM_LIMIT = 32 * 1024 * 1024  # safe scoped-VMEM budget on v5e/v6e/v7x


# ----------------------------------------------------------------------------
# Pallas kernels
# ----------------------------------------------------------------------------
def lstm_fused_kernel(x_ref, wih_ref, whh_ref, b_ref, y_ref):
    """Full LSTM over all T timesteps for one batch chunk.

    x_ref   : (bb, T, E)  f32   inputs (batch-first)
    wih_ref : (E, 4H)     bf16  input->gates weights (transposed)
    whh_ref : (H, 4H)     bf16  hidden->gates weights (transposed)
    b_ref   : (1, 4H)     f32   combined bias (b_ih + b_hh)
    y_ref   : (bb, T, H)  f32   hidden states (batch-first)
    """
    bb, T, E = x_ref.shape
    H = whh_ref.shape[0]

    # Hoisted input projection: one MXU-shaped matmul covering every timestep,
    # with the bias folded in once (not per step).
    x_all = x_ref[...].reshape(bb * T, E).astype(jnp.bfloat16)
    xg = (jnp.dot(x_all, wih_ref[...], preferred_element_type=jnp.float32)
          + b_ref[...]).reshape(bb, T, 4 * H)

    w_hh = whh_ref[...]
    h = jnp.zeros((bb, H), jnp.float32)
    c = jnp.zeros((bb, H), jnp.float32)

    # Static (trace-time) unroll over T; per step only the small h @ W_hh
    # recurrence and gate math remain.  Gate slices are lane-aligned when
    # H % 128 == 0 (the test shapes guarantee this).
    # TODO(synk): for long sequences switch to lax.fori_loop over time chunks.
    for t in range(T):
        gates = xg[:, t, :] + jnp.dot(h.astype(jnp.bfloat16), w_hh,
                                      preferred_element_type=jnp.float32)
        i = jax.nn.sigmoid(gates[:, 0:H])
        f = jax.nn.sigmoid(gates[:, H:2 * H])
        g = jnp.tanh(gates[:, 2 * H:3 * H])
        o = jax.nn.sigmoid(gates[:, 3 * H:4 * H])
        c = f * c + i * g
        h = o * jnp.tanh(c)
        y_ref[:, t, :] = h.astype(y_ref.dtype)


def linear_kernel(x_ref, w_ref, b_ref, o_ref):
    """One (tn, tv) tile of the output projection: X @ W + b (f32 accumulate)."""
    o_ref[...] = (
        jnp.dot(x_ref[...].astype(jnp.bfloat16), w_ref[...],
                preferred_element_type=jnp.float32)
        + b_ref[...]
    ).astype(o_ref.dtype)


# ----------------------------------------------------------------------------
# Wrappers around pallas_call
# ----------------------------------------------------------------------------
def lstm_forward(x, w_ih_t, w_hh_t, b_lstm, *, block_b=8):
    Bp, T, E = x.shape
    H = w_hh_t.shape[0]
    G = 4 * H
    assert Bp % block_b == 0, (Bp, block_b)
    return pl.pallas_call(
        lstm_fused_kernel,
        out_shape=jax.ShapeDtypeStruct((Bp, T, H), jnp.float32),
        grid_spec=pltpu.PrefetchScalarGridSpec(
            num_scalar_prefetch=0,
            grid=(Bp // block_b,),
            in_specs=[
                pl.BlockSpec((block_b, T, E), lambda i: (i, 0, 0)),
                pl.BlockSpec((E, G), lambda i: (0, 0)),
                pl.BlockSpec((H, G), lambda i: (0, 0)),
                pl.BlockSpec((1, G), lambda i: (0, 0)),
            ],
            out_specs=pl.BlockSpec((block_b, T, H), lambda i: (i, 0, 0)),
        ),
        compiler_params=pltpu.CompilerParams(
            dimension_semantics=("parallel",),  # batch chunks are independent
            vmem_limit_bytes=_VMEM_LIMIT,
        ),
    )(x, w_ih_t, w_hh_t, b_lstm)


def _tile(dim, pref):
    return pref if dim % pref == 0 else dim


def linear_forward(x, w_t, b, *, tn_pref=128, tv_pref=512):
    N, H = x.shape
    V = w_t.shape[1]
    tn = _tile(N, tn_pref)
    tv = _tile(V, tv_pref)
    return pl.pallas_call(
        linear_kernel,
        out_shape=jax.ShapeDtypeStruct((N, V), jnp.float32),
        grid_spec=pltpu.PrefetchScalarGridSpec(
            num_scalar_prefetch=0,
            grid=(N // tn, V // tv),
            in_specs=[
                pl.BlockSpec((tn, H), lambda i, j: (i, 0)),
                pl.BlockSpec((H, tv), lambda i, j: (0, j)),
                pl.BlockSpec((1, tv), lambda i, j: (0, j)),
            ],
            out_specs=pl.BlockSpec((tn, tv), lambda i, j: (i, j)),
        ),
        compiler_params=pltpu.CompilerParams(
            dimension_semantics=("parallel", "parallel"),
            vmem_limit_bytes=_VMEM_LIMIT,
        ),
    )(x, w_t, b)


# ----------------------------------------------------------------------------
# DecoderRNN.forward equivalent
# ----------------------------------------------------------------------------
@jax.jit
def decoder_forward(params, features, captions, lengths):
    del lengths  # unused (as in the PyTorch forward)
    cap = captions[:, :-1]
    embed = params["emb"][cap]                                   # (B, Tc, E) gather (glue)
    # drop_emb (p=0.1) / dropout (p=0.2): identity in eval mode.
    x = jnp.concatenate([features[:, None, :], embed], axis=1)   # (B, T, E) batch-first
    B, T, _ = x.shape

    block_b = 8
    B_pad = ((B + block_b - 1) // block_b) * block_b
    if B_pad != B:  # pad batch to a sublane-friendly multiple of 8
        x = jnp.pad(x, ((0, B_pad - B), (0, 0), (0, 0)))

    h = lstm_forward(x, params["w_ih_t"], params["w_hh_t"], params["b_lstm"],
                     block_b=block_b)                            # (B_pad, T, H)
    H = h.shape[-1]
    h_flat = h.reshape(B_pad * T, H)                             # contiguous; row = b*T + t
    logits = linear_forward(h_flat, params["w_out_t"], params["b_out"])
    return logits[:B * T]                                        # drop padded-batch rows


# Pure-JAX reference (f32 math on the same bf16-stored weights)
def decoder_forward_ref(params, features, captions, lengths):
    del lengths
    cap = captions[:, :-1]
    embed = params["emb"][cap]
    x = jnp.concatenate([features[:, None, :], embed], axis=1)
    w_ih = params["w_ih_t"].astype(jnp.float32)
    w_hh = params["w_hh_t"].astype(jnp.float32)
    b = params["b_lstm"][0]
    w_out = params["w_out_t"].astype(jnp.float32)
    b_out = params["b_out"][0]
    B = x.shape[0]
    H = w_hh.shape[0]

    def step(carry, xt):
        h, c = carry
        g = xt @ w_ih + h @ w_hh + b
        i = jax.nn.sigmoid(g[:, :H])
        f = jax.nn.sigmoid(g[:, H:2 * H])
        gg = jnp.tanh(g[:, 2 * H:3 * H])
        o = jax.nn.sigmoid(g[:, 3 * H:])
        c = f * c + i * gg
        h = o * jnp.tanh(c)
        return (h, c), h

    init = (jnp.zeros((B, H), jnp.float32), jnp.zeros((B, H), jnp.float32))
    _, ys = lax.scan(step, init, jnp.transpose(x, (1, 0, 2)))    # (T, B, H)
    h_flat = jnp.transpose(ys, (1, 0, 2)).reshape(-1, H)
    return h_flat @ w_out + b_out


# ----------------------------------------------------------------------------
# Deterministic parameter construction (PyTorch-like init shapes/scales)
# ----------------------------------------------------------------------------
def make_params(key, embed_size, hidden_size, vocab_size):
    ks = jax.random.split(key, 7)
    k = 1.0 / (hidden_size ** 0.5)

    emb = jax.random.normal(ks[0], (vocab_size, embed_size), jnp.float32)
    w_ih = jax.random.uniform(ks[1], (4 * hidden_size, embed_size), jnp.float32, -k, k)
    w_hh = jax.random.uniform(ks[2], (4 * hidden_size, hidden_size), jnp.float32, -k, k)
    b_ih = jax.random.uniform(ks[3], (4 * hidden_size,), jnp.float32, -k, k)
    b_hh = jax.random.uniform(ks[4], (4 * hidden_size,), jnp.float32, -k, k)
    w_out = jax.random.uniform(ks[5], (vocab_size, hidden_size), jnp.float32, -k, k)
    b_out = jax.random.uniform(ks[6], (vocab_size,), jnp.float32, -k, k)

    # TODO(synk): cell_type='GRU' and num_layers>1 variants not implemented
    #             (this forward corresponds to cell_type='LSTM', num_layers=1).
    return {
        "emb": emb,                                            # (V, E)  f32
        "w_ih_t": jnp.transpose(w_ih).astype(jnp.bfloat16),    # (E, 4H) bf16
        "w_hh_t": jnp.transpose(w_hh).astype(jnp.bfloat16),    # (H, 4H) bf16
        "b_lstm": (b_ih + b_hh)[None, :],                      # (1, 4H) f32
        "w_out_t": jnp.transpose(w_out).astype(jnp.bfloat16),  # (H, V)  bf16
        "b_out": b_out[None, :],                               # (1, V)  f32
    }


if __name__ == "__main__":
    # Small but (8,128)-friendly sizes: B mult of 8, E=H=128, V mult of 128.
    B, T_CAP, E, H, V = 8, 8, 128, 128, 256

    key = jax.random.PRNGKey(0)
    k_par, k_feat, k_cap = jax.random.split(key, 3)

    params = make_params(k_par, E, H, V)
    features = jax.random.normal(k_feat, (B, E), jnp.float32)
    captions = jax.random.randint(k_cap, (B, T_CAP), 0, V, jnp.int32)
    lengths = jnp.full((B,), T_CAP, jnp.int32)  # unused by forward (as in PyTorch)

    out = decoder_forward(params, features, captions, lengths)
    out = jax.block_until_ready(out)

    ref = decoder_forward_ref(params, features, captions, lengths)
    assert out.shape == (B * T_CAP, V), out.shape
    assert bool(jnp.all(jnp.isfinite(out)))
    max_err = float(jnp.max(jnp.abs(out - ref)))
    assert jnp.allclose(out, ref, atol=2e-2, rtol=2e-2), max_err

    print("KERNEL_OK")
</pallas_src>

<mosaic_0001>
module attributes {stable_mosaic.version = 11 : i64} {
  func.func @linear_kernel(%arg0: i32, %arg1: i32, %arg2: memref<64x128xf32, #tpu.memory_space<vmem>>, %arg3: memref<128x256xbf16, #tpu.memory_space<vmem>>, %arg4: memref<1x256xf32, #tpu.memory_space<vmem>>, %arg5: memref<64x256xf32, #tpu.memory_space<vmem>>) attributes {dimension_semantics = [#tpu.dimension_semantics<parallel>, #tpu.dimension_semantics<parallel>], iteration_bounds = array<i64: 1, 1>, scalar_prefetch = 0 : i64, scratch_operands = 0 : i64, tpu.core_type = #tpu.core_type<tc>, window_params = [{transform_indices = @transform_0, window_bounds = array<i64: 64, 128>}, {transform_indices = @transform_1, window_bounds = array<i64: 128, 256>}, {transform_indices = @transform_2, window_bounds = array<i64: 1, 256>}, {transform_indices = @transform_3, window_bounds = array<i64: 64, 256>}]} {
    %c0 = arith.constant 0 : index
    %c0_0 = arith.constant 0 : index
    %0 = vector.load %arg2[%c0, %c0_0] : memref<64x128xf32, #tpu.memory_space<vmem>>, vector<64x128xf32>
    %1 = arith.truncf %0 : vector<64x128xf32> to vector<64x128xbf16>
    %c0_1 = arith.constant 0 : index
    %c0_2 = arith.constant 0 : index
    %2 = vector.load %arg3[%c0_1, %c0_2] : memref<128x256xbf16, #tpu.memory_space<vmem>>, vector<128x256xbf16>
    %cst = arith.constant dense<0.000000e+00> : vector<64x256xf32>
    %3 = tpu.matmul %1, %2, %cst {dimension_numbers = #tpu.dot_dimension_numbers<[1], [0], [0], [1], [0, 0, 1, 1], [], []>} : vector<64x128xbf16>, vector<128x256xbf16>, vector<64x256xf32> -> vector<64x256xf32>
    %c0_3 = arith.constant 0 : index
    %c0_4 = arith.constant 0 : index
    %4 = vector.load %arg4[%c0_3, %c0_4] : memref<1x256xf32, #tpu.memory_space<vmem>>, vector<1x256xf32>
    %5 = vector.broadcast %4 : vector<1x256xf32> to vector<64x256xf32>
    %6 = arith.addf %3, %5 : vector<64x256xf32>
    %c0_5 = arith.constant 0 : index
    %c0_6 = arith.constant 0 : index
    %7 = vector.load %arg5[%c0_5, %c0_6] : memref<64x256xf32, #tpu.memory_space<vmem>>, vector<64x256xf32>
    tpu.vector_store %arg5[%c0_5, %c0_6], %6 {strides = array<i32>} : memref<64x256xf32, #tpu.memory_space<vmem>>, vector<64x256xf32>,
    return
  }
  func.func @transform_0(%arg0: i32, %arg1: i32) -> (i32, i32) {
    %c0_i32 = arith.constant 0 : i32
    %c0_i32_0 = arith.constant 0 : i32
    return %arg0, %c0_i32 : i32, i32
  }
  func.func @transform_1(%arg0: i32, %arg1: i32) -> (i32, i32) {
    %c0_i32 = arith.constant 0 : i32
    %c0_i32_0 = arith.constant 0 : i32
    return %c0_i32, %arg1 : i32, i32
  }
  func.func @transform_2(%arg0: i32, %arg1: i32) -> (i32, i32) {
    %c0_i32 = arith.constant 0 : i32
    %c0_i32_0 = arith.constant 0 : i32
    return %c0_i32, %arg1 : i32, i32
  }
  func.func @transform_3(%arg0: i32, %arg1: i32) -> (i32, i32) {
    %c0_i32 = arith.constant 0 : i32
    return %arg0, %arg1 : i32, i32
  }
}

module attributes {stable_mosaic.version = 11 : i64} {
  func.func @lstm_fused_kernel(%arg0: i32, %arg1: memref<8x8x128xf32, #tpu.memory_space<vmem>>, %arg2: memref<128x512xbf16, #tpu.memory_space<vmem>>, %arg3: memref<128x512xbf16, #tpu.memory_space<vmem>>, %arg4: memref<1x512xf32, #tpu.memory_space<vmem>>, %arg5: memref<8x8x128xf32, #tpu.memory_space<vmem>>) attributes {dimension_semantics = [#tpu.dimension_semantics<parallel>], iteration_bounds = array<i64: 1>, scalar_prefetch = 0 : i64, scratch_operands = 0 : i64, tpu.core_type = #tpu.core_type<tc>, window_params = [{transform_indices = @transform_0, window_bounds = array<i64: 8, 8, 128>}, {pipeline_mode = #tpu.pipeline_mode<synchronous>, transform_indices = @transform_1, window_bounds = array<i64: 128, 512>}, {pipeline_mode = #tpu.pipeline_mode<synchronous>, transform_indices = @transform_2, window_bounds = array<i64: 128, 512>}, {pipeline_mode = #tpu.pipeline_mode<synchronous>, transform_indices = @transform_3, window_bounds = array<i64: 1, 512>}, {transform_indices = @transform_4, window_bounds = array<i64: 8, 8, 128>}]} {
    %c0 = arith.constant 0 : index
    %c0_0 = arith.constant 0 : index
    %c0_1 = arith.constant 0 : index
    %0 = vector.load %arg1[%c0, %c0_0, %c0_1] : memref<8x8x128xf32, #tpu.memory_space<vmem>>, vector<8x8x128xf32>
    %1 = vector.shape_cast %0 : vector<8x8x128xf32> to vector<64x128xf32>
    %2 = arith.truncf %1 : vector<64x128xf32> to vector<64x128xbf16>
    %c0_2 = arith.constant 0 : index
    %c0_3 = arith.constant 0 : index
    %3 = vector.load %arg2[%c0_2, %c0_3] : memref<128x512xbf16, #tpu.memory_space<vmem>>, vector<128x512xbf16>
    %cst = arith.constant dense<0.000000e+00> : vector<64x512xf32>
    %4 = tpu.matmul %2, %3, %cst {dimension_numbers = #tpu.dot_dimension_numbers<[1], [0], [0], [1], [0, 0, 1, 1], [], []>} : vector<64x128xbf16>, vector<128x512xbf16>, vector<64x512xf32> -> vector<64x512xf32>
    %c0_4 = arith.constant 0 : index
    %c0_5 = arith.constant 0 : index
    %5 = vector.load %arg4[%c0_4, %c0_5] : memref<1x512xf32, #tpu.memory_space<vmem>>, vector<1x512xf32>
    %6 = vector.broadcast %5 : vector<1x512xf32> to vector<64x512xf32>
    %7 = arith.addf %4, %6 : vector<64x512xf32>
    %8 = vector.shape_cast %7 : vector<64x512xf32> to vector<8x8x512xf32>
    %c0_6 = arith.constant 0 : index
    %c0_7 = arith.constant 0 : index
    %9 = vector.load %arg3[%c0_6, %c0_7] : memref<128x512xbf16, #tpu.memory_space<vmem>>, vector<128x512xbf16>
    %cst_8 = arith.constant 0.000000e+00 : f32
    %10 = vector.broadcast %cst_8 : f32 to vector<8x128xf32>
    %cst_9 = arith.constant 0.000000e+00 : f32
    %11 = vector.broadcast %cst_9 : f32 to vector<8x128xf32>
    %12 = vector.extract_strided_slice %8 {offsets = [0, 0, 0], sizes = [8, 1, 512], strides = [1, 1, 1]} : vector<8x8x512xf32> to vector<8x1x512xf32>
    %13 = vector.shape_cast %12 : vector<8x1x512xf32> to vector<8x512xf32>
    %14 = arith.truncf %10 : vector<8x128xf32> to vector<8x128xbf16>
    %cst_10 = arith.constant dense<0.000000e+00> : vector<8x512xf32>
    %15 = tpu.matmul %14, %9, %cst_10 {dimension_numbers = #tpu.dot_dimension_numbers<[1], [0], [0], [1], [0, 0, 1, 1], [], []>} : vector<8x128xbf16>, vector<128x512xbf16>, vector<8x512xf32> -> vector<8x512xf32>
    %16 = arith.addf %13, %15 : vector<8x512xf32>
    %17 = vector.extract_strided_slice %16 {offsets = [0, 0], sizes = [8, 128], strides = [1, 1]} : vector<8x512xf32> to vector<8x128xf32>
    %18 = arith.negf %17 : vector<8x128xf32>
    %19 = math.exp %18 : vector<8x128xf32>
    %cst_11 = arith.constant 1.000000e+00 : f32
    %20 = vector.broadcast %cst_11 : f32 to vector<8x128xf32>
    %21 = arith.addf %20, %19 : vector<8x128xf32>
    %22 = arith.divf %20, %21 : vector<8x128xf32>
    %23 = vector.extract_strided_slice %16 {offsets = [0, 128], sizes = [8, 128], strides = [1, 1]} : vector<8x512xf32> to vector<8x128xf32>
    %24 = arith.negf %23 : vector<8x128xf32>
    %25 = math.exp %24 : vector<8x128xf32>
    %cst_12 = arith.constant 1.000000e+00 : f32
    %26 = vector.broadcast %cst_12 : f32 to vector<8x128xf32>
    %27 = arith.addf %26, %25 : vector<8x128xf32>
    %28 = arith.divf %26, %27 : vector<8x128xf32>
    %29 = vector.extract_strided_slice %16 {offsets = [0, 256], sizes = [8, 128], strides = [1, 1]} : vector<8x512xf32> to vector<8x128xf32>
    %30 = math.tanh %29 : vector<8x128xf32>
    %31 = vector.extract_strided_slice %16 {offsets = [0, 384], sizes = [8, 128], strides = [1, 1]} : vector<8x512xf32> to vector<8x128xf32>
    %32 = arith.negf %31 : vector<8x128xf32>
    %33 = math.exp %32 : vector<8x128xf32>
    %cst_13 = arith.constant 1.000000e+00 : f32
    %34 = vector.broadcast %cst_13 : f32 to vector<8x128xf32>
    %35 = arith.addf %34, %33 : vector<8x128xf32>
    %36 = arith.divf %34, %35 : vector<8x128xf32>
    %37 = arith.mulf %28, %11 : vector<8x128xf32>
    %38 = arith.mulf %22, %30 : vector<8x128xf32>
    %39 = arith.addf %37, %38 : vector<8x128xf32>
    %40 = math.tanh %39 : vector<8x128xf32>
    %41 = arith.mulf %36, %40 : vector<8x128xf32>
    %c0_14 = arith.constant 0 : index
    %c0_15 = arith.constant 0 : index
    %c0_16 = arith.constant 0 : index
    %42 = vector.load %arg5[%c0_14, %c0_15, %c0_16] : memref<8x8x128xf32, #tpu.memory_space<vmem>>, vector<8x1x128xf32>
    %43 = vector.shape_cast %42 : vector<8x1x128xf32> to vector<8x128xf32>
    %44 = vector.shape_cast %41 : vector<8x128xf32> to vector<8x1x128xf32>
    tpu.vector_store %arg5[%c0_14, %c0_15, %c0_16], %44 {strides = array<i32>} : memref<8x8x128xf32, #tpu.memory_space<vmem>>, vector<8x1x128xf32>,
    %45 = vector.extract_strided_slice %8 {offsets = [0, 1, 0], sizes = [8, 1, 512], strides = [1, 1, 1]} : vector<8x8x512xf32> to vector<8x1x512xf32>
    %46 = vector.shape_cast %45 : vector<8x1x512xf32> to vector<8x512xf32>
    %47 = arith.truncf %41 : vector<8x128xf32> to vector<8x128xbf16>
    %cst_17 = arith.constant dense<0.000000e+00> : vector<8x512xf32>
    %48 = tpu.matmul %47, %9, %cst_17 {dimension_numbers = #tpu.dot_dimension_numbers<[1], [0], [0], [1], [0, 0, 1, 1], [], []>} : vector<8x128xbf16>, vector<128x512xbf16>, vector<8x512xf32> -> vector<8x512xf32>
    %49 = arith.addf %46, %48 : vector<8x512xf32>
    %50 = vector.extract_strided_slice %49 {offsets = [0, 0], sizes = [8, 128], strides = [1, 1]} : vector<8x512xf32> to vector<8x128xf32>
    %51 = arith.negf %50 : vector<8x128xf32>
    %52 = math.exp %51 : vector<8x128xf32>
    %cst_18 = arith.constant 1.000000e+00 : f32
    %53 = vector.broadcast %cst_18 : f32 to vector<8x128xf32>
    %54 = arith.addf %53, %52 : vector<8x128xf32>
    %55 = arith.divf %53, %54 : vector<8x128xf32>
    %56 = vector.extract_strided_slice %49 {offsets = [0, 128], sizes = [8, 128], strides = [1, 1]} : vector<8x512xf32> to vector<8x128xf32>
    %57 = arith.negf %56 : vector<8x128xf32>
    %58 = math.exp %57 : vector<8x128xf32>
    %cst_19 = arith.constant 1.000000e+00 : f32
    %59 = vector.broadcast %cst_19 : f32 to vector<8x128xf32>
    %60 = arith.addf %59, %58 : vector<8x128xf32>
    %61 = arith.divf %59, %60 : vector<8x128xf32>
    %62 = vector.extract_strided_slice %49 {offsets = [0, 256], sizes = [8, 128], strides = [1, 1]} : vector<8x512xf32> to vector<8x128xf32>
    %63 = math.tanh %62 : vector<8x128xf32>
    %64 = vector.extract_strided_slice %49 {offsets = [0, 384], sizes = [8, 128], strides = [1, 1]} : vector<8x512xf32> to vector<8x128xf32>
    %65 = arith.negf %64 : vector<8x128xf32>
    %66 = math.exp %65 : vector<8x128xf32>
    %cst_20 = arith.constant 1.000000e+00 : f32
    %67 = vector.broadcast %cst_20 : f32 to vector<8x128xf32>
    %68 = arith.addf %67, %66 : vector<8x128xf32>
    %69 = arith.divf %67, %68 : vector<8x128xf32>
    %70 = arith.mulf %61, %39 : vector<8x128xf32>
    %71 = arith.mulf %55, %63 : vector<8x128xf32>
    %72 = arith.addf %70, %71 : vector<8x128xf32>
    %73 = math.tanh %72 : vector<8x128xf32>
    %74 = arith.mulf %69, %73 : vector<8x128xf32>
    %c0_21 = arith.constant 0 : index
    %c1 = arith.constant 1 : index
    %c0_22 = arith.constant 0 : index
    %75 = vector.load %arg5[%c0_21, %c1, %c0_22] : memref<8x8x128xf32, #tpu.memory_space<vmem>>, vector<8x1x128xf32>
    %76 = vector.shape_cast %75 : vector<8x1x128xf32> to vector<8x128xf32>
    %77 = vector.shape_cast %74 : vector<8x128xf32> to vector<8x1x128xf32>
    tpu.vector_store %arg5[%c0_21, %c1, %c0_22], %77 {strides = array<i32>} : memref<8x8x128xf32, #tpu.memory_space<vmem>>, vector<8x1x128xf32>,
    %78 = vector.extract_strided_slice %8 {offsets = [0, 2, 0], sizes = [8, 1, 512], strides = [1, 1, 1]} : vector<8x8x512xf32> to vector<8x1x512xf32>
    %79 = vector.shape_cast %78 : vector<8x1x512xf32> to vector<8x512xf32>
    %80 = arith.truncf %74 : vector<8x128xf32> to vector<8x128xbf16>
    %cst_23 = arith.constant dense<0.000000e+00> : vector<8x512xf32>
    %81 = tpu.matmul %80, %9, %cst_23 {dimension_numbers = #tpu.dot_dimension_numbers<[1], [0], [0], [1], [0, 0, 1, 1], [], []>} : vector<8x128xbf16>, vector<128x512xbf16>, vector<8x512xf32> -> vector<8x512xf32>
    %82 = arith.addf %79, %81 : vector<8x512xf32>
    %83 = vector.extract_strided_slice %82 {offsets = [0, 0], sizes = [8, 128], strides = [1, 1]} : vector<8x512xf32> to vector<8x128xf32>
    %84 = arith.negf %83 : vector<8x128xf32>
    %85 = math.exp %84 : vector<8x128xf32>
    %cst_24 = arith.constant 1.000000e+00 : f32
    %86 = vector.broadcast %cst_24 : f32 to vector<8x128xf32>
    %87 = arith.addf %86, %85 : vector<8x128xf32>
    %88 = arith.divf %86, %87 : vector<8x128xf32>
    %89 = vector.extract_strided_slice %82 {offsets = [0, 128], sizes = [8, 128], strides = [1, 1]} : vector<8x512xf32> to vector<8x128xf32>
    %90 = arith.negf %89 : vector<8x128xf32>
    %91 = math.exp %90 : vector<8x128xf32>
    %cst_25 = arith.constant 1.000000e+00 : f32
    %92 = vector.broadcast %cst_25 : f32 to vector<8x128xf32>
    %93 = arith.addf %92, %91 : vector<8x128xf32>
    %94 = arith.divf %92, %93 : vector<8x128xf32>
    %95 = vector.extract_strided_slice %82 {offsets = [0, 256], sizes = [8, 128], strides = [1, 1]} : vector<8x512xf32> to vector<8x128xf32>
    %96 = math.tanh %95 : vector<8x128xf32>
    %97 = vector.extract_strided_slice %82 {offsets = [0, 384], sizes = [8, 128], strides = [1, 1]} : vector<8x512xf32> to vector<8x128xf32>
    %98 = arith.negf %97 : vector<8x128xf32>
    %99 = math.exp %98 : vector<8x128xf32>
    %cst_26 = arith.constant 1.000000e+00 : f32
    %100 = vector.broadcast %cst_26 : f32 to vector<8x128xf32>
    %101 = arith.addf %100, %99 : vector<8x128xf32>
    %102 = arith.divf %100, %101 : vector<8x128xf32>
    %103 = arith.mulf %94, %72 : vector<8x128xf32>
    %104 = arith.mulf %88, %96 : vector<8x128xf32>
    %105 = arith.addf %103, %104 : vector<8x128xf32>
    %106 = math.tanh %105 : vector<8x128xf32>
    %107 = arith.mulf %102, %106 : vector<8x128xf32>
    %c0_27 = arith.constant 0 : index
    %c2 = arith.constant 2 : index
    %c0_28 = arith.constant 0 : index
    %108 = vector.load %arg5[%c0_27, %c2, %c0_28] : memref<8x8x128xf32, #tpu.memory_space<vmem>>, vector<8x1x128xf32>
    %109 = vector.shape_cast %108 : vector<8x1x128xf32> to vector<8x128xf32>
    %110 = vector.shape_cast %107 : vector<8x128xf32> to vector<8x1x128xf32>
    tpu.vector_store %arg5[%c0_27, %c2, %c0_28], %110 {strides = array<i32>} : memref<8x8x128xf32, #tpu.memory_space<vmem>>, vector<8x1x128xf32>,
    %111 = vector.extract_strided_slice %8 {offsets = [0, 3, 0], sizes = [8, 1, 512], strides = [1, 1, 1]} : vector<8x8x512xf32> to vector<8x1x512xf32>
    %112 = vector.shape_cast %111 : vector<8x1x512xf32> to vector<8x512xf32>
    %113 = arith.truncf %107 : vector<8x128xf32> to vector<8x128xbf16>
    %cst_29 = arith.constant dense<0.000000e+00> : vector<8x512xf32>
    %114 = tpu.matmul %113, %9, %cst_29 {dimension_numbers = #tpu.dot_dimension_numbers<[1], [0], [0], [1], [0, 0, 1, 1], [], []>} : vector<8x128xbf16>, vector<128x512xbf16>, vector<8x512xf32> -> vector<8x512xf32>
    %115 = arith.addf %112, %114 : vector<8x512xf32>
    %116 = vector.extract_strided_slice %115 {offsets = [0, 0], sizes = [8, 128], strides = [1, 1]} : vector<8x512xf32> to vector<8x128xf32>
    %117 = arith.negf %116 : vector<8x128xf32>
    %118 = math.exp %117 : vector<8x128xf32>
    %cst_30 = arith.constant 1.000000e+00 : f32
    %119 = vector.broadcast %cst_30 : f32 to vector<8x128xf32>
    %120 = arith.addf %119, %118 : vector<8x128xf32>
    %121 = arith.divf %119, %120 : vector<8x128xf32>
    %122 = vector.extract_strided_slice %115 {offsets = [0, 128], sizes = [8, 128], strides = [1, 1]} : vector<8x512xf32> to vector<8x128xf32>
    %123 = arith.negf %122 : vector<8x128xf32>
    %124 = math.exp %123 : vector<8x128xf32>
    %cst_31 = arith.constant 1.000000e+00 : f32
    %125 = vector.broadcast %cst_31 : f32 to vector<8x128xf32>
    %126 = arith.addf %125, %124 : vector<8x128xf32>
    %127 = arith.divf %125, %126 : vector<8x128xf32>
    %128 = vector.extract_strided_slice %115 {offsets = [0, 256], sizes = [8, 128], strides = [1, 1]} : vector<8x512xf32> to vector<8x128xf32>
    %129 = math.tanh %128 : vector<8x128xf32>
    %130 = vector.extract_strided_slice %115 {offsets = [0, 384], sizes = [8, 128], strides = [1, 1]} : vector<8x512xf32> to vector<8x128xf32>
    %131 = arith.negf %130 : vector<8x128xf32>
    %132 = math.exp %131 : vector<8x128xf32>
    %cst_32 = arith.constant 1.000000e+00 : f32
    %133 = vector.broadcast %cst_32 : f32 to vector<8x128xf32>
    %134 = arith.addf %133, %132 : vector<8x128xf32>
    %135 = arith.divf %133, %134 : vector<8x128xf32>
    %136 = arith.mulf %127, %105 : vector<8x128xf32>
    %137 = arith.mulf %121, %129 : vector<8x128xf32>
    %138 = arith.addf %136, %137 : vector<8x128xf32>
    %139 = math.tanh %138 : vector<8x128xf32>
    %140 = arith.mulf %135, %139 : vector<8x128xf32>
    %c0_33 = arith.constant 0 : index
    %c3 = arith.constant 3 : index
    %c0_34 = arith.constant 0 : index
    %141 = vector.load %arg5[%c0_33, %c3, %c0_34] : memref<8x8x128xf32, #tpu.memory_space<vmem>>, vector<8x1x128xf32>
    %142 = vector.shape_cast %141 : vector<8x1x128xf32> to vector<8x128xf32>
    %143 = vector.shape_cast %140 : vector<8x128xf32> to vector<8x1x128xf32>
    tpu.vector_store %arg5[%c0_33, %c3, %c0_34], %143 {strides = array<i32>} : memref<8x8x128xf32, #tpu.memory_space<vmem>>, vector<8x1x128xf32>,
    %144 = vector.extract_strided_slice %8 {offsets = [0, 4, 0], sizes = [8, 1, 512], strides = [1, 1, 1]} : vector<8x8x512xf32> to vector<8x1x512xf32>
    %145 = vector.shape_cast %144 : vector<8x1x512xf32> to vector<8x512xf32>
    %146 = arith.truncf %140 : vector<8x128xf32> to vector<8x128xbf16>
    %cst_35 = arith.constant dense<0.000000e+00> : vector<8x512xf32>
    %147 = tpu.matmul %146, %9, %cst_35 {dimension_numbers = #tpu.dot_dimension_numbers<[1], [0], [0], [1], [0, 0, 1, 1], [], []>} : vector<8x128xbf16>, vector<128x512xbf16>, vector<8x512xf32> -> vector<8x512xf32>
    %148 = arith.addf %145, %147 : vector<8x512xf32>
    %149 = vector.extract_strided_slice %148 {offsets = [0, 0], sizes = [8, 128], strides = [1, 1]} : vector<8x512xf32> to vector<8x128xf32>
    %150 = arith.negf %149 : vector<8x128xf32>
    %151 = math.exp %150 : vector<8x128xf32>
    %cst_36 = arith.constant 1.000000e+00 : f32
    %152 = vector.broadcast %cst_36 : f32 to vector<8x128xf32>
    %153 = arith.addf %152, %151 : vector<8x128xf32>
    %154 = arith.divf %152, %153 : vector<8x128xf32>
    %155 = vector.extract_strided_slice %148 {offsets = [0, 128], sizes = [8, 128], strides = [1, 1]} : vector<8x512xf32> to vector<8x128xf32>
    %156 = arith.negf %155 : vector<8x128xf32>
    %157 = math.exp %156 : vector<8x128xf32>
    %cst_37 = arith.constant 1.000000e+00 : f32
    %158 = vector.broadcast %cst_37 : f32 to vector<8x128xf32>
    %159 = arith.addf %158, %157 : vector<8x128xf32>
    %160 = arith.divf %158, %159 : vector<8x128xf32>
    %161 = vector.extract_strided_slice %148 {offsets = [0, 256], sizes = [8, 128], strides = [1, 1]} : vector<8x512xf32> to vector<8x128xf32>
    %162 = math.tanh %161 : vector<8x128xf32>
    %163 = vector.extract_strided_slice %148 {offsets = [0, 384], sizes = [8, 128], strides = [1, 1]} : vector<8x512xf32> to vector<8x128xf32>
    %164 = arith.negf %163 : vector<8x128xf32>
    %165 = math.exp %164 : vector<8x128xf32>
    %cst_38 = arith.constant 1.000000e+00 : f32
    %166 = vector.broadcast %cst_38 : f32 to vector<8x128xf32>
    %167 = arith.addf %166, %165 : vector<8x128xf32>
    %168 = arith.divf %166, %167 : vector<8x128xf32>
    %169 = arith.mulf %160, %138 : vector<8x128xf32>
    %170 = arith.mulf %154, %162 : vector<8x128xf32>
    %171 = arith.addf %169, %170 : vector<8x128xf32>
    %172 = math.tanh %171 : vector<8x128xf32>
    %173 = arith.mulf %168, %172 : vector<8x128xf32>
    %c0_39 = arith.constant 0 : index
    %c4 = arith.constant 4 : index
    %c0_40 = arith.constant 0 : index
    %174 = vector.load %arg5[%c0_39, %c4, %c0_40] : memref<8x8x128xf32, #tpu.memory_space<vmem>>, vector<8x1x128xf32>
    %175 = vector.shape_cast %174 : vector<8x1x128xf32> to vector<8x128xf32>
    %176 = vector.shape_cast %173 : vector<8x128xf32> to vector<8x1x128xf32>
    tpu.vector_store %arg5[%c0_39, %c4, %c0_40], %176 {strides = array<i32>} : memref<8x8x128xf32, #tpu.memory_space<vmem>>, vector<8x1x128xf32>,
    %177 = vector.extract_strided_slice %8 {offsets = [0, 5, 0], sizes = [8, 1, 512], strides = [1, 1, 1]} : vector<8x8x512xf32> to vector<8x1x512xf32>
    %178 = vector.shape_cast %177 : vector<8x1x512xf32> to vector<8x512xf32>
    %179 = arith.truncf %173 : vector<8x128xf32> to vector<8x128xbf16>
    %cst_41 = arith.constant dense<0.000000e+00> : vector<8x512xf32>
    %180 = tpu.matmul %179, %9, %cst_41 {dimension_numbers = #tpu.dot_dimension_numbers<[1], [0], [0], [1], [0, 0, 1, 1], [], []>} : vector<8x128xbf16>, vector<128x512xbf16>, vector<8x512xf32> -> vector<8x512xf32>
    %181 = arith.addf %178, %180 : vector<8x512xf32>
    %182 = vector.extract_strided_slice %181 {offsets = [0, 0], sizes = [8, 128], strides = [1, 1]} : vector<8x512xf32> to vector<8x128xf32>
    %183 = arith.negf %182 : vector<8x128xf32>
    %184 = math.exp %183 : vector<8x128xf32>
    %cst_42 = arith.constant 1.000000e+00 : f32
    %185 = vector.broadcast %cst_42 : f32 to vector<8x128xf32>
    %186 = arith.addf %185, %184 : vector<8x128xf32>
    %187 = arith.divf %185, %186 : vector<8x128xf32>
    %188 = vector.extract_strided_slice %181 {offsets = [0, 128], sizes = [8, 128], strides = [1, 1]} : vector<8x512xf32> to vector<8x128xf32>
    %189 = arith.negf %188 : vector<8x128xf32>
    %190 = math.exp %189 : vector<8x128xf32>
    %cst_43 = arith.constant 1.000000e+00 : f32
    %191 = vector.broadcast %cst_43 : f32 to vector<8x128xf32>
    %192 = arith.addf %191, %190 : vector<8x128xf32>
    %193 = arith.divf %191, %192 : vector<8x128xf32>
    %194 = vector.extract_strided_slice %181 {offsets = [0, 256], sizes = [8, 128], strides = [1, 1]} : vector<8x512xf32> to vector<8x128xf32>
    %195 = math.tanh %194 : vector<8x128xf32>
    %196 = vector.extract_strided_slice %181 {offsets = [0, 384], sizes = [8, 128], strides = [1, 1]} : vector<8x512xf32> to vector<8x128xf32>
    %197 = arith.negf %196 : vector<8x128xf32>
    %198 = math.exp %197 : vector<8x128xf32>
    %cst_44 = arith.constant 1.000000e+00 : f32
    %199 = vector.broadcast %cst_44 : f32 to vector<8x128xf32>
    %200 = arith.addf %199, %198 : vector<8x128xf32>
    %201 = arith.divf %199, %200 : vector<8x128xf32>
    %202 = arith.mulf %193, %171 : vector<8x128xf32>
    %203 = arith.mulf %187, %195 : vector<8x128xf32>
    %204 = arith.addf %202, %203 : vector<8x128xf32>
    %205 = math.tanh %204 : vector<8x128xf32>
    %206 = arith.mulf %201, %205 : vector<8x128xf32>
    %c0_45 = arith.constant 0 : index
    %c5 = arith.constant 5 : index
    %c0_46 = arith.constant 0 : index
    %207 = vector.load %arg5[%c0_45, %c5, %c0_46] : memref<8x8x128xf32, #tpu.memory_space<vmem>>, vector<8x1x128xf32>
    %208 = vector.shape_cast %207 : vector<8x1x128xf32> to vector<8x128xf32>
    %209 = vector.shape_cast %206 : vector<8x128xf32> to vector<8x1x128xf32>
    tpu.vector_store %arg5[%c0_45, %c5, %c0_46], %209 {strides = array<i32>} : memref<8x8x128xf32, #tpu.memory_space<vmem>>, vector<8x1x128xf32>,
    %210 = vector.extract_strided_slice %8 {offsets = [0, 6, 0], sizes = [8, 1, 512], strides = [1, 1, 1]} : vector<8x8x512xf32> to vector<8x1x512xf32>
    %211 = vector.shape_cast %210 : vector<8x1x512xf32> to vector<8x512xf32>
    %212 = arith.truncf %206 : vector<8x128xf32> to vector<8x128xbf16>
    %cst_47 = arith.constant dense<0.000000e+00> : vector<8x512xf32>
    %213 = tpu.matmul %212, %9, %cst_47 {dimension_numbers = #tpu.dot_dimension_numbers<[1], [0], [0], [1], [0, 0, 1, 1], [], []>} : vector<8x128xbf16>, vector<128x512xbf16>, vector<8x512xf32> -> vector<8x512xf32>
    %214 = arith.addf %211, %213 : vector<8x512xf32>
    %215 = vector.extract_strided_slice %214 {offsets = [0, 0], sizes = [8, 128], strides = [1, 1]} : vector<8x512xf32> to vector<8x128xf32>
    %216 = arith.negf %215 : vector<8x128xf32>
    %217 = math.exp %216 : vector<8x128xf32>
    %cst_48 = arith.constant 1.000000e+00 : f32
    %218 = vector.broadcast %cst_48 : f32 to vector<8x128xf32>
    %219 = arith.addf %218, %217 : vector<8x128xf32>
    %220 = arith.divf %218, %219 : vector<8x128xf32>
    %221 = vector.extract_strided_slice %214 {offsets = [0, 128], sizes = [8, 128], strides = [1, 1]} : vector<8x512xf32> to vector<8x128xf32>
    %222 = arith.negf %221 : vector<8x128xf32>
    %223 = math.exp %222 : vector<8x128xf32>
    %cst_49 = arith.constant 1.000000e+00 : f32
    %224 = vector.broadcast %cst_49 : f32 to vector<8x128xf32>
    %225 = arith.addf %224, %223 : vector<8x128xf32>
    %226 = arith.divf %224, %225 : vector<8x128xf32>
    %227 = vector.extract_strided_slice %214 {offsets = [0, 256], sizes = [8, 128], strides = [1, 1]} : vector<8x512xf32> to vector<8x128xf32>
    %228 = math.tanh %227 : vector<8x128xf32>
    %229 = vector.extract_strided_slice %214 {offsets = [0, 384], sizes = [8, 128], strides = [1, 1]} : vector<8x512xf32> to vector<8x128xf32>
    %230 = arith.negf %229 : vector<8x128xf32>
    %231 = math.exp %230 : vector<8x128xf32>
    %cst_50 = arith.constant 1.000000e+00 : f32
    %232 = vector.broadcast %cst_50 : f32 to vector<8x128xf32>
    %233 = arith.addf %232, %231 : vector<8x128xf32>
    %234 = arith.divf %232, %233 : vector<8x128xf32>
    %235 = arith.mulf %226, %204 : vector<8x128xf32>
    %236 = arith.mulf %220, %228 : vector<8x128xf32>
    %237 = arith.addf %235, %236 : vector<8x128xf32>
    %238 = math.tanh %237 : vector<8x128xf32>
    %239 = arith.mulf %234, %238 : vector<8x128xf32>
    %c0_51 = arith.constant 0 : index
    %c6 = arith.constant 6 : index
    %c0_52 = arith.constant 0 : index
    %240 = vector.load %arg5[%c0_51, %c6, %c0_52] : memref<8x8x128xf32, #tpu.memory_space<vmem>>, vector<8x1x128xf32>
    %241 = vector.shape_cast %240 : vector<8x1x128xf32> to vector<8x128xf32>
    %242 = vector.shape_cast %239 : vector<8x128xf32> to vector<8x1x128xf32>
    tpu.vector_store %arg5[%c0_51, %c6, %c0_52], %242 {strides = array<i32>} : memref<8x8x128xf32, #tpu.memory_space<vmem>>, vector<8x1x128xf32>,
    %243 = vector.extract_strided_slice %8 {offsets = [0, 7, 0], sizes = [8, 1, 512], strides = [1, 1, 1]} : vector<8x8x512xf32> to vector<8x1x512xf32>
    %244 = vector.shape_cast %243 : vector<8x1x512xf32> to vector<8x512xf32>
    %245 = arith.truncf %239 : vector<8x128xf32> to vector<8x128xbf16>
    %cst_53 = arith.constant dense<0.000000e+00> : vector<8x512xf32>
    %246 = tpu.matmul %245, %9, %cst_53 {dimension_numbers = #tpu.dot_dimension_numbers<[1], [0], [0], [1], [0, 0, 1, 1], [], []>} : vector<8x128xbf16>, vector<128x512xbf16>, vector<8x512xf32> -> vector<8x512xf32>
    %247 = arith.addf %244, %246 : vector<8x512xf32>
    %248 = vector.extract_strided_slice %247 {offsets = [0, 0], sizes = [8, 128], strides = [1, 1]} : vector<8x512xf32> to vector<8x128xf32>
    %249 = arith.negf %248 : vector<8x128xf32>
    %250 = math.exp %249 : vector<8x128xf32>
    %cst_54 = arith.constant 1.000000e+00 : f32
    %251 = vector.broadcast %cst_54 : f32 to vector<8x128xf32>
    %252 = arith.addf %251, %250 : vector<8x128xf32>
    %253 = arith.divf %251, %252 : vector<8x128xf32>
    %254 = vector.extract_strided_slice %247 {offsets = [0, 128], sizes = [8, 128], strides = [1, 1]} : vector<8x512xf32> to vector<8x128xf32>
    %255 = arith.negf %254 : vector<8x128xf32>
    %256 = math.exp %255 : vector<8x128xf32>
    %cst_55 = arith.constant 1.000000e+00 : f32
    %257 = vector.broadcast %cst_55 : f32 to vector<8x128xf32>
    %258 = arith.addf %257, %256 : vector<8x128xf32>
    %259 = arith.divf %257, %258 : vector<8x128xf32>
    %260 = vector.extract_strided_slice %247 {offsets = [0, 256], sizes = [8, 128], strides = [1, 1]} : vector<8x512xf32> to vector<8x128xf32>
    %261 = math.tanh %260 : vector<8x128xf32>
    %262 = vector.extract_strided_slice %247 {offsets = [0, 384], sizes = [8, 128], strides = [1, 1]} : vector<8x512xf32> to vector<8x128xf32>
    %263 = arith.negf %262 : vector<8x128xf32>
    %264 = math.exp %263 : vector<8x128xf32>
    %cst_56 = arith.constant 1.000000e+00 : f32
    %265 = vector.broadcast %cst_56 : f32 to vector<8x128xf32>
    %266 = arith.addf %265, %264 : vector<8x128xf32>
    %267 = arith.divf %265, %266 : vector<8x128xf32>
    %268 = arith.mulf %259, %237 : vector<8x128xf32>
    %269 = arith.mulf %253, %261 : vector<8x128xf32>
    %270 = arith.addf %268, %269 : vector<8x128xf32>
    %271 = math.tanh %270 : vector<8x128xf32>
    %272 = arith.mulf %267, %271 : vector<8x128xf32>
    %c0_57 = arith.constant 0 : index
    %c7 = arith.constant 7 : index
    %c0_58 = arith.constant 0 : index
    %273 = vector.load %arg5[%c0_57, %c7, %c0_58] : memref<8x8x128xf32, #tpu.memory_space<vmem>>, vector<8x1x128xf32>
    %274 = vector.shape_cast %273 : vector<8x1x128xf32> to vector<8x128xf32>
    %275 = vector.shape_cast %272 : vector<8x128xf32> to vector<8x1x128xf32>
    tpu.vector_store %arg5[%c0_57, %c7, %c0_58], %275 {strides = array<i32>} : memref<8x8x128xf32, #tpu.memory_space<vmem>>, vector<8x1x128xf32>,
    return
  }
  func.func @transform_0(%arg0: i32) -> (i32, i32, i32) {
    %c0_i32 = arith.constant 0 : i32
    %c0_i32_0 = arith.constant 0 : i32
    %c0_i32_1 = arith.constant 0 : i32
    return %arg0, %c0_i32, %c0_i32_0 : i32, i32, i32
  }
  func.func @transform_1(%arg0: i32) -> (i32, i32) {
    %c0_i32 = arith.constant 0 : i32
    %c0_i32_0 = arith.constant 0 : i32
    %c0_i32_1 = arith.constant 0 : i32
    return %c0_i32, %c0_i32_0 : i32, i32
  }
  func.func @transform_2(%arg0: i32) -> (i32, i32) {
    %c0_i32 = arith.constant 0 : i32
    %c0_i32_0 = arith.constant 0 : i32
    %c0_i32_1 = arith.constant 0 : i32
    return %c0_i32, %c0_i32_0 : i32, i32
  }
  func.func @transform_3(%arg0: i32) -> (i32, i32) {
    %c0_i32 = arith.constant 0 : i32
    %c0_i32_0 = arith.constant 0 : i32
    %c0_i32_1 = arith.constant 0 : i32
    return %c0_i32, %c0_i32_0 : i32, i32
  }
  func.func @transform_4(%arg0: i32) -> (i32, i32, i32) {
    %c0_i32 = arith.constant 0 : i32
    %c0_i32_0 = arith.constant 0 : i32
    %c0_i32_1 = arith.constant 0 : i32
    return %arg0, %c0_i32, %c0_i32_0 : i32, i32, i32
  }
}

</mosaic_0001>

<bundles_post_ra>
// kernel: decoder_forward.3
= control target key start
LH: loop header
LB: loop body
LE: loop exit
PB: predicated region body
PF: predicated region fallthrough
CT: control target
= control target key end

     0   :  { %v325_v2 = vmov 0   ;;  %s436_s0 = inlined_call_operand.vmem [shape: f32[64,128], index: 0, kind: input, shape index: {}]   ;;  %s437_s1 = inlined_call_operand.vmem [shape: bf16[128,256], index: 1, kind: input, shape index: {}]   ;;  %s438_s2 = inlined_call_operand.vmem [shape: f32[1,256], index: 2, kind: input, shape index: {}]   ;;  %s439_s3 = inlined_call_operand.hbm [shape: f32[64,256], index: 3, kind: output, shape index: {}]  }
   0x1   :  { %v277_v0 = vld [vmem:[%s437_s1 + $0x4] ss:$8 sps:$4 sm:$0xff]   ;;  %v279_v1 = vld [vmem:[%s437_s1] ss:$8 sps:$4 sm:$0xff]   ;;  %168 = vmatprep.mubr.bf16.mxu0 %v325_v2  ;;  %188 = vmatprep.mubr.bf16.mxu1 %v325_v2  ;;  %v280_v3 = vld [vmem:[%s437_s1 + $0x14] ss:$8 sps:$4 sm:$0xff]  }
   0x2   :  { %136 = vmatprep.subr.bf16.mxu0 %v277_v0  ;;  %257 = vmatprep.subr.bf16.mxu1 %v277_v0  ;;  %v282_v4 = vld [vmem:[%s437_s1 + $0x10] ss:$8 sps:$4 sm:$0xff]   ;;  %v283_v5 = vld [vmem:[%s437_s1 + $0x24] ss:$8 sps:$4 sm:$0xff]   ;;  %v285_v6 = vld [vmem:[%s437_s1 + $0x20] ss:$8 sps:$4 sm:$0xff]  }
   0x3   :  { %137 = vmatpush1.bf16.msra.mxu0 %v279_v1  ;;  %265 = vmatpush1.bf16.msra.mxu1 %v279_v1  ;;  %v286_v7 = vld [vmem:[%s437_s1 + $0x34] ss:$8 sps:$4 sm:$0xff]   ;;  %v288_v8 = vld [vmem:[%s437_s1 + $0x30] ss:$8 sps:$4 sm:$0xff]   ;;  %v289_v9 = vld [vmem:[%s437_s1 + $0x44] ss:$8 sps:$4 sm:$0xff]  }
   0x4   :  { %138 = vmatprep.subr.bf16.mxu0 %v280_v3  ;;  %258 = vmatprep.subr.bf16.mxu1 %v280_v3 }
   0x7   :  { %139 = vmatpush1.bf16.msra.mxu0 %v282_v4  ;;  %266 = vmatpush1.bf16.msra.mxu1 %v282_v4 }
   0x8   :  { %140 = vmatprep.subr.bf16.mxu0 %v283_v5  ;;  %259 = vmatprep.subr.bf16.mxu1 %v283_v5 }
   0xb   :  { %141 = vmatpush1.bf16.msra.mxu0 %v285_v6  ;;  %267 = vmatpush1.bf16.msra.mxu1 %v285_v6 }
   0xc   :  { %142 = vmatprep.subr.bf16.mxu0 %v286_v7  ;;  %260 = vmatprep.subr.bf16.mxu1 %v286_v7 }
   0xd   :  { %8 = vsyncpa [#allocation3], 0  ;;  %v291_v10 = vld [vmem:[%s437_s1 + $0x40] ss:$8 sps:$4 sm:$0xff]   ;;  %v292_v11 = vld [vmem:[%s437_s1 + $0x54] ss:$8 sps:$4 sm:$0xff]   ;;  %v46_v29 = vlaneseq }
   0xe   :  { %v294_v12 = vld [vmem:[%s437_s1 + $0x50] ss:$8 sps:$4 sm:$0xff]   ;;  %v295_v13 = vld [vmem:[%s437_s1 + $0x64] ss:$8 sps:$4 sm:$0xff]   ;;  %v297_v14 = vld [vmem:[%s437_s1 + $0x60] ss:$8 sps:$4 sm:$0xff]  }
   0xf   :  { %143 = vmatpush1.bf16.msra.mxu0 %v288_v8  ;;  %268 = vmatpush1.bf16.msra.mxu1 %v288_v8  ;;  %v298_v15 = vld [vmem:[%s437_s1 + $0x74] ss:$8 sps:$4 sm:$0xff]   ;;  %v300_v16 = vld [vmem:[%s437_s1 + $0x70] ss:$8 sps:$4 sm:$0xff]   ;;  %v16_v17 = vld [vmem:[%s436_s0] sm:$0xff]  ;;  %v47_v30 = vshrl.u32 %v46_v29, 7 }
  0x10   :  { %144 = vmatprep.subr.bf16.mxu0 %v289_v9  ;;  %261 = vmatprep.subr.bf16.mxu1 %v289_v9  ;;  %v17_v18 = vld [vmem:[%s436_s0 + $0x8] sm:$0xff]  ;;  %v20_v19 = vld [vmem:[%s436_s0 + $0x20] sm:$0xff]  ;;  %v18_v23 = vld [vmem:[%s436_s0 + $0x10] sm:$0xff] }
  0x11   :  { %v21_v20 = vld [vmem:[%s436_s0 + $0x28] sm:$0xff]  ;;  %v24_v21 = vpack.c.bf16 %v17_v18, %v16_v17  ;;  %v19_v24 = vld [vmem:[%s436_s0 + $0x18] sm:$0xff]  ;;  %v22_v25 = vld [vmem:[%s436_s0 + $0x30] sm:$0xff]  ;;  %v48_v31 = vsub.s32 0, %v47_v30  ;;  %v52_v33 = vsub.s32 1, %v47_v30 }
  0x12   :  { %v26_v22 = vpack.c.bf16 %v21_v20, %v20_v19  ;;  %v23_v26 = vld [vmem:[%s436_s0 + $0x38] sm:$0xff]  ;;  %v25_v27 = vpack.c.bf16 %v19_v24, %v18_v23  ;;  %v44_v32 = vld [vmem:[%s438_s2] sm:$0x3]  ;;  %s326_s0 = smov [#allocation2]  }
  0x13   :  { %145 = vmatpush1.bf16.msra.mxu0 %v291_v10  ;;  %269 = vmatpush1.bf16.msra.mxu1 %v291_v10  ;;  %v27_v28 = vpack.c.bf16 %v23_v26, %v22_v25  ;;  %v49_v34 = vrot.slane %v44_v32, %v48_v31  ;;  %v53_v35 = vrot.slane %v44_v32, %v52_v33  ;;  %s230_s2 = sshll.u32 %s326_s0, 4  ;;  %s231_s2 = int_to_ptr.vmem [resolvable:$true] %s230_s2 }
  0x14   :  { %146 = vmatprep.subr.bf16.mxu0 %v292_v11  ;;  %262 = vmatprep.subr.bf16.mxu1 %v292_v11  ;;  %s301_s7 = scalar_lea.vmem %s231_s2, 2048  ;;  %p306_p1 = scmp.lt.s32.totalorder %s231_s2, %s231_s2 }
  0x15   :  { %p302_p0 = scmp.ne.s32.totalorder %s231_s2, %s301_s7  ;;  %p307_p2 = scmp.lt.s32.totalorder %s301_s7, %s301_s7 }
  0x17   :  { %147 = vmatpush1.bf16.msra.mxu0 %v294_v12  ;;  %270 = vmatpush1.bf16.msra.mxu1 %v294_v12  ;;  %p308_p3 = por %p307_p2, %p306_p1 }
  0x18   :  { %148 = vmatprep.subr.bf16.mxu0 %v295_v13  ;;  %263 = vmatprep.subr.bf16.mxu1 %v295_v13 }
  0x19   :  { %p309_p4 = pnand %p308_p3, %p302_p0 }
  0x1b   :  { %149 = vmatpush1.bf16.msra.mxu0 %v297_v14  ;;  %271 = vmatpush1.bf16.msra.mxu1 %v297_v14 }
  0x1c   :  { %150 = vmatprep.subr.bf16.mxu0 %v298_v15  ;;  %264 = vmatprep.subr.bf16.mxu1 %v298_v15 }
  0x1f   :  { %151 = vmatpush1.bf16.msra.mxu0 %v300_v16  ;;  %272 = vmatpush1.bf16.msra.mxu1 %v300_v16 }
  0x22   :  { %169 = vmatmul.mubr.bf16.vlgmr.msra.gmra.mrb[0].mxu0 %v24_v21  ;;  %189 = vmatmul.mubr.bf16.vlgmr.msra.gmra.mrb[0].mxu1 %v26_v22 }
  0x23   :  { %178 = vmatprep.mubr.bf16.mxu0 %v325_v2  ;;  %198 = vmatprep.mubr.bf16.mxu1 %v325_v2 }
  0x2a   :  { %179 = vmatmul.mubr.bf16.gmra.mrb[4].mxu0 %v25_v27  ;;  %199 = vmatmul.mubr.bf16.gmra.mrb[4].mxu1 %v27_v28 }
  0xf5   :  { %v170_v36 = vpop.f32.mrb[0].mxu0  ;;  %v190_v37 = vpop.f32.mrb[0].mxu1 }
  0xf6   :  { %v171_v38 = vadd.f32 %v170_v36, %v49_v34  ;;  %v191_v39 = vadd.f32 %v190_v37, %v49_v34  ;;  %v172_v40 = vpop.f32.mrb[1].mxu0  ;;  %v192_v41 = vpop.f32.mrb[1].mxu1 }
  0xf7   :  { %v173_v42 = vadd.f32 %v172_v40, %v53_v35  ;;  %v193_v43 = vadd.f32 %v192_v41, %v53_v35  ;;  %v174_v44 = vpop.f32.mrb[2].mxu0  ;;  %v194_v45 = vpop.f32.mrb[2].mxu1 }
  0xf8   :  { %209 = vst [vmem:[#allocation2] sm:$0xff] %v171_v38  ;;  %217 = vst [vmem:[#allocation2 + $0x40] sm:$0xff] %v191_v39  ;;  %v175_v46 = vadd.f32 %v174_v44, %v49_v34  ;;  %v195_v47 = vadd.f32 %v194_v45, %v49_v34  ;;  %v176_v48 = vpop.f32.mrb[3].mxu0  ;;  %v196_v49 = vpop.f32.mrb[3].mxu1 }
  0xf9   :  { %210 = vst [vmem:[#allocation2 + $0x8] sm:$0xff] %v173_v42  ;;  %218 = vst [vmem:[#allocation2 + $0x48] sm:$0xff] %v193_v43  ;;  %v177_v50 = vadd.f32 %v176_v48, %v53_v35  ;;  %v197_v51 = vadd.f32 %v196_v49, %v53_v35 }
  0xfa   :  { %211 = vst [vmem:[#allocation2 + $0x10] sm:$0xff] %v175_v46  ;;  %219 = vst [vmem:[#allocation2 + $0x50] sm:$0xff] %v195_v47 }
  0xfb   :  { %212 = vst [vmem:[#allocation2 + $0x18] sm:$0xff] %v177_v50  ;;  %220 = vst [vmem:[#allocation2 + $0x58] sm:$0xff] %v197_v51 }
  0xfd   :  { %v180_v52 = vpop.f32.mrb[4].mxu0  ;;  %v200_v53 = vpop.f32.mrb[4].mxu1 }
  0xfe   :  { %v181_v54 = vadd.f32 %v180_v52, %v49_v34  ;;  %v201_v55 = vadd.f32 %v200_v53, %v49_v34  ;;  %v182_v56 = vpop.f32.mrb[5].mxu0  ;;  %v202_v57 = vpop.f32.mrb[5].mxu1 }
  0xff   :  { %v183_v58 = vadd.f32 %v182_v56, %v53_v35  ;;  %v203_v59 = vadd.f32 %v202_v57, %v53_v35  ;;  %v184_v60 = vpop.f32.mrb[6].mxu0  ;;  %v204_v61 = vpop.f32.mrb[6].mxu1 }
 0x100   :  { %213 = vst [vmem:[#allocation2 + $0x20] sm:$0xff] %v181_v54  ;;  %221 = vst [vmem:[#allocation2 + $0x60] sm:$0xff] %v201_v55  ;;  %v185_v62 = vadd.f32 %v184_v60, %v49_v34  ;;  %v205_v63 = vadd.f32 %v204_v61, %v49_v34  ;;  %v186_v0 = vpop.f32.mrb[7].mxu0  ;;  %v206_v1 = vpop.f32.mrb[7].mxu1 }
 0x101   :  { %214 = vst [vmem:[#allocation2 + $0x28] sm:$0xff] %v183_v58  ;;  %222 = vst [vmem:[#allocation2 + $0x68] sm:$0xff] %v203_v59  ;;  %v187_v2 = vadd.f32 %v186_v0, %v53_v35  ;;  %v207_v3 = vadd.f32 %v206_v1, %v53_v35 }
 0x102   :  { %215 = vst [vmem:[#allocation2 + $0x30] sm:$0xff] %v185_v62  ;;  %223 = vst [vmem:[#allocation2 + $0x70] sm:$0xff] %v205_v63 }
 0x103   :  { %216 = vst [vmem:[#allocation2 + $0x38] sm:$0xff] %v187_v2  ;;  %224 = vst [vmem:[#allocation2 + $0x78] sm:$0xff] %v207_v3 }
 0x104   :  { %312 = shalt.err (!%p309_p4)
}
 0x105   :  { %s313_s10 = scalar_lea.hbm %s439_s3, 2048 }
 0x106   :  { %p314_p5 = scmp.ne.s32.totalorder %s439_s3, %s313_s10  ;;  %p317_p6 = scmp.lt.u32.totalorder %s313_s10, %s439_s3 }
 0x108   :  { %p319_p7 = pnand %p317_p6, %p314_p5 }
 0x10a   :  { %322 = shalt.err (!%p319_p7)
}
 0x10b   :  { %s327_s15 = smov 256   ;;  %s328_s16 = smov 16  }
 0x10c   :  { %236 = dma.vmem_to_hbm [thread:$0]  %s231_s2, 2048, %s439_s3, [#allocation3], %s327_s15, %s327_s15, %s328_s16  }
 0x10d   :  { %323 = dma.done.wait [#allocation3], 2048  }
 0x10e   :  { %324 = vsyncadd [#allocation3], 4294965248 }
 0x10f   :  { %240 = vsyncpa [#allocation3], 1 }

// kernel: decoder_forward.2
= control target key start
LH: loop header
LB: loop body
LE: loop exit
PB: predicated region body
PF: predicated region fallthrough
CT: control target
= control target key end

     0   :  { %v7879_v1 = vmov 0   ;;  %vm985_vm0 = vcmask 1041409   ;;  %vm988_vm1 = vcmask 1042434   ;;  %vm991_vm2 = vcmask 1043459   ;;  %s7874_s1 = inlined_call_operand.vmem [shape: bf16[128,512], index: 1, kind: input, shape index: {}]   ;;  %s7875_s2 = inlined_call_operand.vmem [shape: bf16[128,512], index: 2, kind: input, shape index: {}]   ;;  %s7876_s0 = inlined_call_operand.vmem [shape: f32[8,8,128], index: 0, kind: input, shape index: {}]   ;;  %s7877_s3 = inlined_call_operand.vmem [shape: f32[1,512], index: 3, kind: input, shape index: {}]   ;;  %s7878_s4 = inlined_call_operand.vmem [shape: f32[8,8,128], index: 4, kind: output, shape index: {}]  }
   0x1   :  { %v4322_v0 = vld [vmem:[%s7874_s1 + $0x4] ss:$16 sps:$4 sm:$0xff]   ;;  %276 = vmatprep.mubr.bf16.mxu0 %v7879_v1  ;;  %349 = vmatprep.mubr.bf16.mxu1 %v7879_v1  ;;  %v4324_v2 = vld [vmem:[%s7874_s1 + $0xc] ss:$16 sps:$4 sm:$0xff]   ;;  %v4326_v3 = vld [vmem:[%s7874_s1] ss:$16 sps:$4 sm:$0xff]  }
   0x2   :  { %244 = vmatprep.subr.bf16.mxu0 %v4322_v0  ;;  %v4327_v4 = vld [vmem:[%s7874_s1 + $0x8] ss:$16 sps:$4 sm:$0xff]   ;;  %317 = vmatprep.subr.bf16.mxu1 %v4324_v2  ;;  %v4328_v5 = vld [vmem:[%s7874_s1 + $0x24] ss:$16 sps:$4 sm:$0xff]   ;;  %v4330_v6 = vld [vmem:[%s7874_s1 + $0x2c] ss:$16 sps:$4 sm:$0xff]  }
   0x3   :  { %245 = vmatpush1.bf16.msra.mxu0 %v4326_v3  ;;  %318 = vmatpush1.bf16.msra.mxu1 %v4327_v4  ;;  %v4332_v7 = vld [vmem:[%s7874_s1 + $0x20] ss:$16 sps:$4 sm:$0xff]   ;;  %v4333_v8 = vld [vmem:[%s7874_s1 + $0x28] ss:$16 sps:$4 sm:$0xff]   ;;  %v4334_v9 = vld [vmem:[%s7874_s1 + $0x44] ss:$16 sps:$4 sm:$0xff]  }
   0x4   :  { %246 = vmatprep.subr.bf16.mxu0 %v4328_v5  ;;  %319 = vmatprep.subr.bf16.mxu1 %v4330_v6  ;;  %v4336_v10 = vld [vmem:[%s7874_s1 + $0x4c] ss:$16 sps:$4 sm:$0xff]   ;;  %v4338_v11 = vld [vmem:[%s7874_s1 + $0x40] ss:$16 sps:$4 sm:$0xff]   ;;  %v4339_v12 = vld [vmem:[%s7874_s1 + $0x48] ss:$16 sps:$4 sm:$0xff]  }
   0x5   :  { %v4340_v13 = vld [vmem:[%s7874_s1 + $0x64] ss:$16 sps:$4 sm:$0xff]   ;;  %v4342_v14 = vld [vmem:[%s7874_s1 + $0x6c] ss:$16 sps:$4 sm:$0xff]   ;;  %v4344_v15 = vld [vmem:[%s7874_s1 + $0x60] ss:$16 sps:$4 sm:$0xff]  }
   0x6   :  { %v4345_v16 = vld [vmem:[%s7874_s1 + $0x68] ss:$16 sps:$4 sm:$0xff]   ;;  %v4346_v17 = vld [vmem:[%s7874_s1 + $0x84] ss:$16 sps:$4 sm:$0xff]   ;;  %v4348_v18 = vld [vmem:[%s7874_s1 + $0x8c] ss:$16 sps:$4 sm:$0xff]  }
   0x7   :  { %247 = vmatpush1.bf16.msra.mxu0 %v4332_v7  ;;  %320 = vmatpush1.bf16.msra.mxu1 %v4333_v8  ;;  %v4350_v19 = vld [vmem:[%s7874_s1 + $0x80] ss:$16 sps:$4 sm:$0xff]   ;;  %v4351_v20 = vld [vmem:[%s7874_s1 + $0x88] ss:$16 sps:$4 sm:$0xff]   ;;  %v4352_v21 = vld [vmem:[%s7874_s1 + $0xa4] ss:$16 sps:$4 sm:$0xff]  }
   0x8   :  { %248 = vmatprep.subr.bf16.mxu0 %v4334_v9  ;;  %321 = vmatprep.subr.bf16.mxu1 %v4336_v10  ;;  %v4354_v22 = vld [vmem:[%s7874_s1 + $0xac] ss:$16 sps:$4 sm:$0xff]   ;;  %v4356_v23 = vld [vmem:[%s7874_s1 + $0xa0] ss:$16 sps:$4 sm:$0xff]   ;;  %v4357_v24 = vld [vmem:[%s7874_s1 + $0xa8] ss:$16 sps:$4 sm:$0xff]  }
   0x9   :  { %v4358_v25 = vld [vmem:[%s7874_s1 + $0xc4] ss:$16 sps:$4 sm:$0xff]   ;;  %v4360_v26 = vld [vmem:[%s7874_s1 + $0xcc] ss:$16 sps:$4 sm:$0xff]   ;;  %v4362_v27 = vld [vmem:[%s7874_s1 + $0xc0] ss:$16 sps:$4 sm:$0xff]  }
   0xa   :  { %v4363_v28 = vld [vmem:[%s7874_s1 + $0xc8] ss:$16 sps:$4 sm:$0xff]   ;;  %v4364_v29 = vld [vmem:[%s7874_s1 + $0xe4] ss:$16 sps:$4 sm:$0xff]   ;;  %v4366_v30 = vld [vmem:[%s7874_s1 + $0xec] ss:$16 sps:$4 sm:$0xff]  }
   0xb   :  { %249 = vmatpush1.bf16.msra.mxu0 %v4338_v11  ;;  %322 = vmatpush1.bf16.msra.mxu1 %v4339_v12  ;;  %v4368_v31 = vld [vmem:[%s7874_s1 + $0xe0] ss:$16 sps:$4 sm:$0xff]   ;;  %v4369_v32 = vld [vmem:[%s7874_s1 + $0xe8] ss:$16 sps:$4 sm:$0xff]   ;;  %v5671_v35 = vld [vmem:[%s7875_s2 + $0x4] ss:$16 sps:$4 sm:$0xff]  }
   0xc   :  { %250 = vmatprep.subr.bf16.mxu0 %v4340_v13  ;;  %323 = vmatprep.subr.bf16.mxu1 %v4342_v14  ;;  %v18_v33 = vld [vmem:[%s7876_s0] sm:$0xff]  ;;  %v19_v34 = vld [vmem:[%s7876_s0 + $0x8] sm:$0xff]  ;;  %v20_v44 = vld [vmem:[%s7876_s0 + $0x10] sm:$0xff]  ;;  %vm994_vm3 = vcmask 1044484   ;;  %vm997_vm4 = vcmask 1045509   ;;  %vm1000_vm5 = vcmask 1046534  }
   0xd   :  { %v5676_v36 = vld [vmem:[%s7875_s2 + $0xc] ss:$16 sps:$4 sm:$0xff]   ;;  %v26_v37 = vpack.c.bf16 %v19_v34, %v18_v33  ;;  %v5681_v38 = vld [vmem:[%s7875_s2] ss:$16 sps:$4 sm:$0xff]   ;;  %v5686_v39 = vld [vmem:[%s7875_s2 + $0x8] ss:$16 sps:$4 sm:$0xff]  }
   0xe   :  { %v5693_v40 = vld [vmem:[%s7875_s2 + $0x24] ss:$16 sps:$4 sm:$0xff]   ;;  %v5698_v41 = vld [vmem:[%s7875_s2 + $0x2c] ss:$16 sps:$4 sm:$0xff]   ;;  %v5703_v42 = vld [vmem:[%s7875_s2 + $0x20] ss:$16 sps:$4 sm:$0xff]  }
   0xf   :  { %251 = vmatpush1.bf16.msra.mxu0 %v4344_v15  ;;  %324 = vmatpush1.bf16.msra.mxu1 %v4345_v16  ;;  %v5708_v43 = vld [vmem:[%s7875_s2 + $0x28] ss:$16 sps:$4 sm:$0xff]   ;;  %v5721_v46 = vld [vmem:[%s7875_s2 + $0x44] ss:$16 sps:$4 sm:$0xff]   ;;  %v5728_v47 = vld [vmem:[%s7875_s2 + $0x4c] ss:$16 sps:$4 sm:$0xff]  }
  0x10   :  { %252 = vmatprep.subr.bf16.mxu0 %v4346_v17  ;;  %325 = vmatprep.subr.bf16.mxu1 %v4348_v18  ;;  %v21_v45 = vld [vmem:[%s7876_s0 + $0x18] sm:$0xff]  ;;  %v5735_v49 = vld [vmem:[%s7875_s2 + $0x40] ss:$16 sps:$4 sm:$0xff]   ;;  %v5747_v51 = vld [vmem:[%s7875_s2 + $0x64] ss:$16 sps:$4 sm:$0xff]   ;;  %vm1003_vm6 = vcmask 1047559  }
  0x11   :  { %v27_v48 = vpack.c.bf16 %v21_v45, %v20_v44  ;;  %v5740_v50 = vld [vmem:[%s7875_s2 + $0x48] ss:$16 sps:$4 sm:$0xff]   ;;  %v5754_v52 = vld [vmem:[%s7875_s2 + $0x6c] ss:$16 sps:$4 sm:$0xff]   ;;  %v5759_v53 = vld [vmem:[%s7875_s2 + $0x60] ss:$16 sps:$4 sm:$0xff]  }
  0x12   :  { %v5764_v54 = vld [vmem:[%s7875_s2 + $0x68] ss:$16 sps:$4 sm:$0xff]   ;;  %v22_v55 = vld [vmem:[%s7876_s0 + $0x20] sm:$0xff]  ;;  %v5784_v58 = vld [vmem:[%s7875_s2 + $0x8c] ss:$16 sps:$4 sm:$0xff]  }
  0x13   :  { %253 = vmatpush1.bf16.msra.mxu0 %v4350_v19  ;;  %326 = vmatpush1.bf16.msra.mxu1 %v4351_v20  ;;  %v23_v56 = vld [vmem:[%s7876_s0 + $0x28] sm:$0xff]  ;;  %v5779_v57 = vld [vmem:[%s7875_s2 + $0x84] ss:$16 sps:$4 sm:$0xff]   ;;  %v5793_v60 = vld [vmem:[%s7875_s2 + $0x80] ss:$16 sps:$4 sm:$0xff]  }
  0x14   :  { %254 = vmatprep.subr.bf16.mxu0 %v4352_v21  ;;  %327 = vmatprep.subr.bf16.mxu1 %v4354_v22  ;;  %v28_v59 = vpack.c.bf16 %v23_v56, %v22_v55  ;;  %v5798_v61 = vld [vmem:[%s7875_s2 + $0x88] ss:$16 sps:$4 sm:$0xff]   ;;  %v5805_v62 = vld [vmem:[%s7875_s2 + $0xa4] ss:$16 sps:$4 sm:$0xff]   ;;  %v5810_v63 = vld [vmem:[%s7875_s2 + $0xac] ss:$16 sps:$4 sm:$0xff]  }
  0x15   :  { %7974 = vst [vmem:[#allocation2_spill] sm:$0xff] %v5805_v62  ;;  %7975 = vst [vmem:[#allocation3_spill] sm:$0xff] %v5810_v63  ;;  %v5815_v0 = vld [vmem:[%s7875_s2 + $0xa0] ss:$16 sps:$4 sm:$0xff]   ;;  %v5822_v2 = vld [vmem:[%s7875_s2 + $0xa8] ss:$16 sps:$4 sm:$0xff]  }
  0x16   :  { %7976 = vst [vmem:[#allocation4_spill] sm:$0xff] %v5815_v0  ;;  %7977 = vst [vmem:[#allocation5_spill] sm:$0xff] %v5822_v2  ;;  %v24_v3 = vld [vmem:[%s7876_s0 + $0x30] sm:$0xff]  ;;  %v25_v4 = vld [vmem:[%s7876_s0 + $0x38] sm:$0xff] }
  0x17   :  { %255 = vmatpush1.bf16.msra.mxu0 %v4356_v23  ;;  %328 = vmatpush1.bf16.msra.mxu1 %v4357_v24  ;;  %v5835_v5 = vld [vmem:[%s7875_s2 + $0xc4] ss:$16 sps:$4 sm:$0xff]   ;;  %v5840_v6 = vld [vmem:[%s7875_s2 + $0xcc] ss:$16 sps:$4 sm:$0xff]   ;;  %v29_v7 = vpack.c.bf16 %v25_v4, %v24_v3  ;;  %v5849_v8 = vld [vmem:[%s7875_s2 + $0xc0] ss:$16 sps:$4 sm:$0xff]  }
  0x18   :  { %256 = vmatprep.subr.bf16.mxu0 %v4358_v25  ;;  %329 = vmatprep.subr.bf16.mxu1 %v4360_v26  ;;  %7978 = vst [vmem:[#allocation6_spill] sm:$0xff] %v5835_v5  ;;  %7979 = vst [vmem:[#allocation7_spill] sm:$0xff] %v5840_v6  ;;  %v5854_v9 = vld [vmem:[%s7875_s2 + $0xc8] ss:$16 sps:$4 sm:$0xff]   ;;  %v5861_v10 = vld [vmem:[%s7875_s2 + $0xe4] ss:$16 sps:$4 sm:$0xff]  }
  0x19   :  { %7980 = vst [vmem:[#allocation8_spill] sm:$0xff] %v5849_v8  ;;  %7981 = vst [vmem:[#allocation9_spill] sm:$0xff] %v5854_v9  ;;  %v5866_v11 = vld [vmem:[%s7875_s2 + $0xec] ss:$16 sps:$4 sm:$0xff]   ;;  %v5873_v12 = vld [vmem:[%s7875_s2 + $0xe0] ss:$16 sps:$4 sm:$0xff]  }
  0x1a   :  { %7982 = vst [vmem:[#allocation10_spill] sm:$0xff] %v5861_v10  ;;  %7983 = vst [vmem:[#allocation11_spill] sm:$0xff] %v5866_v11  ;;  %v5878_v13 = vld [vmem:[%s7875_s2 + $0xe8] ss:$16 sps:$4 sm:$0xff]  }
  0x1b   :  { %257 = vmatpush1.bf16.msra.mxu0 %v4362_v27  ;;  %330 = vmatpush1.bf16.msra.mxu1 %v4363_v28  ;;  %7984 = vst [vmem:[#allocation12_spill] sm:$0xff] %v5873_v12  ;;  %7985 = vst [vmem:[#allocation13_spill] sm:$0xff] %v5878_v13 }
  0x1c   :  { %258 = vmatprep.subr.bf16.mxu0 %v4364_v29  ;;  %331 = vmatprep.subr.bf16.mxu1 %v4366_v30  ;;  %v64_v30 = vlaneseq }
  0x1f   :  { %259 = vmatpush1.bf16.msra.mxu0 %v4368_v31  ;;  %332 = vmatpush1.bf16.msra.mxu1 %v4369_v32 }
  0x20   :  { %582 = vmatprep.subr.bf16.mxu0 %v5671_v35  ;;  %623 = vmatprep.subr.bf16.mxu1 %v5676_v36 }
  0x22   :  { %277 = vmatmul.mubr.bf16.vlgmr.msra.gmra.mrb[0].mxu0 %v26_v37  ;;  %350 = vmatmul.mubr.bf16.vlgmr.msra.gmra.mrb[0].mxu1 %v26_v37  ;;  %v65_v37 = vshrl.u32 %v64_v30, 7 }
  0x23   :  { %583 = vmatpush1.bf16.msra.mxu0 %v5681_v38  ;;  %624 = vmatpush1.bf16.msra.mxu1 %v5686_v39 }
  0x24   :  { %584 = vmatprep.subr.bf16.mxu0 %v5693_v40  ;;  %625 = vmatprep.subr.bf16.mxu1 %v5698_v41  ;;  %v78_v55 = vsub.s32 3, %v65_v37 }
  0x25   :  { %286 = vmatprep.mubr.bf16.mxu0 %v7879_v1  ;;  %359 = vmatprep.mubr.bf16.mxu1 %v7879_v1 }
  0x27   :  { %585 = vmatpush1.bf16.msra.mxu0 %v5703_v42  ;;  %626 = vmatpush1.bf16.msra.mxu1 %v5708_v43 }
  0x28   :  { %586 = vmatprep.subr.bf16.mxu0 %v5721_v46  ;;  %627 = vmatprep.subr.bf16.mxu1 %v5728_v47 }
  0x2a   :  { %287 = vmatmul.mubr.bf16.gmra.mrb[4].mxu0 %v27_v48  ;;  %360 = vmatmul.mubr.bf16.gmra.mrb[4].mxu1 %v27_v48 }
  0x2b   :  { %587 = vmatpush1.bf16.msra.mxu0 %v5735_v49  ;;  %628 = vmatpush1.bf16.msra.mxu1 %v5740_v50 }
  0x2c   :  { %588 = vmatprep.subr.bf16.mxu0 %v5747_v51  ;;  %629 = vmatprep.subr.bf16.mxu1 %v5754_v52 }
  0x2d   :  { %296 = vmatprep.mubr.bf16.mxu0 %v7879_v1  ;;  %369 = vmatprep.mubr.bf16.mxu1 %v7879_v1 }
  0x2f   :  { %589 = vmatpush1.bf16.msra.mxu0 %v5759_v53  ;;  %630 = vmatpush1.bf16.msra.mxu1 %v5764_v54 }
  0x30   :  { %590 = vmatprep.subr.bf16.mxu0 %v5779_v57  ;;  %631 = vmatprep.subr.bf16.mxu1 %v5784_v58 }
  0x32   :  { %297 = vmatmul.mubr.bf16.gmra.mrb[8].mxu0 %v28_v59  ;;  %370 = vmatmul.mubr.bf16.gmra.mrb[8].mxu1 %v28_v59 }
  0x33   :  { %591 = vmatpush1.bf16.msra.mxu0 %v5793_v60  ;;  %632 = vmatpush1.bf16.msra.mxu1 %v5798_v61 }
  0x34   :  { %592 = vmatprep.subr.bf16.mxu0 %v5805_v62  ;;  %633 = vmatprep.subr.bf16.mxu1 %v5810_v63 }
  0x35   :  { %306 = vmatprep.mubr.bf16.mxu0 %v7879_v1  ;;  %379 = vmatprep.mubr.bf16.mxu1 %v7879_v1 }
  0x37   :  { %593 = vmatpush1.bf16.msra.mxu0 %v5815_v0  ;;  %634 = vmatpush1.bf16.msra.mxu1 %v5822_v2 }
  0x38   :  { %594 = vmatprep.subr.bf16.mxu0 %v5835_v5  ;;  %635 = vmatprep.subr.bf16.mxu1 %v5840_v6 }
  0x3a   :  { %307 = vmatmul.mubr.bf16.gmra.mrb[12].mxu0 %v29_v7  ;;  %380 = vmatmul.mubr.bf16.gmra.mrb[12].mxu1 %v29_v7 }
  0x3b   :  { %595 = vmatpush1.bf16.msra.mxu0 %v5849_v8  ;;  %636 = vmatpush1.bf16.msra.mxu1 %v5854_v9 }
  0x3c   :  { %596 = vmatprep.subr.bf16.mxu0 %v5861_v10  ;;  %637 = vmatprep.subr.bf16.mxu1 %v5866_v11 }
  0x3d   :  { %614 = vmatprep.mubr.bf16.mxu0 %v7879_v1  ;;  %655 = vmatprep.mubr.bf16.mxu1 %v7879_v1 }
  0x3f   :  { %597 = vmatpush1.bf16.msra.mxu0 %v5873_v12  ;;  %638 = vmatpush1.bf16.msra.mxu1 %v5878_v13 }
  0x40   :  { %1007 = vmatprep.subr.bf16.mxu0 %v5671_v35  ;;  %1048 = vmatprep.subr.bf16.mxu1 %v5676_v36 }
  0x42   :  { %615 = vmatmul.mubr.bf16.vlgmr.msra.gmra.mrb[16].mxu0 %v7879_v1  ;;  %656 = vmatmul.mubr.bf16.vlgmr.msra.gmra.mrb[16].mxu1 %v7879_v1 }
  0x43   :  { %1008 = vmatpush1.bf16.msra.mxu0 %v5681_v38  ;;  %1049 = vmatpush1.bf16.msra.mxu1 %v5686_v39 }
  0x44   :  { %1009 = vmatprep.subr.bf16.mxu0 %v5693_v40  ;;  %1050 = vmatprep.subr.bf16.mxu1 %v5698_v41  ;;  %v66_v40 = vsub.s32 0, %v65_v37  ;;  %v62_v41 = vld [vmem:[%s7877_s3] sm:$0xf] }
  0x45   :  { %1039 = vmatprep.mubr.bf16.mxu0 %v7879_v1  ;;  %1080 = vmatprep.mubr.bf16.mxu1 %v7879_v1 }
  0x47   :  { %1010 = vmatpush1.bf16.msra.mxu0 %v5703_v42  ;;  %1051 = vmatpush1.bf16.msra.mxu1 %v5708_v43 }
  0x48   :  { %1011 = vmatprep.subr.bf16.mxu0 %v5721_v46  ;;  %1052 = vmatprep.subr.bf16.mxu1 %v5728_v47  ;;  %v70_v46 = vsub.s32 1, %v65_v37  ;;  %v74_v47 = vsub.s32 2, %v65_v37 }
  0x4b   :  { %1012 = vmatpush1.bf16.msra.mxu0 %v5735_v49  ;;  %1053 = vmatpush1.bf16.msra.mxu1 %v5740_v50  ;;  %v67_v50 = vrot.slane %v62_v41, %v66_v40 }
  0x4c   :  { %1013 = vmatprep.subr.bf16.mxu0 %v5747_v51  ;;  %1054 = vmatprep.subr.bf16.mxu1 %v5754_v52 }
  0x4f   :  { %1014 = vmatpush1.bf16.msra.mxu0 %v5759_v53  ;;  %1055 = vmatpush1.bf16.msra.mxu1 %v5764_v54  ;;  %v5975_v53 = vrot.slane %v62_v41, %v70_v46  ;;  %v5977_v54 = vrot.slane %v62_v41, %v74_v47 }
  0x50   :  { %1015 = vmatprep.subr.bf16.mxu0 %v5779_v57  ;;  %1056 = vmatprep.subr.bf16.mxu1 %v5784_v58 }
  0x53   :  { %1016 = vmatpush1.bf16.msra.mxu0 %v5793_v60  ;;  %1057 = vmatpush1.bf16.msra.mxu1 %v5798_v61 }
  0x54   :  { %1017 = vmatprep.subr.bf16.mxu0 %v5805_v62  ;;  %1058 = vmatprep.subr.bf16.mxu1 %v5810_v63 }
  0x57   :  { %1018 = vmatpush1.bf16.msra.mxu0 %v5815_v0  ;;  %1059 = vmatpush1.bf16.msra.mxu1 %v5822_v2 }
  0x58   :  { %1019 = vmatprep.subr.bf16.mxu0 %v5835_v5  ;;  %1060 = vmatprep.subr.bf16.mxu1 %v5840_v6 }
  0x5b   :  { %1020 = vmatpush1.bf16.msra.mxu0 %v5849_v8  ;;  %1061 = vmatpush1.bf16.msra.mxu1 %v5854_v9 }
  0x5c   :  { %1021 = vmatprep.subr.bf16.mxu0 %v5861_v10  ;;  %1062 = vmatprep.subr.bf16.mxu1 %v5866_v11 }
  0x5f   :  { %1022 = vmatpush1.bf16.msra.mxu0 %v5873_v12  ;;  %1063 = vmatpush1.bf16.msra.mxu1 %v5878_v13 }
  0x60   :  { %1449 = vmatprep.subr.bf16.mxu0 %v5671_v35  ;;  %1490 = vmatprep.subr.bf16.mxu1 %v5676_v36 }
  0xf5   :  { %v278_v14 = vpop.f32.mrb[0].mxu0  ;;  %v5924_v15 = vpop.f32.mrb[0].mxu1 }
  0xf6   :  { %v5926_v16 = vpop.f32.mrb[1].mxu0  ;;  %v5928_v17 = vpop.f32.mrb[1].mxu1  ;;  %v5979_v56 = vadd.f32 %v278_v14, %v67_v50 }
  0xf7   :  { %v282_v18 = vpop.f32.mrb[2].mxu0  ;;  %v5930_v19 = vpop.f32.mrb[2].mxu1 }
  0xf8   :  { %v5932_v20 = vpop.f32.mrb[3].mxu0  ;;  %v5934_v21 = vpop.f32.mrb[3].mxu1  ;;  %7986 = vst [vmem:[#allocation14_spill] sm:$0xff] %v5979_v56  ;;  %v5981_v59 = vadd.f32 %v282_v18, %v67_v50 }
  0xfa   :  { %7987 = vst [vmem:[#allocation15_spill] sm:$0xff] %v5981_v59 }
  0xfd   :  { %v288_v22 = vpop.f32.mrb[4].mxu0  ;;  %v5936_v23 = vpop.f32.mrb[4].mxu1 }
  0xfe   :  { %v5938_v24 = vpop.f32.mrb[5].mxu0  ;;  %v5940_v25 = vpop.f32.mrb[5].mxu1  ;;  %v5983_v3 = vadd.f32 %v288_v22, %v67_v50 }
  0xff   :  { %v292_v26 = vpop.f32.mrb[6].mxu0  ;;  %v5942_v27 = vpop.f32.mrb[6].mxu1 }
 0x100   :  { %v5944_v28 = vpop.f32.mrb[7].mxu0  ;;  %v5946_v29 = vpop.f32.mrb[7].mxu1  ;;  %7988 = vst [vmem:[#allocation16_spill] sm:$0xff] %v5983_v3  ;;  %v5985_v4 = vadd.f32 %v292_v26, %v67_v50 }
 0x102   :  { %7989 = vst [vmem:[#allocation17_spill] sm:$0xff] %v5985_v4 }
 0x105   :  { %v298_v31 = vpop.f32.mrb[8].mxu0  ;;  %v5948_v32 = vpop.f32.mrb[8].mxu1 }
 0x106   :  { %v5950_v33 = vpop.f32.mrb[9].mxu0  ;;  %v5952_v34 = vpop.f32.mrb[9].mxu1  ;;  %v5987_v7 = vadd.f32 %v298_v31, %v67_v50 }
 0x107   :  { %v302_v35 = vpop.f32.mrb[10].mxu0  ;;  %v5954_v36 = vpop.f32.mrb[10].mxu1 }
 0x108   :  { %v5956_v38 = vpop.f32.mrb[11].mxu0  ;;  %v5958_v39 = vpop.f32.mrb[11].mxu1  ;;  %7990 = vst [vmem:[#allocation18_spill] sm:$0xff] %v5987_v7  ;;  %v5989_v30 = vadd.f32 %v302_v35, %v67_v50 }
 0x10a   :  { %7991 = vst [vmem:[#allocation19_spill] sm:$0xff] %v5989_v30 }
 0x10d   :  { %v308_v42 = vpop.f32.mrb[12].mxu0  ;;  %v5963_v43 = vpop.f32.mrb[12].mxu1 }
 0x10e   :  { %v5965_v44 = vpop.f32.mrb[13].mxu0  ;;  %v5967_v45 = vpop.f32.mrb[13].mxu1  ;;  %v5991_v40 = vadd.f32 %v308_v42, %v67_v50 }
 0x10f   :  { %v312_v48 = vpop.f32.mrb[14].mxu0  ;;  %v5969_v49 = vpop.f32.mrb[14].mxu1 }
 0x110   :  { %v5971_v51 = vpop.f32.mrb[15].mxu0  ;;  %v5973_v52 = vpop.f32.mrb[15].mxu1  ;;  %7992 = vst [vmem:[#allocation20_spill] sm:$0xff] %v5991_v40  ;;  %v5993_v1 = vadd.f32 %v312_v48, %v67_v50 }
 0x112   :  { %7993 = vst [vmem:[#allocation21_spill] sm:$0xff] %v5993_v1 }
 0x115   :  { %v616_v46 = vpop.f32.mrb[16].mxu0  ;;  %v5995_v47 = vpop.f32.mrb[16].mxu1 }
 0x116   :  { %v668_v37 = vrot.slane %v616_v46, 1  ;;  %v672_v14 = vrot.slane %v616_v46, 2  ;;  %v676_v13 = vrot.slane %v616_v46, 3  ;;  %v680_v18 = vrot.slane %v616_v46, 4  ;;  %v5997_v12 = vpop.f32.mrb[17].mxu0  ;;  %v5999_v22 = vpop.f32.mrb[17].mxu1 }
 0x117   :  { %v684_v26 = vrot.slane %v616_v46, 5  ;;  %v688_v31 = vrot.slane %v616_v46, 6  ;;  %v692_v11 = vrot.slane %v616_v46, 7  ;;  %v728_v35 = vadd.f32 %v616_v46, %v5979_v56  ;;  %v620_v42 = vpop.f32.mrb[18].mxu0  ;;  %v661_v10 = vpop.f32.mrb[18].mxu1 }
 0x118   :  { %v732_v48 = vadd.f32 %v668_v37, %v5981_v59  ;;  %v736_v50 = vadd.f32 %v672_v14, %v5983_v3  ;;  %v740_v9 = vadd.f32 %v676_v13, %v5985_v4  ;;  %v744_v8 = vadd.f32 %v680_v18, %v5987_v7  ;;  %v621_v6 = vpop.f32.mrb[19].mxu0  ;;  %v662_v5 = vpop.f32.mrb[19].mxu1 }
 0x119   :  { %v748_v2 = vadd.f32 %v684_v26, %v5989_v30  ;;  %v752_v0 = vadd.f32 %v688_v31, %v5991_v40  ;;  %v4129_v63 = vmul.f32 -1.442695, %v728_v35  ;;  %v756_v62 = vadd.f32 %v692_v11, %v5993_v1 }
 0x11a   :  { %v4130_v46 = vmul.f32 -1.442695, %v732_v48  ;;  %v4131_v42 = vmul.f32 -1.442695, %v736_v50  ;;  %v4132_v10 = vmul.f32 -1.442695, %v740_v9  ;;  %v6011_v37 = vadd.f32 %v5924_v15, %v5977_v54 }
 0x11b   :  { %v6013_v14 = vrot.slane %v62_v41, %v78_v55  ;;  %4418 = vpow2.f32 %v4129_v63  ;;  %v4133_v13 = vmul.f32 -1.442695, %v744_v8  ;;  %v6017_v5 = vadd.f32 %v5926_v16, %v5975_v53 }
 0x11c   :  { %7994 = vst [vmem:[#allocation22_spill] sm:$0xff] %v6011_v37  ;;  %4420 = vpow2.f32 %v4130_v46  ;;  %v4134_v6 = vmul.f32 -1.442695, %v748_v2  ;;  %v670_v18 = vrot.slane %v5995_v47, 1  ;;  %v6022_v11 = vadd.f32 %v5930_v19, %v5977_v54 }
 0x11d   :  { %7995 = vst [vmem:[#allocation23_spill] sm:$0xff] %v6017_v5  ;;  %4422 = vpow2.f32 %v4131_v42  ;;  %v4135_v9 = vmul.f32 -1.442695, %v752_v0  ;;  %v674_v15 = vrot.slane %v5995_v47, 2  ;;  %v6027_v63 = vadd.f32 %v5936_v23, %v5977_v54 }
 0x11e   :  { %7996 = vst [vmem:[#allocation24_spill] sm:$0xff] %v6022_v11  ;;  %4424 = vpow2.f32 %v4132_v10  ;;  %v4136_v8 = vmul.f32 -1.442695, %v756_v62  ;;  %v678_v16 = vrot.slane %v5995_v47, 3  ;;  %v6032_v2 = vadd.f32 %v5948_v32, %v5977_v54 }
 0x11f   :  { %7997 = vst [vmem:[#allocation25_spill] sm:$0xff] %v6027_v63  ;;  %4426 = vpow2.f32 %v4133_v13  ;;  %v682_v19 = vrot.slane %v5995_v47, 4  ;;  %v730_v0 = vadd.f32 %v5995_v47, %v6011_v37  ;;  %v6039_v41 = vadd.f32 %v5928_v17, %v6013_v14 }
 0x120   :  { %7998 = vst [vmem:[#allocation26_spill] sm:$0xff] %v6032_v2  ;;  %v6043_v23 = vadd.f32 %v5942_v27, %v5977_v54  ;;  %4428 = vpow2.f32 %v4134_v6  ;;  %v734_v62 = vadd.f32 %v670_v18, %v6022_v11  ;;  %v6048_v32 = vadd.f32 %v5932_v20, %v5975_v53 }
 0x121   :  { %7999 = vst [vmem:[#allocation27_spill] sm:$0xff] %v6039_v41  ;;  %v6052_v55 = vadd.f32 %v5934_v21, %v6013_v14  ;;  %4430 = vpow2.f32 %v4135_v9  ;;  %v738_v26 = vadd.f32 %v674_v15, %v6027_v63  ;;  %v6057_v17 = vadd.f32 %v5938_v24, %v5975_v53 }
 0x122   :  { %8000 = vst [vmem:[#allocation28_spill] sm:$0xff] %v6043_v23  ;;  %8001 = vst [vmem:[#allocation29_spill] sm:$0xff] %v6048_v32  ;;  %v6061_v27 = vadd.f32 %v5940_v25, %v6013_v14  ;;  %4432 = vpow2.f32 %v4136_v8  ;;  %v742_v31 = vadd.f32 %v678_v16, %v6043_v23  ;;  %v6066_v20 = vadd.f32 %v5944_v28, %v5975_v53 }
 0x123   :  { %8002 = vst [vmem:[#allocation30_spill] sm:$0xff] %v6052_v55  ;;  %8003 = vst [vmem:[#allocation31_spill] sm:$0xff] %v6057_v17  ;;  %v6070_v21 = vadd.f32 %v5946_v29, %v6013_v14  ;;  %v746_v35 = vadd.f32 %v682_v19, %v6032_v2  ;;  %4434 = vtanh.f32 %v730_v0  ;;  %v6075_v24 = vadd.f32 %v5950_v33, %v5975_v53 }
 0x124   :  { %8004 = vst [vmem:[#allocation32_spill] sm:$0xff] %v6061_v27  ;;  %8005 = vst [vmem:[#allocation33_spill] sm:$0xff] %v6066_v20  ;;  %v6079_v25 = vadd.f32 %v5954_v36, %v5977_v54  ;;  %v686_v48 = vrot.slane %v5995_v47, 5  ;;  %4436 = vtanh.f32 %v734_v62  ;;  %v6084_v50 = vadd.f32 %v5952_v34, %v6013_v14 }
 0x125   :  { %8006 = vst [vmem:[#allocation34_spill] sm:$0xff] %v6075_v24  ;;  %v4419_v28 = vpop.eup %4418  ;;  %v6088_v29 = vadd.f32 %v5963_v43, %v5977_v54  ;;  %v690_v46 = vrot.slane %v5995_v47, 6  ;;  %4438 = vtanh.f32 %v738_v26  ;;  %v6093_v36 = vadd.f32 %v5956_v38, %v5975_v53 }
 0x126   :  { %8007 = vst [vmem:[#allocation35_spill] sm:$0xff] %v6079_v25  ;;  %v4421_v33 = vpop.eup %4420  ;;  %v6097_v42 = vadd.f32 %v5965_v44, %v5975_v53  ;;  %v784_v10 = vadd.f32 1.0, %v4419_v28  ;;  %4440 = vtanh.f32 %v742_v31  ;;  %v6101_v13 = vadd.f32 %v5969_v49, %v5977_v54 }
 0x127   :  { %8008 = vst [vmem:[#allocation36_spill] sm:$0xff] %v6088_v29  ;;  %8009 = vst [vmem:[#allocation37_spill] sm:$0xff] %v6093_v36  ;;  %v4423_v34 = vpop.eup %4422  ;;  %v785_v43 = vadd.f32 1.0, %v4421_v33  ;;  %v694_v6 = vrot.slane %v5995_v47, 7  ;;  %4442 = vtanh.f32 %v746_v35  ;;  %v750_v38 = vadd.f32 %v686_v48, %v6079_v25 }
 0x128   :  { %8010 = vst [vmem:[#allocation38_spill] sm:$0xff] %v6097_v42  ;;  %8011 = vst [vmem:[#allocation39_spill] sm:$0xff] %v6101_v13  ;;  %v4425_v18 = vpop.eup %4424  ;;  %v786_v9 = vadd.f32 1.0, %v4423_v34  ;;  %4444 = vrcp.f32 %v784_v10  ;;  %v669_v15 = vrot.slane %v5997_v12, 1  ;;  %v754_v16 = vadd.f32 %v690_v46, %v6088_v29 }
 0x129   :  { %v4427_v44 = vpop.eup %4426  ;;  %v787_v8 = vadd.f32 1.0, %v4425_v18  ;;  %4446 = vrcp.f32 %v785_v43  ;;  %v673_v19 = vrot.slane %v5997_v12, 2  ;;  %v677_v47 = vrot.slane %v5997_v12, 3 }
 0x12a   :  { %v4429_v49 = vpop.eup %4428  ;;  %v788_v54 = vadd.f32 1.0, %v4427_v44  ;;  %4448 = vrcp.f32 %v786_v9  ;;  %v681_v0 = vrot.slane %v5997_v12, 4  ;;  %v685_v31 = vrot.slane %v5997_v12, 5 }
 0x12b   :  { %v4431_v62 = vpop.eup %4430  ;;  %v789_v26 = vadd.f32 1.0, %v4429_v49  ;;  %4450 = vrcp.f32 %v787_v8  ;;  %v729_v35 = vadd.f32 %v5997_v12, %v6017_v5  ;;  %v689_v46 = vrot.slane %v5997_v12, 6 }
 0x12c   :  { %v4433_v48 = vpop.eup %4432  ;;  %v790_v28 = vadd.f32 1.0, %v4431_v62  ;;  %4452 = vrcp.f32 %v788_v54  ;;  %v733_v33 = vadd.f32 %v669_v15, %v6048_v32  ;;  %v693_v43 = vrot.slane %v5997_v12, 7 }
 0x12d   :  { %v4435_v10 = vpop.eup %4434  ;;  %v791_v34 = vadd.f32 1.0, %v4433_v48  ;;  %4454 = vrcp.f32 %v789_v26  ;;  %v737_v18 = vadd.f32 %v673_v19, %v6057_v17  ;;  %v758_v44 = vadd.f32 %v694_v6, %v6101_v13 }
 0x12e   :  { %v4437_v9 = vpop.eup %4436  ;;  %4456 = vrcp.f32 %v790_v28  ;;  %v741_v8 = vadd.f32 %v677_v47, %v6066_v20  ;;  %v745_v49 = vadd.f32 %v681_v0, %v6075_v24  ;;  %v6122_v62 = vadd.f32 %v5971_v51, %v5975_v53 }
 0x12f   :  { %v4439_v54 = vpop.eup %4438  ;;  %4458 = vrcp.f32 %v791_v34  ;;  %v749_v15 = vadd.f32 %v685_v31, %v6093_v36  ;;  %v4137_v26 = vmul.f32 -1.442695, %v729_v35  ;;  %v753_v19 = vadd.f32 %v689_v46, %v6097_v42 }
 0x130   :  { %8012 = vst [vmem:[#allocation40_spill] sm:$0xff] %v6122_v62  ;;  %v4441_v12 = vpop.eup %4440  ;;  %4460 = vtanh.f32 %v750_v38  ;;  %v4138_v48 = vmul.f32 -1.442695, %v733_v33  ;;  %v671_v6 = vrot.slane %v5999_v22, 1  ;;  %v757_v47 = vadd.f32 %v693_v43, %v6122_v62 }
 0x131   :  { %v4443_v28 = vpop.eup %4442  ;;  %4462 = vtanh.f32 %v754_v16  ;;  %v4139_v0 = vmul.f32 -1.442695, %v737_v18  ;;  %v675_v24 = vrot.slane %v5999_v22, 2  ;;  %v4140_v53 = vmul.f32 -1.442695, %v741_v8 }
 0x132   :  { %v4445_v51 = vpop.eup %4444  ;;  %4464 = vtanh.f32 %v758_v44  ;;  %v4141_v34 = vmul.f32 -1.442695, %v745_v49  ;;  %v679_v31 = vrot.slane %v5999_v22, 3  ;;  %v683_v46 = vrot.slane %v5999_v22, 4 }
 0x133   :  { %v4447_v35 = vpop.eup %4446  ;;  %4466 = vpow2.f32 %v4137_v26  ;;  %v6130_v38 = vmul.f32 %v4445_v51, %v4435_v10  ;;  %v731_v16 = vadd.f32 %v5999_v22, %v6039_v41  ;;  %v4142_v43 = vmul.f32 -1.442695, %v749_v15 }
 0x134   :  { %v4449_v33 = vpop.eup %4448  ;;  %4468 = vpow2.f32 %v4138_v48  ;;  %v6135_v18 = vmul.f32 %v4447_v35, %v4437_v9  ;;  %v735_v44 = vadd.f32 %v671_v6, %v6052_v55  ;;  %v4143_v49 = vmul.f32 -1.442695, %v753_v19 }
 0x135   :  { %v4451_v8 = vpop.eup %4450  ;;  %4470 = vpow2.f32 %v4139_v0  ;;  %v6138_v62 = vmul.f32 %v4449_v33, %v4439_v54  ;;  %v739_v10 = vadd.f32 %v675_v24, %v6061_v27  ;;  %v4144_v51 = vmul.f32 -1.442695, %v757_v47 }
 0x136   :  { %v4453_v26 = vpop.eup %4452  ;;  %4472 = vpow2.f32 %v4140_v53  ;;  %v6141_v42 = vmul.f32 %v4451_v8, %v4441_v12  ;;  %v743_v41 = vadd.f32 %v679_v31, %v6070_v21  ;;  %v747_v15 = vadd.f32 %v683_v46, %v6084_v50 }
 0x137   :  { %v4455_v48 = vpop.eup %4454  ;;  %4474 = vpow2.f32 %v4141_v34  ;;  %v6144_v9 = vmul.f32 %v4453_v26, %v4443_v28  ;;  %v4145_v6 = vmul.f32 -1.442695, %v731_v16  ;;  %v4146_v54 = vmul.f32 -1.442695, %v735_v44 }
 0x138   :  { %v4457_v0 = vpop.eup %4456  ;;  %4476 = vpow2.f32 %v4142_v43  ;;  %v4147_v24 = vmul.f32 -1.442695, %v739_v10  ;;  %v4148_v47 = vmul.f32 -1.442695, %v743_v41  ;;  %v4149_v31 = vmul.f32 -1.442695, %v747_v15 }
 0x139   :  { %v4459_v19 = vpop.eup %4458  ;;  %4478 = vpow2.f32 %v4143_v49  ;;  %v6151_v28 = vadd.f32 %v5958_v39, %v6013_v14  ;;  %v687_v46 = vrot.slane %v5999_v22, 5  ;;  %v6158_v43 = vadd.f32 %v5967_v45, %v6013_v14 }
 0x13a   :  { %v4461_v35 = vpop.eup %4460  ;;  %4480 = vpow2.f32 %v4144_v51  ;;  %v691_v41 = vrot.slane %v5999_v22, 6  ;;  %v6165_v39 = vadd.f32 %v5973_v52, %v6013_v14  ;;  %v695_v10 = vrot.slane %v5999_v22, 7 }
 0x13b   :  { %v4463_v12 = vpop.eup %4462  ;;  %v6147_v53 = vmul.f32 %v4461_v35, %v4455_v48  ;;  %4482 = vpow2.f32 %v4145_v6  ;;  %v751_v15 = vadd.f32 %v687_v46, %v6151_v28 }
 0x13c   :  { %v4465_v34 = vpop.eup %4464  ;;  %4484 = vpow2.f32 %v4146_v54  ;;  %v6154_v16 = vmul.f32 %v4463_v12, %v4457_v0  ;;  %v755_v54 = vadd.f32 %v691_v41, %v6158_v43  ;;  %v759_v14 = vadd.f32 %v695_v10, %v6165_v39 }
 0x13d   :  { %v4467_v33 = vpop.eup %4466  ;;  %4486 = vpow2.f32 %v4147_v24  ;;  %v6161_v44 = vmul.f32 %v4465_v34, %v4459_v19  ;;  %v4150_v12 = vmul.f32 -1.442695, %v751_v15 }
 0x13e   :  { %v4469_v8 = vpop.eup %4468  ;;  %v832_v49 = vadd.f32 1.0, %v4467_v33  ;;  %4488 = vpow2.f32 %v4148_v47  ;;  %v4151_v46 = vmul.f32 -1.442695, %v755_v54 }
 0x13f   :  { %v4471_v26 = vpop.eup %4470  ;;  %v833_v51 = vadd.f32 1.0, %v4469_v8  ;;  %4490 = vpow2.f32 %v4149_v31  ;;  %v4152_v8 = vmul.f32 -1.442695, %v759_v14 }
 0x140   :  { %v4473_v48 = vpop.eup %4472  ;;  %v834_v45 = vadd.f32 1.0, %v4471_v26  ;;  %4492 = vrcp.f32 %v832_v49 }
 0x141   :  { %v4475_v6 = vpop.eup %4474  ;;  %v835_v0 = vadd.f32 1.0, %v4473_v48  ;;  %4494 = vrcp.f32 %v833_v51 }
 0x142   :  { %v4477_v19 = vpop.eup %4476  ;;  %v836_v52 = vadd.f32 1.0, %v4475_v6  ;;  %4496 = vrcp.f32 %v834_v45 }
 0x143   :  { %v4479_v22 = vpop.eup %4478  ;;  %v837_v24 = vadd.f32 1.0, %v4477_v19  ;;  %4498 = vrcp.f32 %v835_v0 }
 0x144   :  { %v4481_v35 = vpop.eup %4480  ;;  %v838_v47 = vadd.f32 1.0, %v4479_v22  ;;  %4500 = vrcp.f32 %v836_v52 }
 0x145   :  { %v4483_v31 = vpop.eup %4482  ;;  %v839_v34 = vadd.f32 1.0, %v4481_v35  ;;  %4502 = vrcp.f32 %v837_v24 }
 0x146   :  { %v4485_v33 = vpop.eup %4484  ;;  %4504 = vrcp.f32 %v838_v47  ;;  %v888_v49 = vadd.f32 1.0, %v4483_v31 }
 0x147   :  { %v4487_v41 = vpop.eup %4486  ;;  %4506 = vrcp.f32 %v839_v34  ;;  %v889_v10 = vadd.f32 1.0, %v4485_v33 }
 0x148   :  { %v4489_v26 = vpop.eup %4488  ;;  %4508 = vpow2.f32 %v4150_v12  ;;  %v890_v48 = vadd.f32 1.0, %v4487_v41 }
 0x149   :  { %v4491_v51 = vpop.eup %4490  ;;  %4510 = vpow2.f32 %v4151_v46  ;;  %v891_v6 = vadd.f32 1.0, %v4489_v26 }
 0x14a   :  { %v4493_v45 = vpop.eup %4492  ;;  %4512 = vpow2.f32 %v4152_v8 }
 0x14b   :  { %v4495_v15 = vpop.eup %4494  ;;  %v912_v0 = vmul.f32 0.0, %v4493_v45  ;;  %4514 = vrcp.f32 %v888_v49 }
 0x14c   :  { %v4497_v19 = vpop.eup %4496  ;;  %v913_v54 = vmul.f32 0.0, %v4495_v15  ;;  %4516 = vrcp.f32 %v889_v10 }
 0x14d   :  { %v4499_v52 = vpop.eup %4498  ;;  %v914_v14 = vmul.f32 0.0, %v4497_v19  ;;  %v6172_v22 = vadd.f32 %v6130_v38, %v912_v0  ;;  %4518 = vrcp.f32 %v890_v48  ;;  %v892_v38 = vadd.f32 1.0, %v4491_v51 }
 0x14e   :  { %v4501_v24 = vpop.eup %4500  ;;  %v915_v35 = vmul.f32 0.0, %v4499_v52  ;;  %v6175_v47 = vadd.f32 %v6135_v18, %v913_v54  ;;  %4520 = vrcp.f32 %v891_v6 }
 0x14f   :  { %v4503_v12 = vpop.eup %4502  ;;  %v916_v31 = vmul.f32 0.0, %v4501_v24  ;;  %v6178_v34 = vadd.f32 %v6138_v62, %v914_v14  ;;  %4522 = vtanh.f32 %v6172_v22 }
 0x150   :  { %v4505_v46 = vpop.eup %4504  ;;  %v917_v33 = vmul.f32 0.0, %v4503_v12  ;;  %v6182_v8 = vadd.f32 %v6141_v42, %v915_v35  ;;  %4524 = vtanh.f32 %v6175_v47 }
 0x151   :  { %v4507_v41 = vpop.eup %4506  ;;  %v918_v49 = vmul.f32 0.0, %v4505_v46  ;;  %v6186_v18 = vadd.f32 %v6144_v9, %v916_v31  ;;  %4526 = vtanh.f32 %v6178_v34 }
 0x152   :  { %v4509_v26 = vpop.eup %4508  ;;  %v919_v62 = vmul.f32 0.0, %v4507_v41  ;;  %v6190_v10 = vadd.f32 %v6147_v53, %v917_v33  ;;  %4528 = vtanh.f32 %v6182_v8 }
 0x153   :  { %v4511_v48 = vpop.eup %4510  ;;  %4530 = vtanh.f32 %v6186_v18  ;;  %v893_v42 = vadd.f32 1.0, %v4509_v26  ;;  %v6195_v51 = vadd.f32 %v6154_v16, %v918_v49 }
 0x154   :  { %v4513_v45 = vpop.eup %4512  ;;  %v894_v6 = vadd.f32 1.0, %v4511_v48  ;;  %4532 = vrcp.f32 %v892_v38  ;;  %v6198_v9 = vadd.f32 %v6161_v44, %v919_v62 }
 0x155   :  { %v4515_v15 = vpop.eup %4514  ;;  %v895_v0 = vadd.f32 1.0, %v4513_v45  ;;  %4534 = vrcp.f32 %v893_v42 }
 0x156   :  { %v4517_v53 = vpop.eup %4516  ;;  %4536 = vrcp.f32 %v894_v6 }
 0x157   :  { %v4519_v19 = vpop.eup %4518  ;;  %4538 = vrcp.f32 %v895_v0 }
 0x158   :  { %v4521_v54 = vpop.eup %4520  ;;  %4540 = vtanh.f32 %v6190_v10 }
 0x159   :  { %v4523_v52 = vpop.eup %4522  ;;  %4542 = vtanh.f32 %v6195_v51 }
 0x15a   :  { %v4525_v16 = vpop.eup %4524  ;;  %4544 = vtanh.f32 %v6198_v9  ;;  %v944_v14 = vmul.f32 %v4523_v52, %v4515_v15 }
 0x15b   :  { %v4527_v24 = vpop.eup %4526  ;;  %v945_v44 = vmul.f32 %v4525_v16, %v4517_v53 }
 0x15c   :  { %v4529_v35 = vpop.eup %4528  ;;  %v946_v12 = vmul.f32 %v4527_v24, %v4519_v19  ;;  %952 = vst [vmem:[%s7878_s4] sm:$0x1] %v944_v14  ;;  %v960_v33 = vpack.c.bf16 %v944_v14, %v944_v14 }
 0x15d   :  { %v4531_v31 = vpop.eup %4530  ;;  %v947_v46 = vmul.f32 %v4529_v35, %v4521_v54  ;;  %953 = vst [vmem:[%s7878_s4 + $0x8] sm:$0x1] %v945_v44  ;;  %v961_v38 = vpack.c.bf16 %v945_v44, %v945_v44 }
 0x15e   :  { %v4533_v41 = vpop.eup %4532  ;;  %954 = vst [vmem:[%s7878_s4 + $0x10] sm:$0x1] %v946_v12  ;;  %v962_v49 = vpack.c.bf16 %v946_v12, %v946_v12  ;;  %v976_v53 = vunpack.c.l.b16 %v960_v33 }
 0x15f   :  { %v4535_v26 = vpop.eup %4534  ;;  %v948_v62 = vmul.f32 %v4533_v41, %v4531_v31  ;;  %955 = vst [vmem:[%s7878_s4 + $0x18] sm:$0x1] %v947_v46  ;;  %v963_v48 = vpack.c.bf16 %v947_v46, %v947_v46  ;;  %v977_v42 = vunpack.c.l.b16 %v961_v38 }
 0x160   :  { %v4537_v45 = vpop.eup %4536  ;;  %v978_v6 = vunpack.c.l.b16 %v962_v49 }
 0x161   :  { %v4539_v15 = vpop.eup %4538  ;;  %956 = vst [vmem:[%s7878_s4 + $0x20] sm:$0x1] %v948_v62  ;;  %v964_v0 = vpack.c.bf16 %v948_v62, %v948_v62  ;;  %v979_v19 = vunpack.c.l.b16 %v963_v48  ;;  %v984_v54 = vrot.slane %v977_v42, 7 }
 0x162   :  { %v4541_v52 = vpop.eup %4540  ;;  %v987_v16 = vrot.slane %v978_v6, 6 }
 0x163   :  { %v4543_v14 = vpop.eup %4542  ;;  %v949_v24 = vmul.f32 %v4541_v52, %v4535_v26  ;;  %v980_v44 = vunpack.c.l.b16 %v964_v0  ;;  %v986_v35 = vsel %vm985_vm0, %v984_v54, %v976_v53  ;;  %v990_v12 = vrot.slane %v979_v19, 5 }
 0x164   :  { %v4545_v31 = vpop.eup %4544  ;;  %v950_v46 = vmul.f32 %v4543_v14, %v4537_v45  ;;  %v989_v38 = vsel %vm988_vm1, %v987_v16, %v986_v35  ;;  %v6249_v35 = vld [vmem:[%s7875_s2 + $0x24] ss:$16 sps:$4 sm:$0xff]  }
 0x165   :  { %v951_v41 = vmul.f32 %v4545_v31, %v4539_v15  ;;  %957 = vst [vmem:[%s7878_s4 + $0x28] sm:$0x1] %v949_v24  ;;  %v965_v33 = vpack.c.bf16 %v949_v24, %v949_v24  ;;  %v992_v49 = vsel %vm991_vm2, %v990_v12, %v989_v38  ;;  %v993_v62 = vrot.slane %v980_v44, 4  ;;  %v6237_v24 = vld [vmem:[%s7875_s2] ss:$16 sps:$4 sm:$0xff]  }
 0x166   :  { %958 = vst [vmem:[%s7878_s4 + $0x30] sm:$0x1] %v950_v46  ;;  %v966_v26 = vpack.c.bf16 %v950_v46, %v950_v46  ;;  %v6243_v44 = vld [vmem:[%s7875_s2 + $0x8] ss:$16 sps:$4 sm:$0xff]   ;;  %v6255_v12 = vld [vmem:[%s7875_s2 + $0x2c] ss:$16 sps:$4 sm:$0xff]  }
 0x167   :  { %959 = vst [vmem:[%s7878_s4 + $0x38] sm:$0x1] %v951_v41  ;;  %v967_v48 = vpack.c.bf16 %v951_v41, %v951_v41  ;;  %v981_v42 = vunpack.c.l.b16 %v965_v33  ;;  %v995_v45 = vsel %vm994_vm3, %v993_v62, %v992_v49  ;;  %v8013_v31 = vmov 0   ;;  %v6263_v46 = vld [vmem:[%s7875_s2 + $0x20] ss:$16 sps:$4 sm:$0xff]  }
 0x168   :  { %v982_v6 = vunpack.c.l.b16 %v966_v26  ;;  %8014 = vst [vmem:[#allocation41_spill] sm:$0xff] %v6263_v46  ;;  %v6269_v38 = vld [vmem:[%s7875_s2 + $0x28] ss:$16 sps:$4 sm:$0xff]   ;;  %v6275_v41 = vld [vmem:[%s7875_s2 + $0x44] ss:$16 sps:$4 sm:$0xff]  }
 0x169   :  { %v983_v15 = vunpack.c.l.b16 %v967_v48  ;;  %v996_v0 = vrot.slane %v981_v42, 3  ;;  %8015 = vst [vmem:[#allocation42_spill] sm:$0xff] %v6269_v38  ;;  %8016 = vst [vmem:[#allocation43_spill] sm:$0xff] %v6275_v41  ;;  %v6281_v33 = vld [vmem:[%s7875_s2 + $0x4c] ss:$16 sps:$4 sm:$0xff]  }
 0x16a   :  { %v999_v53 = vrot.slane %v982_v6, 2  ;;  %8017 = vst [vmem:[#allocation44_spill] sm:$0xff] %v6281_v33  ;;  %v6287_v49 = vld [vmem:[%s7875_s2 + $0x40] ss:$16 sps:$4 sm:$0xff]   ;;  %v6293_v62 = vld [vmem:[%s7875_s2 + $0x48] ss:$16 sps:$4 sm:$0xff]  }
 0x16b   :  { %v998_v19 = vsel %vm997_vm4, %v996_v0, %v995_v45  ;;  %v1002_v54 = vrot.slane %v983_v15, 1  ;;  %8018 = vst [vmem:[#allocation45_spill] sm:$0xff] %v6287_v49  ;;  %8019 = vst [vmem:[#allocation46_spill] sm:$0xff] %v6293_v62  ;;  %v6299_v26 = vld [vmem:[%s7875_s2 + $0x64] ss:$16 sps:$4 sm:$0xff]   ;;  %v8025_v15 = vld [vmem:[#allocation3_spill] sm:$0xff] }
 0x16c   :  { %v1001_v52 = vsel %vm1000_vm5, %v999_v53, %v998_v19  ;;  %8020 = vst [vmem:[#allocation47_spill] sm:$0xff] %v6299_v26  ;;  %v6305_v48 = vld [vmem:[%s7875_s2 + $0x6c] ss:$16 sps:$4 sm:$0xff]   ;;  %v6311_v42 = vld [vmem:[%s7875_s2 + $0x60] ss:$16 sps:$4 sm:$0xff]  }
 0x16d   :  { %v1004_v16 = vsel %vm1003_vm6, %v1002_v54, %v1001_v52  ;;  %8021 = vst [vmem:[#allocation48_spill] sm:$0xff] %v6305_v48  ;;  %8022 = vst [vmem:[#allocation49_spill] sm:$0xff] %v6311_v42  ;;  %v6317_v45 = vld [vmem:[%s7875_s2 + $0x68] ss:$16 sps:$4 sm:$0xff]   ;;  %v8024_v6 = vld [vmem:[#allocation2_spill] sm:$0xff] }
 0x16e   :  { %v1005_v14 = vpack.c.b16 %v1004_v16, %v1004_v16  ;;  %8023 = vst [vmem:[#allocation50_spill] sm:$0xff] %v6317_v45  ;;  %v8026_v0 = vld [vmem:[#allocation4_spill] sm:$0xff]  ;;  %v8027_v53 = vld [vmem:[#allocation5_spill] sm:$0xff]  ;;  %v8028_v19 = vld [vmem:[#allocation6_spill] sm:$0xff] }
 0x16f   :  { %v8029_v54 = vld [vmem:[#allocation7_spill] sm:$0xff]  ;;  %v8030_v52 = vld [vmem:[#allocation8_spill] sm:$0xff]  ;;  %v8035_v16 = vld [vmem:[#allocation13_spill] sm:$0xff] }
 0x170   :  { %1040 = vmatmul.mubr.bf16.vlgmr.msra.gmra.mrb[20].mxu0 %v1005_v14  ;;  %1081 = vmatmul.mubr.bf16.vlgmr.msra.gmra.mrb[20].mxu1 %v1005_v14  ;;  %v6339_v14 = vld [vmem:[%s7875_s2 + $0x4] ss:$16 sps:$4 sm:$0xff]  }
 0x171   :  { %1450 = vmatpush1.bf16.msra.mxu0 %v6237_v24  ;;  %1491 = vmatpush1.bf16.msra.mxu1 %v6243_v44  ;;  %8036 = vst [vmem:[#allocation2_spill] sm:$0xff] %v6339_v14 }
 0x172   :  { %1451 = vmatprep.subr.bf16.mxu0 %v6249_v35  ;;  %1492 = vmatprep.subr.bf16.mxu1 %v6255_v12 }
 0x173   :  { %1481 = vmatprep.mubr.bf16.mxu0 %v8013_v31  ;;  %1522 = vmatprep.mubr.bf16.mxu1 %v8013_v31 }
 0x175   :  { %1452 = vmatpush1.bf16.msra.mxu0 %v6263_v46  ;;  %1493 = vmatpush1.bf16.msra.mxu1 %v6269_v38 }
 0x176   :  { %1453 = vmatprep.subr.bf16.mxu0 %v6275_v41  ;;  %1494 = vmatprep.subr.bf16.mxu1 %v6281_v33 }
 0x179   :  { %1454 = vmatpush1.bf16.msra.mxu0 %v6287_v49  ;;  %1495 = vmatpush1.bf16.msra.mxu1 %v6293_v62 }
 0x17a   :  { %1455 = vmatprep.subr.bf16.mxu0 %v6299_v26  ;;  %1496 = vmatprep.subr.bf16.mxu1 %v6305_v48 }
 0x17d   :  { %1456 = vmatpush1.bf16.msra.mxu0 %v6311_v42  ;;  %1497 = vmatpush1.bf16.msra.mxu1 %v6317_v45 }
 0x17e   :  { %1457 = vmatprep.subr.bf16.mxu0 %v5779_v57  ;;  %1498 = vmatprep.subr.bf16.mxu1 %v5784_v58  ;;  %v8031_v57 = vld [vmem:[#allocation9_spill] sm:$0xff]  ;;  %v8032_v58 = vld [vmem:[#allocation10_spill] sm:$0xff] }
 0x181   :  { %1458 = vmatpush1.bf16.msra.mxu0 %v5793_v60  ;;  %1499 = vmatpush1.bf16.msra.mxu1 %v5798_v61  ;;  %v8033_v60 = vld [vmem:[#allocation11_spill] sm:$0xff]  ;;  %v8034_v61 = vld [vmem:[#allocation12_spill] sm:$0xff] }
 0x182   :  { %1459 = vmatprep.subr.bf16.mxu0 %v8024_v6  ;;  %1500 = vmatprep.subr.bf16.mxu1 %v8025_v15  ;;  %v6345_v6 = vld [vmem:[%s7875_s2 + $0xc] ss:$16 sps:$4 sm:$0xff]  }
 0x183   :  { %8037 = vst [vmem:[#allocation3_spill] sm:$0xff] %v6345_v6 }
 0x185   :  { %1460 = vmatpush1.bf16.msra.mxu0 %v8026_v0  ;;  %1501 = vmatpush1.bf16.msra.mxu1 %v8027_v53 }
 0x186   :  { %1461 = vmatprep.subr.bf16.mxu0 %v8028_v19  ;;  %1502 = vmatprep.subr.bf16.mxu1 %v8029_v54 }
 0x189   :  { %1462 = vmatpush1.bf16.msra.mxu0 %v8030_v52  ;;  %1503 = vmatpush1.bf16.msra.mxu1 %v8031_v57 }
 0x18a   :  { %1463 = vmatprep.subr.bf16.mxu0 %v8032_v58  ;;  %1504 = vmatprep.subr.bf16.mxu1 %v8033_v60 }
 0x18d   :  { %1464 = vmatpush1.bf16.msra.mxu0 %v8034_v61  ;;  %1505 = vmatpush1.bf16.msra.mxu1 %v8035_v16 }
 0x18e   :  { %1891 = vmatprep.subr.bf16.mxu0 %v6339_v14  ;;  %1932 = vmatprep.subr.bf16.mxu1 %v6345_v6 }
 0x243   :  { %v1041_v15 = vpop.f32.mrb[20].mxu0  ;;  %v6348_v0 = vpop.f32.mrb[20].mxu1 }
 0x244   :  { %v1093_v53 = vrot.slane %v1041_v15, 7  ;;  %v1097_v19 = vrot.slane %v1041_v15, 1  ;;  %v1101_v54 = vrot.slane %v1041_v15, 2  ;;  %v1105_v52 = vrot.slane %v1041_v15, 3  ;;  %v6350_v57 = vpop.f32.mrb[21].mxu0  ;;  %v6352_v58 = vpop.f32.mrb[21].mxu1 }
 0x245   :  { %v1109_v60 = vrot.slane %v1041_v15, 4  ;;  %v1113_v61 = vrot.slane %v1041_v15, 5  ;;  %v1117_v16 = vrot.slane %v1041_v15, 6  ;;  %v1157_v14 = vadd.f32 %v1041_v15, %v5981_v59  ;;  %v1045_v45 = vpop.f32.mrb[22].mxu0  ;;  %v1086_v42 = vpop.f32.mrb[22].mxu1 }
 0x246   :  { %v1153_v6 = vadd.f32 %v1093_v53, %v5979_v56  ;;  %v1161_v48 = vadd.f32 %v1097_v19, %v5983_v3  ;;  %v1165_v26 = vadd.f32 %v1101_v54, %v5985_v4  ;;  %v1169_v62 = vadd.f32 %v1105_v52, %v5987_v7  ;;  %v1046_v49 = vpop.f32.mrb[23].mxu0  ;;  %v1087_v33 = vpop.f32.mrb[23].mxu1 }
 0x247   :  { %v1173_v41 = vadd.f32 %v1109_v60, %v5989_v30  ;;  %v1177_v38 = vadd.f32 %v1113_v61, %v5991_v40  ;;  %v4154_v46 = vmul.f32 -1.442695, %v1157_v14  ;;  %v1181_v31 = vadd.f32 %v1117_v16, %v5993_v1 }
 0x248   :  { %v4153_v15 = vmul.f32 -1.442695, %v1153_v6  ;;  %v4155_v45 = vmul.f32 -1.442695, %v1161_v48  ;;  %v4156_v42 = vmul.f32 -1.442695, %v1165_v26 }
 0x249   :  { %4546 = vpow2.f32 %v4154_v46  ;;  %v4157_v53 = vmul.f32 -1.442695, %v1169_v62  ;;  %v4158_v19 = vmul.f32 -1.442695, %v1173_v41  ;;  %v1095_v54 = vrot.slane %v6348_v0, 7 }
 0x24a   :  { %4548 = vpow2.f32 %v4153_v15  ;;  %v4159_v52 = vmul.f32 -1.442695, %v1177_v38  ;;  %v1099_v33 = vrot.slane %v6348_v0, 1  ;;  %v4160_v49 = vmul.f32 -1.442695, %v1181_v31 }
 0x24b   :  { %4550 = vpow2.f32 %v4155_v45  ;;  %v1103_v60 = vrot.slane %v6348_v0, 2  ;;  %v1107_v14 = vrot.slane %v6348_v0, 3  ;;  %v1155_v48 = vadd.f32 %v1095_v54, %v6011_v37 }
 0x24c   :  { %4552 = vpow2.f32 %v4156_v42  ;;  %v1159_v46 = vadd.f32 %v6348_v0, %v6022_v11  ;;  %v1163_v41 = vadd.f32 %v1099_v33, %v6027_v63  ;;  %v1111_v31 = vrot.slane %v6348_v0, 4 }
 0x24d   :  { %4554 = vpow2.f32 %v4157_v53  ;;  %v1167_v38 = vadd.f32 %v1103_v60, %v6043_v23  ;;  %v1171_v62 = vadd.f32 %v1107_v14, %v6032_v2  ;;  %v1115_v6 = vrot.slane %v6348_v0, 5 }
 0x24e   :  { %4556 = vpow2.f32 %v4158_v19  ;;  %v1094_v42 = vrot.slane %v6350_v57, 7  ;;  %v1119_v54 = vrot.slane %v6348_v0, 6  ;;  %v1098_v14 = vrot.slane %v6350_v57, 1 }
 0x24f   :  { %4558 = vpow2.f32 %v4159_v52  ;;  %v1175_v52 = vadd.f32 %v1111_v31, %v6079_v25  ;;  %v1179_v60 = vadd.f32 %v1115_v6, %v6088_v29  ;;  %v1110_v0 = vrot.slane %v6350_v57, 4 }
 0x250   :  { %4560 = vpow2.f32 %v4160_v49  ;;  %v1154_v31 = vadd.f32 %v1094_v42, %v6017_v5  ;;  %v1114_v6 = vrot.slane %v6350_v57, 5 }
 0x251   :  { %4562 = vtanh.f32 %v1155_v48 }
 0x252   :  { %4564 = vtanh.f32 %v1159_v46  ;;  %v4161_v29 = vmul.f32 -1.442695, %v1154_v31 }
 0x253   :  { %v4547_v26 = vpop.eup %4546  ;;  %4566 = vtanh.f32 %v1163_v41  ;;  %v1102_v41 = vrot.slane %v6350_v57, 2 }
 0x254   :  { %v4549_v61 = vpop.eup %4548  ;;  %v1210_v16 = vadd.f32 1.0, %v4547_v26  ;;  %4568 = vtanh.f32 %v1167_v38  ;;  %v1106_v38 = vrot.slane %v6350_v57, 3 }
 0x255   :  { %v4551_v15 = vpop.eup %4550  ;;  %v1209_v45 = vadd.f32 1.0, %v4549_v61  ;;  %4570 = vtanh.f32 %v1171_v62  ;;  %v1166_v42 = vadd.f32 %v1102_v41, %v6066_v20  ;;  %v1100_v41 = vrot.slane %v6352_v58, 1 }
 0x256   :  { %v4553_v53 = vpop.eup %4552  ;;  %v1211_v19 = vadd.f32 1.0, %v4551_v15  ;;  %4572 = vrcp.f32 %v1210_v16  ;;  %v1158_v15 = vadd.f32 %v6350_v57, %v6048_v32  ;;  %v1096_v32 = vrot.slane %v6352_v58, 7 }
 0x257   :  { %v4555_v33 = vpop.eup %4554  ;;  %v1212_v49 = vadd.f32 1.0, %v4553_v53  ;;  %4574 = vrcp.f32 %v1209_v45 }
 0x258   :  { %v4557_v48 = vpop.eup %4556  ;;  %v1213_v46 = vadd.f32 1.0, %v4555_v33  ;;  %4576 = vrcp.f32 %v1211_v19  ;;  %v1118_v19 = vrot.slane %v6350_v57, 6  ;;  %v1162_v33 = vadd.f32 %v1098_v14, %v6057_v17  ;;  %v8039_v57 = vld [vmem:[#allocation38_spill] sm:$0xff] }
 0x259   :  { %v4559_v62 = vpop.eup %4558  ;;  %v1214_v26 = vadd.f32 1.0, %v4557_v48  ;;  %4578 = vrcp.f32 %v1212_v49  ;;  %v1183_v48 = vadd.f32 %v1119_v54, %v6101_v13  ;;  %v4162_v14 = vmul.f32 -1.442695, %v1158_v15 }
 0x25a   :  { %v4561_v61 = vpop.eup %4560  ;;  %v1215_v16 = vadd.f32 1.0, %v4559_v62  ;;  %4580 = vrcp.f32 %v1213_v46  ;;  %v8038_v62 = vld [vmem:[#allocation34_spill] sm:$0xff]  ;;  %v4163_v13 = vmul.f32 -1.442695, %v1162_v33  ;;  %v1160_v33 = vadd.f32 %v6352_v58, %v6052_v55 }
 0x25b   :  { %v4563_v45 = vpop.eup %4562  ;;  %v1216_v53 = vadd.f32 1.0, %v4561_v61  ;;  %4582 = vrcp.f32 %v1214_v26  ;;  %v1170_v46 = vadd.f32 %v1106_v38, %v8038_v62  ;;  %v1174_v26 = vadd.f32 %v1110_v0, %v6093_v36 }
 0x25c   :  { %v4565_v49 = vpop.eup %4564  ;;  %4584 = vrcp.f32 %v1215_v16  ;;  %v1178_v61 = vadd.f32 %v1114_v6, %v8039_v57  ;;  %v8040_v16 = vld [vmem:[#allocation40_spill] sm:$0xff]  ;;  %v1104_v62 = vrot.slane %v6352_v58, 2  ;;  %v1108_v0 = vrot.slane %v6352_v58, 3  ;;  %v8041_v6 = vld [vmem:[#allocation27_spill] sm:$0xff] }
 0x25d   :  { %v4567_v5 = vpop.eup %4566  ;;  %4586 = vrcp.f32 %v1216_v53  ;;  %v1182_v54 = vadd.f32 %v1118_v19, %v8040_v16  ;;  %v4164_v53 = vmul.f32 -1.442695, %v1166_v42  ;;  %v4165_v31 = vmul.f32 -1.442695, %v1170_v46 }
 0x25e   :  { %v4569_v25 = vpop.eup %4568  ;;  %4588 = vtanh.f32 %v1175_v52  ;;  %v1156_v15 = vadd.f32 %v1096_v32, %v8041_v6  ;;  %v4166_v19 = vmul.f32 -1.442695, %v1174_v26  ;;  %v4167_v46 = vmul.f32 -1.442695, %v1178_v61 }
 0x25f   :  { %v4571_v17 = vpop.eup %4570  ;;  %4590 = vtanh.f32 %v1179_v60  ;;  %v4168_v32 = vmul.f32 -1.442695, %v1182_v54  ;;  %v1172_v26 = vadd.f32 %v1108_v0, %v6084_v50 }
 0x260   :  { %v4573_v38 = vpop.eup %4572  ;;  %4592 = vtanh.f32 %v1183_v48  ;;  %v4169_v55 = vmul.f32 -1.442695, %v1156_v15 }
 0x261   :  { %v4575_v20 = vpop.eup %4574  ;;  %v6397_v52 = vmul.f32 %v4573_v38, %v4565_v49  ;;  %4594 = vpow2.f32 %v4161_v29  ;;  %v1164_v49 = vadd.f32 %v1100_v41, %v6061_v27 }
 0x262   :  { %v4577_v60 = vpop.eup %4576  ;;  %v6401_v57 = vmul.f32 %v4575_v20, %v4563_v45  ;;  %4596 = vpow2.f32 %v4162_v14  ;;  %v1168_v20 = vadd.f32 %v1104_v62, %v6070_v21  ;;  %v4173_v62 = vmul.f32 -1.442695, %v1172_v26 }
 0x263   :  { %v4579_v48 = vpop.eup %4578  ;;  %v6405_v42 = vmul.f32 %v4577_v60, %v4567_v5  ;;  %4598 = vpow2.f32 %v4163_v13  ;;  %v4170_v13 = vmul.f32 -1.442695, %v1160_v33  ;;  %v4171_v41 = vmul.f32 -1.442695, %v1164_v49 }
 0x264   :  { %v4581_v29 = vpop.eup %4580  ;;  %v6408_v38 = vmul.f32 %v4579_v48, %v4569_v25  ;;  %4600 = vpow2.f32 %v4164_v53  ;;  %v4172_v25 = vmul.f32 -1.442695, %v1168_v20  ;;  %v1120_v49 = vrot.slane %v6352_v58, 6 }
 0x265   :  { %v4583_v45 = vpop.eup %4582  ;;  %v6411_v14 = vmul.f32 %v4581_v29, %v4571_v17  ;;  %4602 = vpow2.f32 %v4165_v31  ;;  %v1112_v31 = vrot.slane %v6352_v58, 4 }
 0x266   :  { %v4585_v5 = vpop.eup %4584  ;;  %4604 = vpow2.f32 %v4166_v19  ;;  %v1116_v19 = vrot.slane %v6352_v58, 5 }
 0x267   :  { %v4587_v61 = vpop.eup %4586  ;;  %4606 = vpow2.f32 %v4167_v46 }
 0x268   :  { %v4589_v60 = vpop.eup %4588  ;;  %4608 = vpow2.f32 %v4168_v32 }
 0x269   :  { %v4591_v53 = vpop.eup %4590  ;;  %v6414_v54 = vmul.f32 %v4589_v60, %v4583_v45  ;;  %4610 = vpow2.f32 %v4169_v55  ;;  %v1176_v45 = vadd.f32 %v1112_v31, %v6151_v28  ;;  %v1184_v60 = vadd.f32 %v1120_v49, %v6165_v39 }
 0x26a   :  { %v4593_v17 = vpop.eup %4592  ;;  %4612 = vpow2.f32 %v4170_v13  ;;  %v6417_v0 = vmul.f32 %v4591_v53, %v4585_v5  ;;  %v1180_v13 = vadd.f32 %v1116_v19, %v6158_v43 }
 0x26b   :  { %v4595_v15 = vpop.eup %4594  ;;  %4614 = vpow2.f32 %v4171_v41  ;;  %v6420_v33 = vmul.f32 %v4593_v17, %v4587_v61  ;;  %v4174_v17 = vmul.f32 -1.442695, %v1176_v45  ;;  %v1346_v45 = vrot.slane %v6175_v47, 7 }
 0x26c   :  { %v4597_v48 = vpop.eup %4596  ;;  %v1257_v46 = vadd.f32 1.0, %v4595_v15  ;;  %4616 = vpow2.f32 %v4172_v25  ;;  %v4175_v31 = vmul.f32 -1.442695, %v1180_v13 }
 0x26d   :  { %v4599_v29 = vpop.eup %4598  ;;  %v1258_v55 = vadd.f32 1.0, %v4597_v48  ;;  %4618 = vpow2.f32 %v4173_v62 }
 0x26e   :  { %v4601_v32 = vpop.eup %4600  ;;  %v1259_v20 = vadd.f32 1.0, %v4599_v29  ;;  %4620 = vrcp.f32 %v1257_v46  ;;  %v4176_v29 = vmul.f32 -1.442695, %v1184_v60 }
 0x26f   :  { %v4603_v26 = vpop.eup %4602  ;;  %v1260_v5 = vadd.f32 1.0, %v4601_v32  ;;  %4622 = vrcp.f32 %v1258_v55 }
 0x270   :  { %v4605_v61 = vpop.eup %4604  ;;  %v1261_v41 = vadd.f32 1.0, %v4603_v26  ;;  %4624 = vrcp.f32 %v1259_v20  ;;  %v1345_v26 = vrot.slane %v6172_v22, 7  ;;  %v1349_v22 = vrot.slane %v6186_v18, 7 }
 0x271   :  { %v4607_v58 = vpop.eup %4606  ;;  %v1262_v25 = vadd.f32 1.0, %v4605_v61  ;;  %4626 = vrcp.f32 %v1260_v5 }
 0x272   :  { %v4609_v53 = vpop.eup %4608  ;;  %v1263_v62 = vadd.f32 1.0, %v4607_v58  ;;  %4628 = vrcp.f32 %v1261_v41  ;;  %v1347_v58 = vrot.slane %v6178_v34, 7 }
 0x273   :  { %v4611_v15 = vpop.eup %4610  ;;  %v1264_v48 = vadd.f32 1.0, %v4609_v53  ;;  %4630 = vrcp.f32 %v1262_v25 }
 0x274   :  { %v4613_v46 = vpop.eup %4612  ;;  %4632 = vrcp.f32 %v1263_v62  ;;  %v1313_v55 = vadd.f32 1.0, %v4611_v15  ;;  %v1348_v62 = vrot.slane %v6182_v8, 7  ;;  %v1351_v8 = vrot.slane %v6195_v51, 7 }
 0x275   :  { %v4615_v19 = vpop.eup %4614  ;;  %4634 = vrcp.f32 %v1264_v48  ;;  %v1314_v49 = vadd.f32 1.0, %v4613_v46  ;;  %v1350_v46 = vrot.slane %v6190_v10, 7 }
 0x276   :  { %v4617_v32 = vpop.eup %4616  ;;  %4636 = vpow2.f32 %v4174_v17  ;;  %v1315_v5 = vadd.f32 1.0, %v4615_v19 }
 0x277   :  { %v4619_v20 = vpop.eup %4618  ;;  %4638 = vpow2.f32 %v4175_v31  ;;  %v1316_v41 = vadd.f32 1.0, %v4617_v32 }
 0x278   :  { %v4621_v61 = vpop.eup %4620  ;;  %4640 = vpow2.f32 %v4176_v29  ;;  %v1317_v25 = vadd.f32 1.0, %v4619_v20 }
 0x279   :  { %v4623_v13 = vpop.eup %4622  ;;  %v1361_v60 = vmul.f32 %v4621_v61, %v1345_v26  ;;  %4642 = vrcp.f32 %v1313_v55 }
 0x27a   :  { %v4625_v53 = vpop.eup %4624  ;;  %v1362_v17 = vmul.f32 %v4623_v13, %v1346_v45  ;;  %4644 = vrcp.f32 %v1314_v49 }
 0x27b   :  { %v4627_v15 = vpop.eup %4626  ;;  %v1363_v48 = vmul.f32 %v4625_v53, %v1347_v58  ;;  %v6432_v31 = vadd.f32 %v6401_v57, %v1361_v60  ;;  %4646 = vrcp.f32 %v1315_v5  ;;  %v1352_v57 = vrot.slane %v6198_v9, 7 }
 0x27c   :  { %v4629_v47 = vpop.eup %4628  ;;  %v1364_v34 = vmul.f32 %v4627_v15, %v1348_v62  ;;  %v6436_v29 = vadd.f32 %v6397_v52, %v1362_v17  ;;  %4648 = vrcp.f32 %v1316_v41 }
 0x27d   :  { %v4631_v19 = vpop.eup %4630  ;;  %v6440_v55 = vadd.f32 %v6405_v42, %v1363_v48  ;;  %4650 = vrcp.f32 %v1317_v25  ;;  %v1365_v18 = vmul.f32 %v4629_v47, %v1349_v22 }
 0x27e   :  { %v4633_v32 = vpop.eup %4632  ;;  %4652 = vtanh.f32 %v6436_v29  ;;  %v1366_v49 = vmul.f32 %v4631_v19, %v1350_v46  ;;  %v6445_v10 = vadd.f32 %v6408_v38, %v1364_v34 }
 0x27f   :  { %v4635_v52 = vpop.eup %4634  ;;  %v1367_v20 = vmul.f32 %v4633_v32, %v1351_v8  ;;  %v6448_v26 = vadd.f32 %v6411_v14, %v1365_v18  ;;  %4654 = vtanh.f32 %v6432_v31 }
 0x280   :  { %v4637_v51 = vpop.eup %4636  ;;  %v1368_v42 = vmul.f32 %v4635_v52, %v1352_v57  ;;  %v6452_v5 = vadd.f32 %v6414_v54, %v1366_v49  ;;  %4656 = vtanh.f32 %v6440_v55 }
 0x281   :  { %v4639_v9 = vpop.eup %4638  ;;  %v1318_v61 = vadd.f32 1.0, %v4637_v51  ;;  %v6456_v45 = vadd.f32 %v6417_v0, %v1367_v20  ;;  %4658 = vtanh.f32 %v6445_v10 }
 0x282   :  { %v4641_v38 = vpop.eup %4640  ;;  %v1319_v41 = vadd.f32 1.0, %v4639_v9  ;;  %v6460_v14 = vadd.f32 %v6420_v33, %v1368_v42  ;;  %4660 = vtanh.f32 %v6448_v26 }
 0x283   :  { %v4643_v13 = vpop.eup %4642  ;;  %v1320_v58 = vadd.f32 1.0, %v4641_v38  ;;  %4662 = vrcp.f32 %v1318_v61 }
 0x284   :  { %v4645_v54 = vpop.eup %4644  ;;  %4664 = vrcp.f32 %v1319_v41 }
 0x285   :  { %v4647_v60 = vpop.eup %4646  ;;  %4666 = vrcp.f32 %v1320_v58 }
 0x286   :  { %v4649_v25 = vpop.eup %4648  ;;  %4668 = vtanh.f32 %v6452_v5 }
 0x287   :  { %v4651_v0 = vpop.eup %4650  ;;  %4670 = vtanh.f32 %v6456_v45 }
 0x288   :  { %v4653_v53 = vpop.eup %4652  ;;  %4672 = vtanh.f32 %v6460_v14 }
 0x289   :  { %v4655_v33 = vpop.eup %4654  ;;  %v1394_v62 = vmul.f32 %v4653_v53, %v4645_v54 }
 0x28a   :  { %v4657_v17 = vpop.eup %4656  ;;  %v1393_v15 = vmul.f32 %v4655_v33, %v4643_v13 }
 0x28b   :  { %v4659_v22 = vpop.eup %4658  ;;  %v1395_v48 = vmul.f32 %v4657_v17, %v4647_v60  ;;  %1402 = vst [vmem:[%s7878_s4 + $0x8] sm:$0x2] %v1394_v62  ;;  %v1410_v19 = vpack.c.bf16 %v1394_v62, %v1394_v62 }
 0x28c   :  { %v4661_v47 = vpop.eup %4660  ;;  %v1396_v46 = vmul.f32 %v4659_v22, %v4649_v25  ;;  %1401 = vst [vmem:[%s7878_s4] sm:$0x2] %v1393_v15  ;;  %v1409_v34 = vpack.c.bf16 %v1393_v15, %v1393_v15 }
 0x28d   :  { %v4663_v8 = vpop.eup %4662  ;;  %v1397_v18 = vmul.f32 %v4661_v47, %v4651_v0  ;;  %1403 = vst [vmem:[%s7878_s4 + $0x10] sm:$0x2] %v1395_v48  ;;  %v1411_v32 = vpack.c.bf16 %v1395_v48, %v1395_v48  ;;  %v1426_v61 = vunpack.c.l.b16 %v1410_v19 }
 0x28e   :  { %v4665_v57 = vpop.eup %4664  ;;  %1404 = vst [vmem:[%s7878_s4 + $0x18] sm:$0x2] %v1396_v46  ;;  %v1412_v49 = vpack.c.bf16 %v1396_v46, %v1396_v46  ;;  %v1425_v52 = vunpack.c.l.b16 %v1409_v34 }
 0x28f   :  { %v4667_v20 = vpop.eup %4666  ;;  %1405 = vst [vmem:[%s7878_s4 + $0x20] sm:$0x2] %v1397_v18  ;;  %v1413_v51 = vpack.c.bf16 %v1397_v18, %v1397_v18  ;;  %v1427_v42 = vunpack.c.l.b16 %v1411_v32 }
 0x290   :  { %v4669_v9 = vpop.eup %4668  ;;  %v1428_v38 = vunpack.c.l.b16 %v1412_v49  ;;  %v1433_v41 = vrot.slane %v1425_v52, 1 }
 0x291   :  { %v4671_v13 = vpop.eup %4670  ;;  %v1398_v58 = vmul.f32 %v4669_v9, %v4663_v8  ;;  %v1429_v54 = vunpack.c.l.b16 %v1413_v51  ;;  %v1435_v60 = vrot.slane %v1427_v42, 7  ;;  %v8042_v9 = vmov 0  }
 0x292   :  { %v4673_v25 = vpop.eup %4672  ;;  %v1399_v0 = vmul.f32 %v4671_v13, %v4665_v57  ;;  %v1434_v53 = vsel %vm985_vm0, %v1426_v61, %v1433_v41  ;;  %v1437_v33 = vrot.slane %v1428_v38, 6  ;;  %v8043_v61 = vld [vmem:[#allocation41_spill] sm:$0xff]  ;;  %v8044_v38 = vld [vmem:[#allocation42_spill] sm:$0xff]  ;;  %v8045_v41 = vld [vmem:[#allocation43_spill] sm:$0xff] }
 0x293   :  { %v1400_v62 = vmul.f32 %v4673_v25, %v4667_v20  ;;  %1406 = vst [vmem:[%s7878_s4 + $0x28] sm:$0x2] %v1398_v58  ;;  %v1414_v17 = vpack.c.bf16 %v1398_v58, %v1398_v58  ;;  %v1436_v15 = vsel %vm988_vm1, %v1435_v60, %v1434_v53  ;;  %v1439_v22 = vrot.slane %v1429_v54, 5  ;;  %v8046_v13 = vld [vmem:[#allocation44_spill] sm:$0xff]  ;;  %v8047_v58 = vld [vmem:[#allocation45_spill] sm:$0xff]  ;;  %v8052_v54 = vld [vmem:[#allocation50_spill] sm:$0xff] }
 0x294   :  { %1407 = vst [vmem:[%s7878_s4 + $0x30] sm:$0x2] %v1399_v0  ;;  %v1415_v48 = vpack.c.bf16 %v1399_v0, %v1399_v0  ;;  %v1438_v47 = vsel %vm991_vm2, %v1437_v33, %v1436_v15  ;;  %v6516_v60 = vld [vmem:[%s7875_s2 + $0x84] ss:$16 sps:$4 sm:$0xff]   ;;  %v6522_v25 = vld [vmem:[%s7875_s2 + $0x8c] ss:$16 sps:$4 sm:$0xff]  }
 0x295   :  { %1408 = vst [vmem:[%s7878_s4 + $0x38] sm:$0x2] %v1400_v62  ;;  %v1416_v46 = vpack.c.bf16 %v1400_v62, %v1400_v62  ;;  %v1430_v34 = vunpack.c.l.b16 %v1414_v17  ;;  %v1440_v19 = vsel %vm994_vm3, %v1439_v22, %v1438_v47  ;;  %v6528_v0 = vld [vmem:[%s7875_s2 + $0x80] ss:$16 sps:$4 sm:$0xff]   ;;  %v6534_v53 = vld [vmem:[%s7875_s2 + $0x88] ss:$16 sps:$4 sm:$0xff]  }
 0x296   :  { %v1431_v8 = vunpack.c.l.b16 %v1415_v48  ;;  %v6540_v33 = vld [vmem:[%s7875_s2 + $0xa4] ss:$16 sps:$4 sm:$0xff]   ;;  %v6546_v62 = vld [vmem:[%s7875_s2 + $0xac] ss:$16 sps:$4 sm:$0xff]   ;;  %v6552_v17 = vld [vmem:[%s7875_s2 + $0xa0] ss:$16 sps:$4 sm:$0xff]  }
 0x297   :  { %v1432_v18 = vunpack.c.l.b16 %v1416_v46  ;;  %v1441_v32 = vrot.slane %v1430_v34, 4  ;;  %v6558_v15 = vld [vmem:[%s7875_s2 + $0xa8] ss:$16 sps:$4 sm:$0xff]   ;;  %v6564_v22 = vld [vmem:[%s7875_s2 + $0xc4] ss:$16 sps:$4 sm:$0xff]  }
 0x298   :  { %v1443_v57 = vrot.slane %v1431_v8, 3  ;;  %v6570_v48 = vld [vmem:[%s7875_s2 + $0xcc] ss:$16 sps:$4 sm:$0xff]   ;;  %v6576_v47 = vld [vmem:[%s7875_s2 + $0xc0] ss:$16 sps:$4 sm:$0xff]  }
 0x299   :  { %v1442_v49 = vsel %vm997_vm4, %v1441_v32, %v1440_v19  ;;  %v1445_v52 = vrot.slane %v1432_v18, 2  ;;  %8053 = vst [vmem:[#allocation4_spill] sm:$0xff] %v6570_v48  ;;  %8054 = vst [vmem:[#allocation5_spill] sm:$0xff] %v6576_v47  ;;  %v6582_v46 = vld [vmem:[%s7875_s2 + $0xc8] ss:$16 sps:$4 sm:$0xff]   ;;  %v8060_v32 = vld [vmem:[#allocation2_spill] sm:$0xff] }
 0x29a   :  { %v1444_v20 = vsel %vm1000_vm5, %v1443_v57, %v1442_v49  ;;  %8055 = vst [vmem:[#allocation6_spill] sm:$0xff] %v6582_v46  ;;  %v6588_v34 = vld [vmem:[%s7875_s2 + $0xe4] ss:$16 sps:$4 sm:$0xff]   ;;  %v6594_v19 = vld [vmem:[%s7875_s2 + $0xec] ss:$16 sps:$4 sm:$0xff]  }
 0x29b   :  { %v1446_v51 = vsel %vm1003_vm6, %v1445_v52, %v1444_v20  ;;  %8056 = vst [vmem:[#allocation7_spill] sm:$0xff] %v6588_v34  ;;  %8057 = vst [vmem:[#allocation8_spill] sm:$0xff] %v6594_v19  ;;  %v6600_v8 = vld [vmem:[%s7875_s2 + $0xe0] ss:$16 sps:$4 sm:$0xff]   ;;  %v6606_v18 = vld [vmem:[%s7875_s2 + $0xe8] ss:$16 sps:$4 sm:$0xff]  }
 0x29c   :  { %v1447_v42 = vpack.c.b16 %v1446_v51, %v1446_v51  ;;  %8058 = vst [vmem:[#allocation9_spill] sm:$0xff] %v6600_v8  ;;  %8059 = vst [vmem:[#allocation10_spill] sm:$0xff] %v6606_v18  ;;  %v8061_v57 = vld [vmem:[#allocation3_spill] sm:$0xff] }
 0x29e   :  { %1482 = vmatmul.mubr.bf16.vlgmr.msra.gmra.mrb[24].mxu0 %v1447_v42  ;;  %1523 = vmatmul.mubr.bf16.vlgmr.msra.gmra.mrb[24].mxu1 %v1447_v42 }
 0x29f   :  { %1892 = vmatpush1.bf16.msra.mxu0 %v6237_v24  ;;  %1933 = vmatpush1.bf16.msra.mxu1 %v6243_v44  ;;  %v8048_v24 = vld [vmem:[#allocation46_spill] sm:$0xff]  ;;  %v8049_v44 = vld [vmem:[#allocation47_spill] sm:$0xff] }
 0x2a0   :  { %1893 = vmatprep.subr.bf16.mxu0 %v6249_v35  ;;  %1934 = vmatprep.subr.bf16.mxu1 %v6255_v12  ;;  %v8050_v35 = vld [vmem:[#allocation48_spill] sm:$0xff]  ;;  %v8051_v12 = vld [vmem:[#allocation49_spill] sm:$0xff] }
 0x2a1   :  { %1923 = vmatprep.mubr.bf16.mxu0 %v8042_v9  ;;  %1964 = vmatprep.mubr.bf16.mxu1 %v8042_v9 }
 0x2a3   :  { %1894 = vmatpush1.bf16.msra.mxu0 %v8043_v61  ;;  %1935 = vmatpush1.bf16.msra.mxu1 %v8044_v38 }
 0x2a4   :  { %1895 = vmatprep.subr.bf16.mxu0 %v8045_v41  ;;  %1936 = vmatprep.subr.bf16.mxu1 %v8046_v13 }
 0x2a7   :  { %1896 = vmatpush1.bf16.msra.mxu0 %v8047_v58  ;;  %1937 = vmatpush1.bf16.msra.mxu1 %v8048_v24 }
 0x2a8   :  { %1897 = vmatprep.subr.bf16.mxu0 %v8049_v44  ;;  %1938 = vmatprep.subr.bf16.mxu1 %v8050_v35 }
 0x2ab   :  { %1898 = vmatpush1.bf16.msra.mxu0 %v8051_v12  ;;  %1939 = vmatpush1.bf16.msra.mxu1 %v8052_v54 }
 0x2ac   :  { %1899 = vmatprep.subr.bf16.mxu0 %v6516_v60  ;;  %1940 = vmatprep.subr.bf16.mxu1 %v6522_v25 }
 0x2af   :  { %1900 = vmatpush1.bf16.msra.mxu0 %v6528_v0  ;;  %1941 = vmatpush1.bf16.msra.mxu1 %v6534_v53 }
 0x2b0   :  { %1901 = vmatprep.subr.bf16.mxu0 %v6540_v33  ;;  %1942 = vmatprep.subr.bf16.mxu1 %v6546_v62 }
 0x2b3   :  { %1902 = vmatpush1.bf16.msra.mxu0 %v6552_v17  ;;  %1943 = vmatpush1.bf16.msra.mxu1 %v6558_v15 }
 0x2b4   :  { %1903 = vmatprep.subr.bf16.mxu0 %v6564_v22  ;;  %1944 = vmatprep.subr.bf16.mxu1 %v6570_v48 }
 0x2b7   :  { %1904 = vmatpush1.bf16.msra.mxu0 %v6576_v47  ;;  %1945 = vmatpush1.bf16.msra.mxu1 %v6582_v46 }
 0x2b8   :  { %1905 = vmatprep.subr.bf16.mxu0 %v6588_v34  ;;  %1946 = vmatprep.subr.bf16.mxu1 %v6594_v19 }
 0x2bb   :  { %1906 = vmatpush1.bf16.msra.mxu0 %v6600_v8  ;;  %1947 = vmatpush1.bf16.msra.mxu1 %v6606_v18 }
 0x2bc   :  { %2333 = vmatprep.subr.bf16.mxu0 %v8060_v32  ;;  %2374 = vmatprep.subr.bf16.mxu1 %v8061_v57 }
 0x371   :  { %v1483_v49 = vpop.f32.mrb[24].mxu0  ;;  %v6611_v52 = vpop.f32.mrb[24].mxu1 }
 0x372   :  { %v1535_v20 = vrot.slane %v1483_v49, 6  ;;  %v1539_v51 = vrot.slane %v1483_v49, 7  ;;  %v1543_v42 = vrot.slane %v1483_v49, 1  ;;  %v1547_v61 = vrot.slane %v1483_v49, 2  ;;  %v6613_v38 = vpop.f32.mrb[25].mxu0  ;;  %v6615_v41 = vpop.f32.mrb[25].mxu1 }
 0x373   :  { %v1551_v13 = vrot.slane %v1483_v49, 3  ;;  %v1555_v58 = vrot.slane %v1483_v49, 4  ;;  %v1559_v24 = vrot.slane %v1483_v49, 5  ;;  %v1603_v44 = vadd.f32 %v1483_v49, %v5983_v3  ;;  %v1487_v35 = vpop.f32.mrb[26].mxu0  ;;  %v1528_v12 = vpop.f32.mrb[26].mxu1 }
 0x374   :  { %v1595_v54 = vadd.f32 %v1535_v20, %v5979_v56  ;;  %v1599_v32 = vadd.f32 %v1539_v51, %v5981_v59  ;;  %v1607_v57 = vadd.f32 %v1543_v42, %v5985_v4  ;;  %v1611_v18 = vadd.f32 %v1547_v61, %v5987_v7  ;;  %v1488_v8 = vpop.f32.mrb[27].mxu0  ;;  %v1529_v19 = vpop.f32.mrb[27].mxu1 }
 0x375   :  { %v1615_v34 = vadd.f32 %v1551_v13, %v5989_v30  ;;  %v1619_v46 = vadd.f32 %v1555_v58, %v5991_v40  ;;  %v4179_v47 = vmul.f32 -1.442695, %v1603_v44  ;;  %v1623_v48 = vadd.f32 %v1559_v24, %v5993_v1 }
 0x376   :  { %v4177_v49 = vmul.f32 -1.442695, %v1595_v54  ;;  %v4178_v35 = vmul.f32 -1.442695, %v1599_v32  ;;  %v4180_v12 = vmul.f32 -1.442695, %v1607_v57 }
 0x377   :  { %4674 = vpow2.f32 %v4179_v47  ;;  %v4181_v20 = vmul.f32 -1.442695, %v1611_v18  ;;  %v4182_v51 = vmul.f32 -1.442695, %v1615_v34  ;;  %v1537_v42 = vrot.slane %v6611_v52, 6 }
 0x378   :  { %4676 = vpow2.f32 %v4177_v49  ;;  %v1541_v61 = vrot.slane %v6611_v52, 7  ;;  %v4183_v19 = vmul.f32 -1.442695, %v1619_v46  ;;  %v4184_v8 = vmul.f32 -1.442695, %v1623_v48 }
 0x379   :  { %4678 = vpow2.f32 %v4178_v35  ;;  %v1545_v13 = vrot.slane %v6611_v52, 1  ;;  %v1549_v58 = vrot.slane %v6611_v52, 2  ;;  %v1597_v24 = vadd.f32 %v1537_v42, %v6011_v37 }
 0x37a   :  { %4680 = vpow2.f32 %v4180_v12  ;;  %v1601_v47 = vadd.f32 %v1541_v61, %v6022_v11  ;;  %v1605_v34 = vadd.f32 %v6611_v52, %v6027_v63  ;;  %v1553_v44 = vrot.slane %v6611_v52, 3  ;;  %v8067_v63 = vld [vmem:[#allocation39_spill] sm:$0xff] }
 0x37b   :  { %4682 = vpow2.f32 %v4181_v20  ;;  %v1609_v18 = vadd.f32 %v1545_v13, %v6043_v23  ;;  %v1613_v46 = vadd.f32 %v1549_v58, %v6032_v2  ;;  %v1557_v54 = vrot.slane %v6611_v52, 4  ;;  %v8062_v13 = vld [vmem:[#allocation35_spill] sm:$0xff] }
 0x37c   :  { %4684 = vpow2.f32 %v4182_v51  ;;  %v1536_v12 = vrot.slane %v6613_v38, 6  ;;  %v1561_v42 = vrot.slane %v6611_v52, 5  ;;  %v1540_v61 = vrot.slane %v6613_v38, 7  ;;  %v8066_v23 = vld [vmem:[#allocation31_spill] sm:$0xff] }
 0x37d   :  { %4686 = vpow2.f32 %v4183_v19  ;;  %v1617_v58 = vadd.f32 %v1553_v44, %v8062_v13  ;;  %v1552_v52 = vrot.slane %v6613_v38, 3  ;;  %v1556_v44 = vrot.slane %v6613_v38, 4 }
 0x37e   :  { %4688 = vpow2.f32 %v4184_v8  ;;  %v1560_v13 = vrot.slane %v6613_v38, 5  ;;  %v1625_v11 = vadd.f32 %v1561_v42, %v8067_v63 }
 0x37f   :  { %4690 = vtanh.f32 %v1597_v24  ;;  %v8063_v24 = vld [vmem:[#allocation36_spill] sm:$0xff] }
 0x380   :  { %4692 = vtanh.f32 %v1601_v47  ;;  %v1621_v47 = vadd.f32 %v1557_v54, %v8063_v24  ;;  %v8065_v54 = vld [vmem:[#allocation29_spill] sm:$0xff] }
 0x381   :  { %v4675_v48 = vpop.eup %4674  ;;  %4694 = vtanh.f32 %v1605_v34  ;;  %v1600_v24 = vadd.f32 %v1540_v61, %v8065_v54  ;;  %v1538_v61 = vrot.slane %v6615_v41, 6 }
 0x382   :  { %v4677_v32 = vpop.eup %4676  ;;  %v1653_v57 = vadd.f32 1.0, %v4675_v48  ;;  %4696 = vtanh.f32 %v1609_v18  ;;  %v1548_v48 = vrot.slane %v6613_v38, 2 }
 0x383   :  { %v4679_v49 = vpop.eup %4678  ;;  %v1651_v35 = vadd.f32 1.0, %v4677_v32  ;;  %4698 = vtanh.f32 %v1613_v46  ;;  %v1544_v46 = vrot.slane %v6613_v38, 1  ;;  %v4186_v54 = vmul.f32 -1.442695, %v1600_v24 }
 0x384   :  { %v4681_v20 = vpop.eup %4680  ;;  %v1652_v51 = vadd.f32 1.0, %v4679_v49  ;;  %4700 = vrcp.f32 %v1653_v57  ;;  %v8064_v49 = vld [vmem:[#allocation23_spill] sm:$0xff]  ;;  %v1550_v24 = vrot.slane %v6615_v41, 2 }
 0x385   :  { %v4683_v19 = vpop.eup %4682  ;;  %v1654_v8 = vadd.f32 1.0, %v4681_v20  ;;  %4702 = vrcp.f32 %v1651_v35  ;;  %v1596_v2 = vadd.f32 %v1536_v12, %v8064_v49  ;;  %v8068_v12 = vld [vmem:[#allocation33_spill] sm:$0xff] }
 0x386   :  { %v4685_v34 = vpop.eup %4684  ;;  %v1655_v18 = vadd.f32 1.0, %v4683_v19  ;;  %4704 = vrcp.f32 %v1652_v51  ;;  %v1608_v49 = vadd.f32 %v1544_v46, %v8068_v12  ;;  %v1624_v46 = vadd.f32 %v1560_v13, %v8040_v16 }
 0x387   :  { %v4687_v32 = vpop.eup %4686  ;;  %v1656_v57 = vadd.f32 1.0, %v4685_v34  ;;  %4706 = vrcp.f32 %v1654_v8  ;;  %v1604_v34 = vadd.f32 %v6613_v38, %v8066_v23  ;;  %v4185_v1 = vmul.f32 -1.442695, %v1596_v2 }
 0x388   :  { %v4689_v20 = vpop.eup %4688  ;;  %v1657_v35 = vadd.f32 1.0, %v4687_v32  ;;  %4708 = vrcp.f32 %v1655_v18  ;;  %v8069_v32 = vld [vmem:[#allocation34_spill] sm:$0xff]  ;;  %v1542_v38 = vrot.slane %v6615_v41, 7 }
 0x389   :  { %v4691_v19 = vpop.eup %4690  ;;  %v1658_v51 = vadd.f32 1.0, %v4689_v20  ;;  %4710 = vrcp.f32 %v1656_v57  ;;  %v1612_v18 = vadd.f32 %v1548_v48, %v8069_v32  ;;  %v1616_v57 = vadd.f32 %v1552_v52, %v6093_v36 }
 0x38a   :  { %v4693_v8 = vpop.eup %4692  ;;  %4712 = vrcp.f32 %v1657_v35  ;;  %v8070_v35 = vld [vmem:[#allocation38_spill] sm:$0xff]  ;;  %v4187_v12 = vmul.f32 -1.442695, %v1604_v34  ;;  %v1546_v32 = vrot.slane %v6615_v41, 1  ;;  %v1598_v52 = vadd.f32 %v1538_v61, %v8041_v6 }
 0x38b   :  { %v4695_v37 = vpop.eup %4694  ;;  %4714 = vrcp.f32 %v1658_v51  ;;  %v1620_v42 = vadd.f32 %v1556_v44, %v8070_v35  ;;  %v4188_v51 = vmul.f32 -1.442695, %v1608_v49  ;;  %v4189_v2 = vmul.f32 -1.442695, %v1612_v18  ;;  %v8071_v44 = vld [vmem:[#allocation30_spill] sm:$0xff] }
 0x38c   :  { %v4697_v20 = vpop.eup %4696  ;;  %4716 = vtanh.f32 %v1617_v58  ;;  %v4190_v13 = vmul.f32 -1.442695, %v1616_v57  ;;  %v1602_v34 = vadd.f32 %v1542_v38, %v8071_v44  ;;  %v4192_v61 = vmul.f32 -1.442695, %v1624_v46 }
 0x38d   :  { %v4699_v23 = vpop.eup %4698  ;;  %4718 = vtanh.f32 %v1621_v47  ;;  %v4191_v18 = vmul.f32 -1.442695, %v1620_v42  ;;  %v1614_v57 = vadd.f32 %v1550_v24, %v6084_v50 }
 0x38e   :  { %v4701_v48 = vpop.eup %4700  ;;  %4720 = vtanh.f32 %v1625_v11 }
 0x38f   :  { %v4703_v63 = vpop.eup %4702  ;;  %v6660_v58 = vmul.f32 %v4701_v48, %v4695_v37  ;;  %4722 = vpow2.f32 %v4185_v1  ;;  %v1606_v37 = vadd.f32 %v6615_v41, %v6061_v27 }
 0x390   :  { %v4705_v47 = vpop.eup %4704  ;;  %v6664_v36 = vmul.f32 %v4703_v63, %v4691_v19  ;;  %4724 = vpow2.f32 %v4186_v54  ;;  %v1610_v63 = vadd.f32 %v1546_v32, %v6070_v21  ;;  %v4197_v32 = vmul.f32 -1.442695, %v1614_v57 }
 0x391   :  { %v4707_v11 = vpop.eup %4706  ;;  %v6667_v49 = vmul.f32 %v4705_v47, %v4693_v8  ;;  %4726 = vpow2.f32 %v4187_v12  ;;  %v4193_v8 = vmul.f32 -1.442695, %v1598_v52  ;;  %v4194_v12 = vmul.f32 -1.442695, %v1602_v34 }
 0x392   :  { %v4709_v1 = vpop.eup %4708  ;;  %v6671_v48 = vmul.f32 %v4707_v11, %v4697_v20  ;;  %4728 = vpow2.f32 %v4188_v51  ;;  %v4195_v47 = vmul.f32 -1.442695, %v1606_v37  ;;  %v4196_v20 = vmul.f32 -1.442695, %v1610_v63 }
 0x393   :  { %v4711_v19 = vpop.eup %4710  ;;  %v6674_v54 = vmul.f32 %v4709_v1, %v4699_v23  ;;  %4730 = vpow2.f32 %v4189_v2  ;;  %v1554_v2 = vrot.slane %v6615_v41, 3  ;;  %v1562_v37 = vrot.slane %v6615_v41, 5 }
 0x394   :  { %v4713_v38 = vpop.eup %4712  ;;  %4732 = vpow2.f32 %v4190_v13  ;;  %v1558_v13 = vrot.slane %v6615_v41, 4 }
 0x395   :  { %v4715_v42 = vpop.eup %4714  ;;  %4734 = vpow2.f32 %v4191_v18 }
 0x396   :  { %v4717_v27 = vpop.eup %4716  ;;  %4736 = vpow2.f32 %v4192_v61 }
 0x397   :  { %v4719_v51 = vpop.eup %4718  ;;  %v6677_v46 = vmul.f32 %v4717_v27, %v4711_v19  ;;  %4738 = vpow2.f32 %v4193_v8  ;;  %v1618_v19 = vadd.f32 %v1554_v2, %v6151_v28 }
 0x398   :  { %v4721_v23 = vpop.eup %4720  ;;  %4740 = vpow2.f32 %v4194_v12  ;;  %v6680_v24 = vmul.f32 %v4719_v51, %v4713_v38  ;;  %v1622_v38 = vadd.f32 %v1558_v13, %v6158_v43 }
 0x399   :  { %v4723_v52 = vpop.eup %4722  ;;  %4742 = vpow2.f32 %v4195_v47  ;;  %v6683_v34 = vmul.f32 %v4721_v23, %v4715_v42  ;;  %v1626_v47 = vadd.f32 %v1562_v37, %v6165_v39  ;;  %v4198_v23 = vmul.f32 -1.442695, %v1618_v19 }
 0x39a   :  { %v4725_v11 = vpop.eup %4724  ;;  %v1699_v18 = vadd.f32 1.0, %v4723_v52  ;;  %4744 = vpow2.f32 %v4196_v20  ;;  %v4199_v2 = vmul.f32 -1.442695, %v1622_v38  ;;  %v1788_v19 = vrot.slane %v6436_v29, 7 }
 0x39b   :  { %v4727_v27 = vpop.eup %4726  ;;  %v1700_v1 = vadd.f32 1.0, %v4725_v11  ;;  %4746 = vpow2.f32 %v4197_v32 }
 0x39c   :  { %v4729_v61 = vpop.eup %4728  ;;  %v1701_v63 = vadd.f32 1.0, %v4727_v27  ;;  %4748 = vrcp.f32 %v1699_v18  ;;  %v4200_v27 = vmul.f32 -1.442695, %v1626_v47 }
 0x39d   :  { %v4731_v57 = vpop.eup %4730  ;;  %v1702_v8 = vadd.f32 1.0, %v4729_v61  ;;  %4750 = vrcp.f32 %v1700_v1 }
 0x39e   :  { %v4733_v12 = vpop.eup %4732  ;;  %v1703_v42 = vadd.f32 1.0, %v4731_v57  ;;  %4752 = vrcp.f32 %v1701_v63  ;;  %v1787_v57 = vrot.slane %v6432_v31, 7  ;;  %v1791_v31 = vrot.slane %v6448_v26, 7 }
 0x39f   :  { %v4735_v41 = vpop.eup %4734  ;;  %v1704_v20 = vadd.f32 1.0, %v4733_v12  ;;  %4754 = vrcp.f32 %v1702_v8 }
 0x3a0   :  { %v4737_v51 = vpop.eup %4736  ;;  %v1705_v32 = vadd.f32 1.0, %v4735_v41  ;;  %4756 = vrcp.f32 %v1703_v42  ;;  %v1789_v41 = vrot.slane %v6440_v55, 7 }
 0x3a1   :  { %v4739_v52 = vpop.eup %4738  ;;  %v1706_v11 = vadd.f32 1.0, %v4737_v51  ;;  %4758 = vrcp.f32 %v1704_v20 }
 0x3a2   :  { %v4741_v18 = vpop.eup %4740  ;;  %4760 = vrcp.f32 %v1705_v32  ;;  %v1755_v1 = vadd.f32 1.0, %v4739_v52  ;;  %v1790_v32 = vrot.slane %v6445_v10, 7  ;;  %v1793_v10 = vrot.slane %v6456_v45, 7 }
 0x3a3   :  { %v4743_v13 = vpop.eup %4742  ;;  %4762 = vrcp.f32 %v1706_v11  ;;  %v1756_v37 = vadd.f32 1.0, %v4741_v18  ;;  %v1792_v18 = vrot.slane %v6452_v5, 7 }
 0x3a4   :  { %v4745_v61 = vpop.eup %4744  ;;  %4764 = vpow2.f32 %v4198_v23  ;;  %v1757_v8 = vadd.f32 1.0, %v4743_v13 }
 0x3a5   :  { %v4747_v63 = vpop.eup %4746  ;;  %4766 = vpow2.f32 %v4199_v2  ;;  %v1758_v42 = vadd.f32 1.0, %v4745_v61 }
 0x3a6   :  { %v4749_v12 = vpop.eup %4748  ;;  %4768 = vpow2.f32 %v4200_v27  ;;  %v1759_v20 = vadd.f32 1.0, %v4747_v63 }
 0x3a7   :  { %v4751_v38 = vpop.eup %4750  ;;  %v1803_v47 = vmul.f32 %v4749_v12, %v1787_v57  ;;  %4770 = vrcp.f32 %v1755_v1 }
 0x3a8   :  { %v4753_v51 = vpop.eup %4752  ;;  %v1804_v23 = vmul.f32 %v4751_v38, %v1788_v19  ;;  %4772 = vrcp.f32 %v1756_v37 }
 0x3a9   :  { %v4755_v52 = vpop.eup %4754  ;;  %v1805_v11 = vmul.f32 %v4753_v51, %v1789_v41  ;;  %v6695_v2 = vadd.f32 %v6664_v36, %v1803_v47  ;;  %4774 = vrcp.f32 %v1757_v8  ;;  %v1794_v36 = vrot.slane %v6460_v14, 7 }
 0x3aa   :  { %v4757_v29 = vpop.eup %4756  ;;  %v1806_v55 = vmul.f32 %v4755_v52, %v1790_v32  ;;  %v6699_v27 = vadd.f32 %v6667_v49, %v1804_v23  ;;  %4776 = vrcp.f32 %v1758_v42 }
 0x3ab   :  { %v4759_v13 = vpop.eup %4758  ;;  %v6703_v1 = vadd.f32 %v6660_v58, %v1805_v11  ;;  %4778 = vrcp.f32 %v1759_v20  ;;  %v1807_v26 = vmul.f32 %v4757_v29, %v1791_v31 }
 0x3ac   :  { %v4761_v61 = vpop.eup %4760  ;;  %v1808_v37 = vmul.f32 %v4759_v13, %v1792_v18  ;;  %v6707_v63 = vadd.f32 %v6671_v48, %v1806_v55  ;;  %4780 = vtanh.f32 %v6695_v2 }
 0x3ad   :  { %v4763_v5 = vpop.eup %4762  ;;  %v1809_v49 = vmul.f32 %v4761_v61, %v1793_v10  ;;  %v6711_v57 = vadd.f32 %v6674_v54, %v1807_v26  ;;  %4782 = vtanh.f32 %v6699_v27 }
 0x3ae   :  { %v4765_v45 = vpop.eup %4764  ;;  %v1810_v58 = vmul.f32 %v4763_v5, %v1794_v36  ;;  %v6715_v8 = vadd.f32 %v6677_v46, %v1808_v37  ;;  %4784 = vtanh.f32 %v6703_v1 }
 0x3af   :  { %v4767_v14 = vpop.eup %4766  ;;  %v1760_v12 = vadd.f32 1.0, %v4765_v45  ;;  %v6719_v48 = vadd.f32 %v6680_v24, %v1809_v49  ;;  %4786 = vtanh.f32 %v6707_v63 }
 0x3b0   :  { %v4769_v19 = vpop.eup %4768  ;;  %v1761_v42 = vadd.f32 1.0, %v4767_v14  ;;  %v6723_v54 = vadd.f32 %v6683_v34, %v1810_v58  ;;  %4788 = vtanh.f32 %v6711_v57 }
 0x3b1   :  { %v4771_v38 = vpop.eup %4770  ;;  %v1762_v41 = vadd.f32 1.0, %v4769_v19  ;;  %4790 = vrcp.f32 %v1760_v12 }
 0x3b2   :  { %v4773_v46 = vpop.eup %4772  ;;  %4792 = vrcp.f32 %v1761_v42 }
 0x3b3   :  { %v4775_v47 = vpop.eup %4774  ;;  %4794 = vrcp.f32 %v1762_v41 }
 0x3b4   :  { %v4777_v20 = vpop.eup %4776  ;;  %4796 = vtanh.f32 %v6715_v8 }
 0x3b5   :  { %v4779_v24 = vpop.eup %4778  ;;  %4798 = vtanh.f32 %v6719_v48 }
 0x3b6   :  { %v4781_v51 = vpop.eup %4780  ;;  %4800 = vtanh.f32 %v6723_v54 }
 0x3b7   :  { %v4783_v34 = vpop.eup %4782  ;;  %v1835_v32 = vmul.f32 %v4781_v51, %v4771_v38 }
 0x3b8   :  { %v4785_v23 = vpop.eup %4784  ;;  %v1836_v52 = vmul.f32 %v4783_v34, %v4773_v46 }
 0x3b9   :  { %v4787_v31 = vpop.eup %4786  ;;  %v1837_v11 = vmul.f32 %v4785_v23, %v4775_v47  ;;  %1843 = vst [vmem:[%s7878_s4] sm:$0x4] %v1835_v32  ;;  %v1851_v29 = vpack.c.bf16 %v1835_v32, %v1835_v32 }
 0x3ba   :  { %v4789_v18 = vpop.eup %4788  ;;  %v1838_v55 = vmul.f32 %v4787_v31, %v4777_v20  ;;  %1844 = vst [vmem:[%s7878_s4 + $0x8] sm:$0x4] %v1836_v52  ;;  %v1852_v13 = vpack.c.bf16 %v1836_v52, %v1836_v52 }
 0x3bb   :  { %v4791_v10 = vpop.eup %4790  ;;  %v1839_v26 = vmul.f32 %v4789_v18, %v4779_v24  ;;  %1845 = vst [vmem:[%s7878_s4 + $0x10] sm:$0x4] %v1837_v11  ;;  %v1853_v61 = vpack.c.bf16 %v1837_v11, %v1837_v11  ;;  %v1867_v36 = vunpack.c.l.b16 %v1851_v29 }
 0x3bc   :  { %v4793_v37 = vpop.eup %4792  ;;  %1846 = vst [vmem:[%s7878_s4 + $0x18] sm:$0x4] %v1838_v55  ;;  %v1854_v5 = vpack.c.bf16 %v1838_v55, %v1838_v55  ;;  %v1868_v49 = vunpack.c.l.b16 %v1852_v13 }
 0x3bd   :  { %v4795_v45 = vpop.eup %4794  ;;  %1847 = vst [vmem:[%s7878_s4 + $0x20] sm:$0x4] %v1839_v26  ;;  %v1855_v58 = vpack.c.bf16 %v1839_v26, %v1839_v26  ;;  %v1875_v14 = vrot.slane %v1867_v36, 2  ;;  %v1869_v46 = vunpack.c.l.b16 %v1853_v61 }
 0x3be   :  { %v4797_v12 = vpop.eup %4796  ;;  %v1870_v19 = vunpack.c.l.b16 %v1854_v5  ;;  %v1876_v42 = vrot.slane %v1868_v49, 1 }
 0x3bf   :  { %v4799_v38 = vpop.eup %4798  ;;  %v1840_v41 = vmul.f32 %v4797_v12, %v4791_v10  ;;  %v1871_v47 = vunpack.c.l.b16 %v1855_v58  ;;  %v6769_v12 = vld [vmem:[%s7875_s2 + $0x8] ss:$16 sps:$4 sm:$0xff]  }
 0x3c0   :  { %v4801_v20 = vpop.eup %4800  ;;  %v1841_v24 = vmul.f32 %v4799_v38, %v4793_v37  ;;  %v1877_v51 = vsel %vm985_vm0, %v1876_v42, %v1875_v14  ;;  %v1879_v34 = vrot.slane %v1870_v19, 7  ;;  %v6763_v14 = vld [vmem:[%s7875_s2] ss:$16 sps:$4 sm:$0xff]   ;;  %v6775_v19 = vld [vmem:[%s7875_s2 + $0x24] ss:$16 sps:$4 sm:$0xff]  }
 0x3c1   :  { %v1842_v32 = vmul.f32 %v4801_v20, %v4795_v45  ;;  %1848 = vst [vmem:[%s7878_s4 + $0x28] sm:$0x4] %v1840_v41  ;;  %v1856_v23 = vpack.c.bf16 %v1840_v41, %v1840_v41  ;;  %v1878_v52 = vsel %vm988_vm1, %v1869_v46, %v1877_v51  ;;  %v1881_v31 = vrot.slane %v1871_v47, 6  ;;  %v6781_v42 = vld [vmem:[%s7875_s2 + $0x2c] ss:$16 sps:$4 sm:$0xff]  }
 0x3c2   :  { %1849 = vst [vmem:[%s7878_s4 + $0x30] sm:$0x4] %v1841_v24  ;;  %v1857_v11 = vpack.c.bf16 %v1841_v24, %v1841_v24  ;;  %v1880_v29 = vsel %vm991_vm2, %v1879_v34, %v1878_v52  ;;  %v6789_v38 = vld [vmem:[%s7875_s2 + $0x20] ss:$16 sps:$4 sm:$0xff]   ;;  %v6795_v41 = vld [vmem:[%s7875_s2 + $0x28] ss:$16 sps:$4 sm:$0xff]  }
 0x3c3   :  { %1850 = vst [vmem:[%s7878_s4 + $0x38] sm:$0x4] %v1842_v32  ;;  %v1858_v18 = vpack.c.bf16 %v1842_v32, %v1842_v32  ;;  %v1872_v55 = vunpack.c.l.b16 %v1856_v23  ;;  %v1882_v13 = vsel %vm994_vm3, %v1881_v31, %v1880_v29  ;;  %v6801_v46 = vld [vmem:[%s7875_s2 + $0x44] ss:$16 sps:$4 sm:$0xff]   ;;  %v6807_v47 = vld [vmem:[%s7875_s2 + $0x4c] ss:$16 sps:$4 sm:$0xff]  }
 0x3c4   :  { %v1873_v10 = vunpack.c.l.b16 %v1857_v11  ;;  %v6813_v20 = vld [vmem:[%s7875_s2 + $0x40] ss:$16 sps:$4 sm:$0xff]   ;;  %v6819_v24 = vld [vmem:[%s7875_s2 + $0x48] ss:$16 sps:$4 sm:$0xff]   ;;  %v6825_v51 = vld [vmem:[%s7875_s2 + $0x64] ss:$16 sps:$4 sm:$0xff]  }
 0x3c5   :  { %v1874_v26 = vunpack.c.l.b16 %v1858_v18  ;;  %v1883_v61 = vrot.slane %v1872_v55, 5  ;;  %v6831_v34 = vld [vmem:[%s7875_s2 + $0x6c] ss:$16 sps:$4 sm:$0xff]   ;;  %v6837_v32 = vld [vmem:[%s7875_s2 + $0x60] ss:$16 sps:$4 sm:$0xff]  }
 0x3c6   :  { %v1885_v36 = vrot.slane %v1873_v10, 4  ;;  %v6843_v23 = vld [vmem:[%s7875_s2 + $0x68] ss:$16 sps:$4 sm:$0xff]   ;;  %v8072_v52 = vld [vmem:[#allocation4_spill] sm:$0xff] }
 0x3c7   :  { %v1884_v37 = vsel %vm997_vm4, %v1883_v61, %v1882_v13  ;;  %v1887_v5 = vrot.slane %v1874_v26, 3  ;;  %v8073_v31 = vld [vmem:[#allocation5_spill] sm:$0xff] }
 0x3c8   :  { %v1886_v49 = vsel %vm1000_vm5, %v1885_v36, %v1884_v37 }
 0x3c9   :  { %v1888_v45 = vsel %vm1003_vm6, %v1887_v5, %v1886_v49 }
 0x3ca   :  { %v1889_v58 = vpack.c.b16 %v1888_v45, %v1888_v45 }
 0x3cc   :  { %1924 = vmatmul.mubr.bf16.vlgmr.msra.gmra.mrb[28].mxu0 %v1889_v58  ;;  %1965 = vmatmul.mubr.bf16.vlgmr.msra.gmra.mrb[28].mxu1 %v1889_v58 }
 0x3cd   :  { %2334 = vmatpush1.bf16.msra.mxu0 %v6763_v14  ;;  %2375 = vmatpush1.bf16.msra.mxu1 %v6769_v12 }
 0x3ce   :  { %2335 = vmatprep.subr.bf16.mxu0 %v6775_v19  ;;  %2376 = vmatprep.subr.bf16.mxu1 %v6781_v42 }
 0x3cf   :  { %2365 = vmatprep.mubr.bf16.mxu0 %v8042_v9  ;;  %2406 = vmatprep.mubr.bf16.mxu1 %v8042_v9 }
 0x3d1   :  { %2336 = vmatpush1.bf16.msra.mxu0 %v6789_v38  ;;  %2377 = vmatpush1.bf16.msra.mxu1 %v6795_v41 }
 0x3d2   :  { %2337 = vmatprep.subr.bf16.mxu0 %v6801_v46  ;;  %2378 = vmatprep.subr.bf16.mxu1 %v6807_v47 }
 0x3d5   :  { %2338 = vmatpush1.bf16.msra.mxu0 %v6813_v20  ;;  %2379 = vmatpush1.bf16.msra.mxu1 %v6819_v24 }
 0x3d6   :  { %2339 = vmatprep.subr.bf16.mxu0 %v6825_v51  ;;  %2380 = vmatprep.subr.bf16.mxu1 %v6831_v34 }
 0x3d9   :  { %2340 = vmatpush1.bf16.msra.mxu0 %v6837_v32  ;;  %2381 = vmatpush1.bf16.msra.mxu1 %v6843_v23 }
 0x3da   :  { %2341 = vmatprep.subr.bf16.mxu0 %v6516_v60  ;;  %2382 = vmatprep.subr.bf16.mxu1 %v6522_v25  ;;  %v8074_v60 = vld [vmem:[#allocation6_spill] sm:$0xff]  ;;  %v8075_v25 = vld [vmem:[#allocation7_spill] sm:$0xff] }
 0x3dd   :  { %2342 = vmatpush1.bf16.msra.mxu0 %v6528_v0  ;;  %2383 = vmatpush1.bf16.msra.mxu1 %v6534_v53  ;;  %v8076_v0 = vld [vmem:[#allocation8_spill] sm:$0xff]  ;;  %v8077_v53 = vld [vmem:[#allocation9_spill] sm:$0xff] }
 0x3de   :  { %2343 = vmatprep.subr.bf16.mxu0 %v6540_v33  ;;  %2384 = vmatprep.subr.bf16.mxu1 %v6546_v62  ;;  %v8078_v33 = vld [vmem:[#allocation10_spill] sm:$0xff] }
 0x3df   :  { %v6865_v62 = vld [vmem:[%s7875_s2 + $0x4] ss:$16 sps:$4 sm:$0xff]  }
 0x3e0   :  { %8079 = vst [vmem:[#allocation11_spill] sm:$0xff] %v6865_v62 }
 0x3e1   :  { %2344 = vmatpush1.bf16.msra.mxu0 %v6552_v17  ;;  %2385 = vmatpush1.bf16.msra.mxu1 %v6558_v15  ;;  %v6871_v17 = vld [vmem:[%s7875_s2 + $0xc] ss:$16 sps:$4 sm:$0xff]  }
 0x3e2   :  { %2345 = vmatprep.subr.bf16.mxu0 %v6564_v22  ;;  %2386 = vmatprep.subr.bf16.mxu1 %v8072_v52  ;;  %8080 = vst [vmem:[#allocation12_spill] sm:$0xff] %v6871_v17 }
 0x3e5   :  { %2346 = vmatpush1.bf16.msra.mxu0 %v8073_v31  ;;  %2387 = vmatpush1.bf16.msra.mxu1 %v8074_v60 }
 0x3e6   :  { %2347 = vmatprep.subr.bf16.mxu0 %v8075_v25  ;;  %2388 = vmatprep.subr.bf16.mxu1 %v8076_v0 }
 0x3e9   :  { %2348 = vmatpush1.bf16.msra.mxu0 %v8077_v53  ;;  %2389 = vmatpush1.bf16.msra.mxu1 %v8078_v33 }
 0x3ea   :  { %2775 = vmatprep.subr.bf16.mxu0 %v6865_v62  ;;  %2816 = vmatprep.subr.bf16.mxu1 %v6871_v17  ;;  %v8081_v17 = vld [vmem:[#allocation21_spill] sm:$0xff] }
 0x49f   :  { %v1925_v15 = vpop.f32.mrb[28].mxu0  ;;  %v6874_v22 = vpop.f32.mrb[28].mxu1 }
 0x4a0   :  { %v1977_v11 = vrot.slane %v1925_v15, 5  ;;  %v1981_v29 = vrot.slane %v1925_v15, 6  ;;  %v1985_v18 = vrot.slane %v1925_v15, 7  ;;  %v1989_v55 = vrot.slane %v1925_v15, 1  ;;  %v6876_v13 = vpop.f32.mrb[29].mxu0  ;;  %v6878_v10 = vpop.f32.mrb[29].mxu1 }
 0x4a1   :  { %v1993_v26 = vrot.slane %v1925_v15, 2  ;;  %v1997_v61 = vrot.slane %v1925_v15, 3  ;;  %v2001_v36 = vrot.slane %v1925_v15, 4  ;;  %v2049_v37 = vadd.f32 %v1925_v15, %v5985_v4  ;;  %v1929_v5 = vpop.f32.mrb[30].mxu0  ;;  %v1970_v49 = vpop.f32.mrb[30].mxu1 }
 0x4a2   :  { %v2037_v45 = vadd.f32 %v1977_v11, %v5979_v56  ;;  %v2041_v58 = vadd.f32 %v1981_v29, %v5981_v59  ;;  %v2045_v52 = vadd.f32 %v1985_v18, %v5983_v3  ;;  %v2053_v31 = vadd.f32 %v1989_v55, %v5987_v7  ;;  %v1930_v60 = vpop.f32.mrb[31].mxu0  ;;  %v1971_v25 = vpop.f32.mrb[31].mxu1 }
 0x4a3   :  { %v2057_v0 = vadd.f32 %v1993_v26, %v5989_v30  ;;  %v2061_v53 = vadd.f32 %v1997_v61, %v5991_v40  ;;  %v4204_v33 = vmul.f32 -1.442695, %v2049_v37  ;;  %v2065_v62 = vadd.f32 %v2001_v36, %v8081_v17  ;;  %v8082_v37 = vld [vmem:[#allocation22_spill] sm:$0xff]  ;;  %v8090_v17 = vld [vmem:[#allocation23_spill] sm:$0xff] }
 0x4a4   :  { %v4201_v15 = vmul.f32 -1.442695, %v2037_v45  ;;  %v4202_v5 = vmul.f32 -1.442695, %v2041_v58  ;;  %v4203_v49 = vmul.f32 -1.442695, %v2045_v52 }
 0x4a5   :  { %4802 = vpow2.f32 %v4204_v33  ;;  %v4205_v11 = vmul.f32 -1.442695, %v2053_v31  ;;  %v4206_v29 = vmul.f32 -1.442695, %v2057_v0  ;;  %v1979_v18 = vrot.slane %v6874_v22, 5  ;;  %v8083_v58 = vld [vmem:[#allocation24_spill] sm:$0xff] }
 0x4a6   :  { %4804 = vpow2.f32 %v4201_v15  ;;  %v1983_v55 = vrot.slane %v6874_v22, 6  ;;  %v4207_v60 = vmul.f32 -1.442695, %v2061_v53  ;;  %v1987_v26 = vrot.slane %v6874_v22, 7  ;;  %v8084_v31 = vld [vmem:[#allocation25_spill] sm:$0xff]  ;;  %v8085_v0 = vld [vmem:[#allocation28_spill] sm:$0xff] }
 0x4a7   :  { %4806 = vpow2.f32 %v4202_v5  ;;  %v4208_v61 = vmul.f32 -1.442695, %v2065_v62  ;;  %v1991_v36 = vrot.slane %v6874_v22, 1  ;;  %v2039_v45 = vadd.f32 %v1979_v18, %v8082_v37  ;;  %v8086_v53 = vld [vmem:[#allocation26_spill] sm:$0xff] }
 0x4a8   :  { %4808 = vpow2.f32 %v4203_v49  ;;  %v2043_v52 = vadd.f32 %v1983_v55, %v8083_v58  ;;  %v2047_v25 = vadd.f32 %v1987_v26, %v8084_v31  ;;  %v2051_v33 = vadd.f32 %v6874_v22, %v8085_v0 }
 0x4a9   :  { %4810 = vpow2.f32 %v4205_v11  ;;  %v2055_v15 = vadd.f32 %v1991_v36, %v8086_v53  ;;  %v1995_v5 = vrot.slane %v6874_v22, 2  ;;  %v1978_v26 = vrot.slane %v6876_v13, 5 }
 0x4aa   :  { %4812 = vpow2.f32 %v4206_v29  ;;  %v1999_v29 = vrot.slane %v6874_v22, 3  ;;  %v1986_v0 = vrot.slane %v6876_v13, 7 }
 0x4ab   :  { %4814 = vpow2.f32 %v4207_v60  ;;  %v2003_v60 = vrot.slane %v6874_v22, 4  ;;  %v2038_v40 = vadd.f32 %v1978_v26, %v8090_v17 }
 0x4ac   :  { %4816 = vpow2.f32 %v4208_v61 }
 0x4ad   :  { %4818 = vtanh.f32 %v2039_v45  ;;  %v1982_v45 = vrot.slane %v6876_v13, 6  ;;  %v4209_v17 = vmul.f32 -1.442695, %v2038_v40 }
 0x4ae   :  { %4820 = vtanh.f32 %v2043_v52 }
 0x4af   :  { %v4803_v62 = vpop.eup %4802  ;;  %4822 = vtanh.f32 %v2047_v25  ;;  %v8087_v25 = vld [vmem:[#allocation35_spill] sm:$0xff] }
 0x4b0   :  { %v4805_v49 = vpop.eup %4804  ;;  %v2096_v11 = vadd.f32 1.0, %v4803_v62  ;;  %4824 = vtanh.f32 %v2051_v33  ;;  %v2059_v62 = vadd.f32 %v1995_v5, %v8087_v25  ;;  %v1994_v5 = vrot.slane %v6876_v13, 2  ;;  %v8091_v25 = vld [vmem:[#allocation29_spill] sm:$0xff] }
 0x4b1   :  { %v4807_v18 = vpop.eup %4806  ;;  %v2093_v55 = vadd.f32 1.0, %v4805_v49  ;;  %4826 = vtanh.f32 %v2055_v15  ;;  %v8088_v49 = vld [vmem:[#allocation36_spill] sm:$0xff]  ;;  %v1990_v15 = vrot.slane %v6876_v13, 1  ;;  %v2042_v30 = vadd.f32 %v1982_v45, %v8091_v25 }
 0x4b2   :  { %v4809_v61 = vpop.eup %4808  ;;  %v2094_v36 = vadd.f32 1.0, %v4807_v18  ;;  %4828 = vrcp.f32 %v2096_v11  ;;  %v2063_v22 = vadd.f32 %v1999_v29, %v8088_v49  ;;  %v8089_v11 = vld [vmem:[#allocation39_spill] sm:$0xff]  ;;  %v1998_v29 = vrot.slane %v6876_v13, 3 }
 0x4b3   :  { %v4811_v52 = vpop.eup %4810  ;;  %v2095_v53 = vadd.f32 1.0, %v4809_v61  ;;  %4830 = vrcp.f32 %v2093_v55  ;;  %v2067_v18 = vadd.f32 %v2003_v60, %v8089_v11  ;;  %v8092_v49 = vld [vmem:[#allocation31_spill] sm:$0xff]  ;;  %v8093_v60 = vld [vmem:[#allocation33_spill] sm:$0xff]  ;;  %v1980_v45 = vrot.slane %v6878_v10, 5 }
 0x4b4   :  { %v4813_v33 = vpop.eup %4812  ;;  %v2097_v31 = vadd.f32 1.0, %v4811_v52  ;;  %4832 = vrcp.f32 %v2094_v36  ;;  %v2046_v4 = vadd.f32 %v1986_v0, %v8092_v49  ;;  %v2050_v26 = vadd.f32 %v6876_v13, %v8093_v60 }
 0x4b5   :  { %v4815_v58 = vpop.eup %4814  ;;  %v2098_v37 = vadd.f32 1.0, %v4813_v33  ;;  %4834 = vrcp.f32 %v2095_v53  ;;  %v2002_v53 = vrot.slane %v6876_v13, 4  ;;  %v4210_v3 = vmul.f32 -1.442695, %v2042_v30 }
 0x4b6   :  { %v4817_v61 = vpop.eup %4816  ;;  %v2099_v55 = vadd.f32 1.0, %v4815_v58  ;;  %4836 = vrcp.f32 %v2097_v31  ;;  %v8094_v58 = vld [vmem:[#allocation34_spill] sm:$0xff]  ;;  %v1984_v0 = vrot.slane %v6878_v10, 6  ;;  %v2062_v49 = vadd.f32 %v1998_v29, %v8070_v35 }
 0x4b7   :  { %v4819_v52 = vpop.eup %4818  ;;  %v2100_v36 = vadd.f32 1.0, %v4817_v61  ;;  %4838 = vrcp.f32 %v2098_v37  ;;  %v2054_v31 = vadd.f32 %v1990_v15, %v8094_v58  ;;  %v8095_v37 = vld [vmem:[#allocation37_spill] sm:$0xff]  ;;  %v4211_v59 = vmul.f32 -1.442695, %v2046_v4 }
 0x4b8   :  { %v4821_v33 = vpop.eup %4820  ;;  %4840 = vrcp.f32 %v2099_v55  ;;  %v2058_v25 = vadd.f32 %v1994_v5, %v8095_v37  ;;  %v1988_v13 = vrot.slane %v6878_v10, 7  ;;  %v2066_v40 = vadd.f32 %v2002_v53, %v8040_v16 }
 0x4b9   :  { %v4823_v11 = vpop.eup %4822  ;;  %4842 = vrcp.f32 %v2100_v36  ;;  %v4212_v36 = vmul.f32 -1.442695, %v2050_v26  ;;  %v4213_v58 = vmul.f32 -1.442695, %v2054_v31  ;;  %v1992_v30 = vrot.slane %v6878_v10, 1  ;;  %v8096_v26 = vld [vmem:[#allocation32_spill] sm:$0xff] }
 0x4ba   :  { %v4825_v61 = vpop.eup %4824  ;;  %4844 = vtanh.f32 %v2059_v62  ;;  %v2040_v5 = vadd.f32 %v1980_v45, %v8041_v6  ;;  %v4214_v4 = vmul.f32 -1.442695, %v2058_v25  ;;  %v2044_v29 = vadd.f32 %v1984_v0, %v8071_v44 }
 0x4bb   :  { %v4827_v55 = vpop.eup %4826  ;;  %4846 = vtanh.f32 %v2063_v22  ;;  %v4215_v53 = vmul.f32 -1.442695, %v2062_v49  ;;  %v2048_v31 = vadd.f32 %v1988_v13, %v8096_v26  ;;  %v2056_v25 = vadd.f32 %v1992_v30, %v6084_v50 }
 0x4bc   :  { %v4829_v15 = vpop.eup %4828  ;;  %4848 = vtanh.f32 %v2067_v18 }
 0x4bd   :  { %v4831_v60 = vpop.eup %4830  ;;  %v6923_v62 = vmul.f32 %v4829_v15, %v4825_v61  ;;  %4850 = vpow2.f32 %v4209_v17  ;;  %v4216_v15 = vmul.f32 -1.442695, %v2066_v40  ;;  %v4219_v0 = vmul.f32 -1.442695, %v2048_v31 }
 0x4be   :  { %v4833_v22 = vpop.eup %4832  ;;  %v6927_v37 = vmul.f32 %v4831_v60, %v4819_v52  ;;  %4852 = vpow2.f32 %v4210_v3  ;;  %v2052_v52 = vadd.f32 %v6878_v10, %v6070_v21  ;;  %v2004_v31 = vrot.slane %v6878_v10, 4 }
 0x4bf   :  { %v4835_v18 = vpop.eup %4834  ;;  %v6930_v35 = vmul.f32 %v4833_v22, %v4821_v33  ;;  %4854 = vpow2.f32 %v4211_v59  ;;  %v4217_v33 = vmul.f32 -1.442695, %v2040_v5  ;;  %v4218_v59 = vmul.f32 -1.442695, %v2044_v29 }
 0x4c0   :  { %v4837_v61 = vpop.eup %4836  ;;  %v6933_v17 = vmul.f32 %v4835_v18, %v4823_v11  ;;  %4856 = vpow2.f32 %v4212_v36  ;;  %v4220_v13 = vmul.f32 -1.442695, %v2052_v52  ;;  %v4221_v22 = vmul.f32 -1.442695, %v2056_v25 }
 0x4c1   :  { %v4839_v60 = vpop.eup %4838  ;;  %v6937_v3 = vmul.f32 %v4837_v61, %v4827_v55  ;;  %4858 = vpow2.f32 %v4213_v58  ;;  %v1996_v58 = vrot.slane %v6878_v10, 2 }
 0x4c2   :  { %v4841_v45 = vpop.eup %4840  ;;  %4860 = vpow2.f32 %v4214_v4  ;;  %v2000_v4 = vrot.slane %v6878_v10, 3 }
 0x4c3   :  { %v4843_v49 = vpop.eup %4842  ;;  %4862 = vpow2.f32 %v4215_v53  ;;  %v2060_v25 = vadd.f32 %v1996_v58, %v6151_v28 }
 0x4c4   :  { %v4845_v11 = vpop.eup %4844  ;;  %4864 = vpow2.f32 %v4216_v15 }
 0x4c5   :  { %v4847_v40 = vpop.eup %4846  ;;  %v6940_v36 = vmul.f32 %v4845_v11, %v4839_v60  ;;  %4866 = vpow2.f32 %v4217_v33  ;;  %v2068_v11 = vadd.f32 %v2004_v31, %v6165_v39 }
 0x4c6   :  { %v4849_v55 = vpop.eup %4848  ;;  %4868 = vpow2.f32 %v4218_v59  ;;  %v6943_v30 = vmul.f32 %v4847_v40, %v4841_v45  ;;  %v2064_v59 = vadd.f32 %v2000_v4, %v6158_v43 }
 0x4c7   :  { %v4851_v5 = vpop.eup %4850  ;;  %4870 = vpow2.f32 %v4219_v0  ;;  %v6946_v29 = vmul.f32 %v4849_v55, %v4843_v49  ;;  %v4222_v55 = vmul.f32 -1.442695, %v2060_v25  ;;  %v2230_v25 = vrot.slane %v6699_v27, 7 }
 0x4c8   :  { %v4853_v18 = vpop.eup %4852  ;;  %v2141_v53 = vadd.f32 1.0, %v4851_v5  ;;  %4872 = vpow2.f32 %v4220_v13  ;;  %v4223_v58 = vmul.f32 -1.442695, %v2064_v59 }
 0x4c9   :  { %v4855_v61 = vpop.eup %4854  ;;  %v2142_v15 = vadd.f32 1.0, %v4853_v18  ;;  %4874 = vpow2.f32 %v4221_v22 }
 0x4ca   :  { %v4857_v52 = vpop.eup %4856  ;;  %v2143_v60 = vadd.f32 1.0, %v4855_v61  ;;  %4876 = vrcp.f32 %v2141_v53  ;;  %v4224_v61 = vmul.f32 -1.442695, %v2068_v11 }
 0x4cb   :  { %v4859_v33 = vpop.eup %4858  ;;  %v2144_v45 = vadd.f32 1.0, %v4857_v52  ;;  %4878 = vrcp.f32 %v2142_v15 }
 0x4cc   :  { %v4861_v49 = vpop.eup %4860  ;;  %v2145_v0 = vadd.f32 1.0, %v4859_v33  ;;  %4880 = vrcp.f32 %v2143_v60  ;;  %v2229_v33 = vrot.slane %v6695_v2, 7  ;;  %v2233_v2 = vrot.slane %v6711_v57, 7 }
 0x4cd   :  { %v4863_v10 = vpop.eup %4862  ;;  %v2146_v13 = vadd.f32 1.0, %v4861_v49  ;;  %4882 = vrcp.f32 %v2144_v45 }
 0x4ce   :  { %v4865_v40 = vpop.eup %4864  ;;  %v2147_v22 = vadd.f32 1.0, %v4863_v10  ;;  %4884 = vrcp.f32 %v2145_v0  ;;  %v2231_v10 = vrot.slane %v6703_v1, 7 }
 0x4cf   :  { %v4867_v5 = vpop.eup %4866  ;;  %v2148_v18 = vadd.f32 1.0, %v4865_v40  ;;  %4886 = vrcp.f32 %v2146_v13 }
 0x4d0   :  { %v4869_v53 = vpop.eup %4868  ;;  %4888 = vrcp.f32 %v2147_v22  ;;  %v2197_v15 = vadd.f32 1.0, %v4867_v5  ;;  %v2232_v22 = vrot.slane %v6707_v63, 7  ;;  %v2235_v63 = vrot.slane %v6719_v48, 7 }
 0x4d1   :  { %v4871_v4 = vpop.eup %4870  ;;  %4890 = vrcp.f32 %v2148_v18  ;;  %v2198_v31 = vadd.f32 1.0, %v4869_v53  ;;  %v2234_v53 = vrot.slane %v6715_v8, 7 }
 0x4d2   :  { %v4873_v52 = vpop.eup %4872  ;;  %4892 = vpow2.f32 %v4222_v55  ;;  %v2199_v45 = vadd.f32 1.0, %v4871_v4 }
 0x4d3   :  { %v4875_v60 = vpop.eup %4874  ;;  %4894 = vpow2.f32 %v4223_v58  ;;  %v2200_v0 = vadd.f32 1.0, %v4873_v52 }
 0x4d4   :  { %v4877_v49 = vpop.eup %4876  ;;  %4896 = vpow2.f32 %v4224_v61  ;;  %v2201_v13 = vadd.f32 1.0, %v4875_v60 }
 0x4d5   :  { %v4879_v59 = vpop.eup %4878  ;;  %v2245_v11 = vmul.f32 %v4877_v49, %v2229_v33  ;;  %4898 = vrcp.f32 %v2197_v15 }
 0x4d6   :  { %v4881_v40 = vpop.eup %4880  ;;  %v2246_v55 = vmul.f32 %v4879_v59, %v2230_v25  ;;  %4900 = vrcp.f32 %v2198_v31 }
 0x4d7   :  { %v4883_v5 = vpop.eup %4882  ;;  %v2247_v18 = vmul.f32 %v4881_v40, %v2231_v10  ;;  %v6958_v58 = vadd.f32 %v6927_v37, %v2245_v11  ;;  %4902 = vrcp.f32 %v2199_v45  ;;  %v2236_v37 = vrot.slane %v6723_v54, 7 }
 0x4d8   :  { %v4885_v27 = vpop.eup %4884  ;;  %v2248_v1 = vmul.f32 %v4883_v5, %v2232_v22  ;;  %v6962_v61 = vadd.f32 %v6930_v35, %v2246_v55  ;;  %4904 = vrcp.f32 %v2200_v0 }
 0x4d9   :  { %v4887_v4 = vpop.eup %4886  ;;  %v6966_v15 = vadd.f32 %v6933_v17, %v2247_v18  ;;  %4906 = vrcp.f32 %v2201_v13  ;;  %v2249_v57 = vmul.f32 %v4885_v27, %v2233_v2 }
 0x4da   :  { %v4889_v52 = vpop.eup %4888  ;;  %v2250_v31 = vmul.f32 %v4887_v4, %v2234_v53  ;;  %v6970_v60 = vadd.f32 %v6923_v62, %v2248_v1  ;;  %4908 = vtanh.f32 %v6958_v58 }
 0x4db   :  { %v4891_v35 = vpop.eup %4890  ;;  %v2251_v8 = vmul.f32 %v4889_v52, %v2235_v63  ;;  %v6974_v33 = vadd.f32 %v6937_v3, %v2249_v57  ;;  %4910 = vtanh.f32 %v6962_v61 }
 0x4dc   :  { %v4893_v48 = vpop.eup %4892  ;;  %v2252_v17 = vmul.f32 %v4891_v35, %v2236_v37  ;;  %v6978_v45 = vadd.f32 %v6940_v36, %v2250_v31  ;;  %4912 = vtanh.f32 %v6966_v15 }
 0x4dd   :  { %v4895_v54 = vpop.eup %4894  ;;  %v2202_v49 = vadd.f32 1.0, %v4893_v48  ;;  %v6982_v62 = vadd.f32 %v6943_v30, %v2251_v8  ;;  %4914 = vtanh.f32 %v6970_v60 }
 0x4de   :  { %v4897_v25 = vpop.eup %4896  ;;  %v2203_v0 = vadd.f32 1.0, %v4895_v54  ;;  %v6986_v3 = vadd.f32 %v6946_v29, %v2252_v17  ;;  %4916 = vtanh.f32 %v6974_v33 }
 0x4df   :  { %v4899_v59 = vpop.eup %4898  ;;  %v2204_v10 = vadd.f32 1.0, %v4897_v25  ;;  %4918 = vrcp.f32 %v2202_v49 }
 0x4e0   :  { %v4901_v36 = vpop.eup %4900  ;;  %4920 = vrcp.f32 %v2203_v0 }
 0x4e1   :  { %v4903_v11 = vpop.eup %4902  ;;  %4922 = vrcp.f32 %v2204_v10 }
 0x4e2   :  { %v4905_v13 = vpop.eup %4904  ;;  %4924 = vtanh.f32 %v6978_v45 }
 0x4e3   :  { %v4907_v30 = vpop.eup %4906  ;;  %4926 = vtanh.f32 %v6982_v62 }
 0x4e4   :  { %v4909_v40 = vpop.eup %4908  ;;  %4928 = vtanh.f32 %v6986_v3 }
 0x4e5   :  { %v4911_v29 = vpop.eup %4910  ;;  %v2277_v22 = vmul.f32 %v4909_v40, %v4899_v59 }
 0x4e6   :  { %v4913_v55 = vpop.eup %4912  ;;  %v2278_v5 = vmul.f32 %v4911_v29, %v4901_v36 }
 0x4e7   :  { %v4915_v2 = vpop.eup %4914  ;;  %v2279_v18 = vmul.f32 %v4913_v55, %v4903_v11  ;;  %2285 = vst [vmem:[%s7878_s4] sm:$0x8] %v2277_v22  ;;  %v2293_v27 = vpack.c.bf16 %v2277_v22, %v2277_v22 }
 0x4e8   :  { %v4917_v53 = vpop.eup %4916  ;;  %v2280_v1 = vmul.f32 %v4915_v2, %v4905_v13  ;;  %2286 = vst [vmem:[%s7878_s4 + $0x8] sm:$0x8] %v2278_v5  ;;  %v2294_v4 = vpack.c.bf16 %v2278_v5, %v2278_v5 }
 0x4e9   :  { %v4919_v63 = vpop.eup %4918  ;;  %v2281_v57 = vmul.f32 %v4917_v53, %v4907_v30  ;;  %2287 = vst [vmem:[%s7878_s4 + $0x10] sm:$0x8] %v2279_v18  ;;  %v2295_v52 = vpack.c.bf16 %v2279_v18, %v2279_v18  ;;  %v2309_v37 = vunpack.c.l.b16 %v2293_v27 }
 0x4ea   :  { %v4921_v31 = vpop.eup %4920  ;;  %2288 = vst [vmem:[%s7878_s4 + $0x18] sm:$0x8] %v2280_v1  ;;  %v2296_v35 = vpack.c.bf16 %v2280_v1, %v2280_v1  ;;  %v2310_v8 = vunpack.c.l.b16 %v2294_v4 }
 0x4eb   :  { %v4923_v48 = vpop.eup %4922  ;;  %2289 = vst [vmem:[%s7878_s4 + $0x20] sm:$0x8] %v2281_v57  ;;  %v2297_v17 = vpack.c.bf16 %v2281_v57, %v2281_v57  ;;  %v2311_v54 = vunpack.c.l.b16 %v2295_v52  ;;  %v2317_v49 = vrot.slane %v2309_v37, 3 }
 0x4ec   :  { %v4925_v25 = vpop.eup %4924  ;;  %v2318_v0 = vrot.slane %v2310_v8, 2  ;;  %v2312_v40 = vunpack.c.l.b16 %v2296_v35 }
 0x4ed   :  { %v4927_v59 = vpop.eup %4926  ;;  %v2282_v10 = vmul.f32 %v4925_v25, %v4919_v63  ;;  %v2313_v36 = vunpack.c.l.b16 %v2297_v17  ;;  %v2320_v11 = vrot.slane %v2311_v54, 1  ;;  %v7126_v54 = vld [vmem:[%s7875_s2 + $0xe0] ss:$16 sps:$4 sm:$0xff]   ;;  %v8099_v25 = vld [vmem:[#allocation11_spill] sm:$0xff] }
 0x4ee   :  { %v4929_v13 = vpop.eup %4928  ;;  %v2283_v30 = vmul.f32 %v4927_v59, %v4921_v31  ;;  %v2319_v29 = vsel %vm985_vm0, %v2318_v0, %v2317_v49  ;;  %8097 = vst [vmem:[#allocation13_spill] sm:$0xff] %v7126_v54  ;;  %v7132_v49 = vld [vmem:[%s7875_s2 + $0xe8] ss:$16 sps:$4 sm:$0xff]   ;;  %v8100_v0 = vld [vmem:[#allocation12_spill] sm:$0xff] }
 0x4ef   :  { %v2284_v22 = vmul.f32 %v4929_v13, %v4923_v48  ;;  %2290 = vst [vmem:[%s7878_s4 + $0x28] sm:$0x8] %v2282_v10  ;;  %v2298_v55 = vpack.c.bf16 %v2282_v10, %v2282_v10  ;;  %v2321_v5 = vsel %vm988_vm1, %v2320_v11, %v2319_v29  ;;  %v2323_v2 = vrot.slane %v2313_v36, 7  ;;  %8098 = vst [vmem:[#allocation27_spill] sm:$0xff] %v7132_v49 }
 0x4f0   :  { %2291 = vst [vmem:[%s7878_s4 + $0x30] sm:$0x8] %v2283_v30  ;;  %v2299_v18 = vpack.c.bf16 %v2283_v30, %v2283_v30  ;;  %v2322_v27 = vsel %vm991_vm2, %v2312_v40, %v2321_v5 }
 0x4f1   :  { %2292 = vst [vmem:[%s7878_s4 + $0x38] sm:$0x8] %v2284_v22  ;;  %v2300_v53 = vpack.c.bf16 %v2284_v22, %v2284_v22  ;;  %v2314_v1 = vunpack.c.l.b16 %v2298_v55  ;;  %v2324_v4 = vsel %vm994_vm3, %v2323_v2, %v2322_v27 }
 0x4f2   :  { %v2315_v63 = vunpack.c.l.b16 %v2299_v18 }
 0x4f3   :  { %v2316_v57 = vunpack.c.l.b16 %v2300_v53  ;;  %v2325_v52 = vrot.slane %v2314_v1, 6  ;;  %v8101_v1 = vld [vmem:[#allocation15_spill] sm:$0xff] }
 0x4f4   :  { %v2327_v37 = vrot.slane %v2315_v63, 5  ;;  %v8102_v63 = vld [vmem:[#allocation16_spill] sm:$0xff] }
 0x4f5   :  { %v2326_v31 = vsel %vm997_vm4, %v2325_v52, %v2324_v4  ;;  %v2329_v35 = vrot.slane %v2316_v57, 4  ;;  %v8103_v52 = vld [vmem:[#allocation17_spill] sm:$0xff] }
 0x4f6   :  { %v2328_v8 = vsel %vm1000_vm5, %v2327_v37, %v2326_v31 }
 0x4f7   :  { %v2330_v48 = vsel %vm1003_vm6, %v2329_v35, %v2328_v8  ;;  %v8104_v8 = vld [vmem:[#allocation19_spill] sm:$0xff] }
 0x4f8   :  { %v2331_v17 = vpack.c.b16 %v2330_v48, %v2330_v48 }
 0x4fa   :  { %2366 = vmatmul.mubr.bf16.vlgmr.msra.gmra.mrb[32].mxu0 %v2331_v17  ;;  %2407 = vmatmul.mubr.bf16.vlgmr.msra.gmra.mrb[32].mxu1 %v2331_v17  ;;  %v8105_v17 = vld [vmem:[#allocation20_spill] sm:$0xff] }
 0x4fb   :  { %2776 = vmatpush1.bf16.msra.mxu0 %v6763_v14  ;;  %2817 = vmatpush1.bf16.msra.mxu1 %v6769_v12  ;;  %v7042_v14 = vld [vmem:[%s7875_s2 + $0x84] ss:$16 sps:$4 sm:$0xff]   ;;  %v7048_v12 = vld [vmem:[%s7875_s2 + $0x8c] ss:$16 sps:$4 sm:$0xff]  }
 0x4fc   :  { %2777 = vmatprep.subr.bf16.mxu0 %v6775_v19  ;;  %2818 = vmatprep.subr.bf16.mxu1 %v6781_v42  ;;  %v7054_v19 = vld [vmem:[%s7875_s2 + $0x80] ss:$16 sps:$4 sm:$0xff]   ;;  %v7060_v42 = vld [vmem:[%s7875_s2 + $0x88] ss:$16 sps:$4 sm:$0xff]  }
 0x4fd   :  { %2807 = vmatprep.mubr.bf16.mxu0 %v8042_v9  ;;  %2848 = vmatprep.mubr.bf16.mxu1 %v8042_v9 }
 0x4ff   :  { %2778 = vmatpush1.bf16.msra.mxu0 %v6789_v38  ;;  %2819 = vmatpush1.bf16.msra.mxu1 %v6795_v41  ;;  %v7066_v38 = vld [vmem:[%s7875_s2 + $0xa4] ss:$16 sps:$4 sm:$0xff]   ;;  %v7072_v41 = vld [vmem:[%s7875_s2 + $0xac] ss:$16 sps:$4 sm:$0xff]  }
 0x500   :  { %2779 = vmatprep.subr.bf16.mxu0 %v6801_v46  ;;  %2820 = vmatprep.subr.bf16.mxu1 %v6807_v47  ;;  %v7078_v46 = vld [vmem:[%s7875_s2 + $0xa0] ss:$16 sps:$4 sm:$0xff]   ;;  %v7084_v47 = vld [vmem:[%s7875_s2 + $0xa8] ss:$16 sps:$4 sm:$0xff]  }
 0x503   :  { %2780 = vmatpush1.bf16.msra.mxu0 %v6813_v20  ;;  %2821 = vmatpush1.bf16.msra.mxu1 %v6819_v24  ;;  %v7090_v20 = vld [vmem:[%s7875_s2 + $0xc4] ss:$16 sps:$4 sm:$0xff]   ;;  %v7096_v24 = vld [vmem:[%s7875_s2 + $0xcc] ss:$16 sps:$4 sm:$0xff]  }
 0x504   :  { %2781 = vmatprep.subr.bf16.mxu0 %v6825_v51  ;;  %2822 = vmatprep.subr.bf16.mxu1 %v6831_v34  ;;  %v7102_v51 = vld [vmem:[%s7875_s2 + $0xc0] ss:$16 sps:$4 sm:$0xff]   ;;  %v7108_v34 = vld [vmem:[%s7875_s2 + $0xc8] ss:$16 sps:$4 sm:$0xff]  }
 0x507   :  { %2782 = vmatpush1.bf16.msra.mxu0 %v6837_v32  ;;  %2823 = vmatpush1.bf16.msra.mxu1 %v6843_v23  ;;  %v7114_v32 = vld [vmem:[%s7875_s2 + $0xe4] ss:$16 sps:$4 sm:$0xff]   ;;  %v7120_v23 = vld [vmem:[%s7875_s2 + $0xec] ss:$16 sps:$4 sm:$0xff]  }
 0x508   :  { %2783 = vmatprep.subr.bf16.mxu0 %v7042_v14  ;;  %2824 = vmatprep.subr.bf16.mxu1 %v7048_v12 }
 0x50b   :  { %2784 = vmatpush1.bf16.msra.mxu0 %v7054_v19  ;;  %2825 = vmatpush1.bf16.msra.mxu1 %v7060_v42 }
 0x50c   :  { %2785 = vmatprep.subr.bf16.mxu0 %v7066_v38  ;;  %2826 = vmatprep.subr.bf16.mxu1 %v7072_v41 }
 0x50f   :  { %2786 = vmatpush1.bf16.msra.mxu0 %v7078_v46  ;;  %2827 = vmatpush1.bf16.msra.mxu1 %v7084_v47 }
 0x510   :  { %2787 = vmatprep.subr.bf16.mxu0 %v7090_v20  ;;  %2828 = vmatprep.subr.bf16.mxu1 %v7096_v24 }
 0x513   :  { %2788 = vmatpush1.bf16.msra.mxu0 %v7102_v51  ;;  %2829 = vmatpush1.bf16.msra.mxu1 %v7108_v34 }
 0x514   :  { %2789 = vmatprep.subr.bf16.mxu0 %v7114_v32  ;;  %2830 = vmatprep.subr.bf16.mxu1 %v7120_v23 }
 0x517   :  { %2790 = vmatpush1.bf16.msra.mxu0 %v7126_v54  ;;  %2831 = vmatpush1.bf16.msra.mxu1 %v7132_v49  ;;  %v8106_v49 = vld [vmem:[#allocation21_spill] sm:$0xff] }
 0x518   :  { %3217 = vmatprep.subr.bf16.mxu0 %v8099_v25  ;;  %3258 = vmatprep.subr.bf16.mxu1 %v8100_v0 }
 0x5cd   :  { %v2367_v59 = vpop.f32.mrb[32].mxu0  ;;  %v7137_v10 = vpop.f32.mrb[32].mxu1 }
 0x5ce   :  { %v2419_v36 = vrot.slane %v2367_v59, 4  ;;  %v2423_v11 = vrot.slane %v2367_v59, 5  ;;  %v2427_v13 = vrot.slane %v2367_v59, 6  ;;  %v2431_v30 = vrot.slane %v2367_v59, 7  ;;  %v7139_v40 = vpop.f32.mrb[33].mxu0  ;;  %v7141_v29 = vpop.f32.mrb[33].mxu1 }
 0x5cf   :  { %v2435_v22 = vrot.slane %v2367_v59, 1  ;;  %v2439_v55 = vrot.slane %v2367_v59, 2  ;;  %v2443_v5 = vrot.slane %v2367_v59, 3  ;;  %v2495_v2 = vadd.f32 %v2367_v59, %v5987_v7  ;;  %v2371_v18 = vpop.f32.mrb[34].mxu0  ;;  %v2412_v27 = vpop.f32.mrb[34].mxu1 }
 0x5d0   :  { %v2479_v53 = vadd.f32 %v2419_v36, %v5979_v56  ;;  %v2483_v4 = vadd.f32 %v2423_v11, %v8101_v1  ;;  %v2487_v57 = vadd.f32 %v2427_v13, %v8102_v63  ;;  %v2491_v37 = vadd.f32 %v2431_v30, %v8103_v52  ;;  %v2372_v31 = vpop.f32.mrb[35].mxu0  ;;  %v2413_v35 = vpop.f32.mrb[35].mxu1  ;;  %v8120_v63 = vld [vmem:[#allocation37_spill] sm:$0xff] }
 0x5d1   :  { %v2499_v48 = vadd.f32 %v2435_v22, %v8104_v8  ;;  %v2503_v25 = vadd.f32 %v2439_v55, %v8105_v17  ;;  %v4229_v0 = vmul.f32 -1.442695, %v2495_v2  ;;  %v2507_v54 = vadd.f32 %v2443_v5, %v8106_v49  ;;  %v8107_v5 = vld [vmem:[#allocation22_spill] sm:$0xff]  ;;  %v8110_v35 = vld [vmem:[#allocation28_spill] sm:$0xff]  ;;  %v8115_v49 = vld [vmem:[#allocation29_spill] sm:$0xff] }
 0x5d2   :  { %v4225_v59 = vmul.f32 -1.442695, %v2479_v53  ;;  %v4226_v18 = vmul.f32 -1.442695, %v2483_v4  ;;  %v4227_v27 = vmul.f32 -1.442695, %v2487_v57 }
 0x5d3   :  { %v4228_v7 = vmul.f32 -1.442695, %v2491_v37  ;;  %4930 = vpow2.f32 %v4229_v0  ;;  %v4230_v36 = vmul.f32 -1.442695, %v2499_v48  ;;  %v2421_v11 = vrot.slane %v7137_v10, 4  ;;  %v8108_v4 = vld [vmem:[#allocation24_spill] sm:$0xff] }
 0x5d4   :  { %4932 = vpow2.f32 %v4225_v59  ;;  %v2425_v13 = vrot.slane %v7137_v10, 5  ;;  %v4231_v30 = vmul.f32 -1.442695, %v2503_v25  ;;  %v2429_v22 = vrot.slane %v7137_v10, 6  ;;  %v8109_v37 = vld [vmem:[#allocation25_spill] sm:$0xff]  ;;  %v8111_v0 = vld [vmem:[#allocation26_spill] sm:$0xff] }
 0x5d5   :  { %4934 = vpow2.f32 %v4226_v18  ;;  %v4232_v55 = vmul.f32 -1.442695, %v2507_v54  ;;  %v2433_v2 = vrot.slane %v7137_v10, 7  ;;  %v2481_v53 = vadd.f32 %v2421_v11, %v8107_v5 }
 0x5d6   :  { %4936 = vpow2.f32 %v4227_v27  ;;  %v2485_v57 = vadd.f32 %v2425_v13, %v8108_v4  ;;  %v2489_v31 = vadd.f32 %v2429_v22, %v8109_v37  ;;  %v2497_v25 = vadd.f32 %v7137_v10, %v8111_v0  ;;  %v8114_v4 = vld [vmem:[#allocation23_spill] sm:$0xff] }
 0x5d7   :  { %4938 = vpow2.f32 %v4228_v7  ;;  %v2493_v48 = vadd.f32 %v2433_v2, %v8110_v35  ;;  %v2437_v18 = vrot.slane %v7137_v10, 1  ;;  %v2441_v11 = vrot.slane %v7137_v10, 2 }
 0x5d8   :  { %4940 = vpow2.f32 %v4230_v36  ;;  %v2420_v13 = vrot.slane %v7139_v40, 4 }
 0x5d9   :  { %4942 = vpow2.f32 %v4231_v30 }
 0x5da   :  { %4944 = vpow2.f32 %v4232_v55  ;;  %v2424_v55 = vrot.slane %v7139_v40, 5  ;;  %v2480_v5 = vadd.f32 %v2420_v13, %v8114_v4  ;;  %v2444_v13 = vrot.slane %v7139_v40, 3  ;;  %v8119_v4 = vld [vmem:[#allocation34_spill] sm:$0xff] }
 0x5db   :  { %4946 = vtanh.f32 %v2481_v53 }
 0x5dc   :  { %4948 = vtanh.f32 %v2485_v57  ;;  %v2445_v57 = vrot.slane %v7137_v10, 3  ;;  %v2436_v10 = vrot.slane %v7139_v40, 1  ;;  %v2484_v17 = vadd.f32 %v2424_v55, %v8115_v49 }
 0x5dd   :  { %v4931_v54 = vpop.eup %4930  ;;  %4950 = vtanh.f32 %v2489_v31  ;;  %v2428_v31 = vrot.slane %v7139_v40, 6  ;;  %v2496_v55 = vadd.f32 %v7139_v40, %v8119_v4  ;;  %v4233_v49 = vmul.f32 -1.442695, %v2480_v5 }
 0x5de   :  { %v4933_v59 = vpop.eup %4932  ;;  %v2539_v7 = vadd.f32 1.0, %v4931_v54  ;;  %4952 = vtanh.f32 %v2493_v48  ;;  %v2434_v4 = vrot.slane %v7141_v29, 7 }
 0x5df   :  { %v4935_v27 = vpop.eup %4934  ;;  %v2535_v36 = vadd.f32 1.0, %v4933_v59  ;;  %4954 = vtanh.f32 %v2497_v25  ;;  %v8112_v59 = vld [vmem:[#allocation35_spill] sm:$0xff]  ;;  %v2432_v25 = vrot.slane %v7139_v40, 7 }
 0x5e0   :  { %v4937_v30 = vpop.eup %4936  ;;  %v2536_v22 = vadd.f32 1.0, %v4935_v27  ;;  %4956 = vrcp.f32 %v2539_v7  ;;  %v2501_v0 = vadd.f32 %v2437_v18, %v8112_v59  ;;  %v8113_v7 = vld [vmem:[#allocation36_spill] sm:$0xff]  ;;  %v2440_v18 = vrot.slane %v7139_v40, 2  ;;  %v8116_v59 = vld [vmem:[#allocation31_spill] sm:$0xff] }
 0x5e1   :  { %v4939_v2 = vpop.eup %4938  ;;  %v2537_v53 = vadd.f32 1.0, %v4937_v30  ;;  %4958 = vrcp.f32 %v2535_v36  ;;  %v2505_v27 = vadd.f32 %v2441_v11, %v8113_v7  ;;  %v2488_v52 = vadd.f32 %v2428_v31, %v8116_v59  ;;  %v8118_v7 = vld [vmem:[#allocation33_spill] sm:$0xff] }
 0x5e2   :  { %v4941_v48 = vpop.eup %4940  ;;  %v2538_v54 = vadd.f32 1.0, %v4939_v2  ;;  %4960 = vrcp.f32 %v2536_v22  ;;  %v2500_v31 = vadd.f32 %v2436_v10, %v8120_v63  ;;  %v4234_v59 = vmul.f32 -1.442695, %v2484_v17 }
 0x5e3   :  { %v4943_v35 = vpop.eup %4942  ;;  %v2540_v37 = vadd.f32 1.0, %v4941_v48  ;;  %4962 = vrcp.f32 %v2537_v53  ;;  %v8117_v53 = vld [vmem:[#allocation39_spill] sm:$0xff]  ;;  %v2508_v40 = vadd.f32 %v2444_v13, %v8040_v16  ;;  %v4237_v17 = vmul.f32 -1.442695, %v2496_v55 }
 0x5e4   :  { %v4945_v30 = vpop.eup %4944  ;;  %v2541_v36 = vadd.f32 1.0, %v4943_v35  ;;  %4964 = vrcp.f32 %v2538_v54  ;;  %v2509_v11 = vadd.f32 %v2445_v57, %v8117_v53  ;;  %v2492_v35 = vadd.f32 %v2432_v25, %v8118_v7  ;;  %v8121_v53 = vld [vmem:[#allocation38_spill] sm:$0xff] }
 0x5e5   :  { %v4947_v2 = vpop.eup %4946  ;;  %v2542_v22 = vadd.f32 1.0, %v4945_v30  ;;  %4966 = vrcp.f32 %v2540_v37  ;;  %v2422_v37 = vrot.slane %v7141_v29, 4  ;;  %v2504_v1 = vadd.f32 %v2440_v18, %v8121_v53 }
 0x5e6   :  { %v4949_v48 = vpop.eup %4948  ;;  %4968 = vrcp.f32 %v2541_v36  ;;  %v2426_v36 = vrot.slane %v7141_v29, 5  ;;  %v4235_v25 = vmul.f32 -1.442695, %v2488_v52  ;;  %v4236_v5 = vmul.f32 -1.442695, %v2492_v35 }
 0x5e7   :  { %v4951_v54 = vpop.eup %4950  ;;  %4970 = vrcp.f32 %v2542_v22  ;;  %v2430_v22 = vrot.slane %v7141_v29, 6  ;;  %v2482_v10 = vadd.f32 %v2422_v37, %v8041_v6  ;;  %v4238_v52 = vmul.f32 -1.442695, %v2500_v31 }
 0x5e8   :  { %v4953_v30 = vpop.eup %4952  ;;  %4972 = vtanh.f32 %v2501_v0  ;;  %v2486_v18 = vadd.f32 %v2426_v36, %v8071_v44  ;;  %v4239_v13 = vmul.f32 -1.442695, %v2504_v1  ;;  %v2494_v55 = vadd.f32 %v2434_v4, %v6070_v21 }
 0x5e9   :  { %v4955_v57 = vpop.eup %4954  ;;  %4974 = vtanh.f32 %v2505_v27  ;;  %v2490_v35 = vadd.f32 %v2430_v22, %v8096_v26 }
 0x5ea   :  { %v4957_v7 = vpop.eup %4956  ;;  %4976 = vtanh.f32 %v2509_v11  ;;  %v4242_v1 = vmul.f32 -1.442695, %v2486_v18  ;;  %v4244_v22 = vmul.f32 -1.442695, %v2494_v55 }
 0x5eb   :  { %v4959_v0 = vpop.eup %4958  ;;  %v7187_v56 = vmul.f32 %v4957_v7, %v4955_v57  ;;  %4978 = vpow2.f32 %v4233_v49  ;;  %v4240_v49 = vmul.f32 -1.442695, %v2508_v40 }
 0x5ec   :  { %v4961_v27 = vpop.eup %4960  ;;  %v7190_v63 = vmul.f32 %v4959_v0, %v4947_v2  ;;  %4980 = vpow2.f32 %v4234_v59  ;;  %v2498_v59 = vadd.f32 %v7141_v29, %v6084_v50  ;;  %v2438_v0 = vrot.slane %v7141_v29, 1 }
 0x5ed   :  { %v4963_v11 = vpop.eup %4962  ;;  %v7193_v53 = vmul.f32 %v4961_v27, %v4949_v48  ;;  %4982 = vpow2.f32 %v4235_v25  ;;  %v4241_v48 = vmul.f32 -1.442695, %v2482_v10  ;;  %v4243_v25 = vmul.f32 -1.442695, %v2490_v35 }
 0x5ee   :  { %v4965_v7 = vpop.eup %4964  ;;  %v7196_v57 = vmul.f32 %v4963_v11, %v4951_v54  ;;  %4984 = vpow2.f32 %v4236_v5  ;;  %v4245_v4 = vmul.f32 -1.442695, %v2498_v59  ;;  %v2442_v27 = vrot.slane %v7141_v29, 2 }
 0x5ef   :  { %v4967_v2 = vpop.eup %4966  ;;  %v7199_v37 = vmul.f32 %v4965_v7, %v4953_v30  ;;  %4986 = vpow2.f32 %v4237_v17 }
 0x5f0   :  { %v4969_v31 = vpop.eup %4968  ;;  %4988 = vpow2.f32 %v4238_v52 }
 0x5f1   :  { %v4971_v36 = vpop.eup %4970  ;;  %4990 = vpow2.f32 %v4239_v13  ;;  %v2446_v13 = vrot.slane %v7141_v29, 3 }
 0x5f2   :  { %v4973_v54 = vpop.eup %4972  ;;  %4992 = vpow2.f32 %v4240_v49 }
 0x5f3   :  { %v4975_v40 = vpop.eup %4974  ;;  %v7203_v5 = vmul.f32 %v4973_v54, %v4967_v2  ;;  %4994 = vpow2.f32 %v4241_v48  ;;  %v2502_v2 = vadd.f32 %v2438_v0, %v6151_v28 }
 0x5f4   :  { %v4977_v30 = vpop.eup %4976  ;;  %4996 = vpow2.f32 %v4242_v1  ;;  %v7206_v17 = vmul.f32 %v4975_v40, %v4969_v31  ;;  %v2506_v31 = vadd.f32 %v2442_v27, %v6158_v43 }
 0x5f5   :  { %v4979_v10 = vpop.eup %4978  ;;  %4998 = vpow2.f32 %v4243_v25  ;;  %v7209_v52 = vmul.f32 %v4977_v30, %v4971_v36  ;;  %v2510_v25 = vadd.f32 %v2446_v13, %v6165_v39 }
 0x5f6   :  { %v4981_v18 = vpop.eup %4980  ;;  %v2583_v11 = vadd.f32 1.0, %v4979_v10  ;;  %5000 = vpow2.f32 %v4244_v22  ;;  %v4247_v0 = vmul.f32 -1.442695, %v2506_v31 }
 0x5f7   :  { %v4983_v35 = vpop.eup %4982  ;;  %v2584_v7 = vadd.f32 1.0, %v4981_v18  ;;  %5002 = vpow2.f32 %v4245_v4  ;;  %v4246_v4 = vmul.f32 -1.442695, %v2502_v2  ;;  %v2672_v2 = vrot.slane %v6962_v61, 7 }
 0x5f8   :  { %v4985_v49 = vpop.eup %4984  ;;  %v2585_v55 = vadd.f32 1.0, %v4983_v35  ;;  %5004 = vrcp.f32 %v2583_v11  ;;  %v4248_v11 = vmul.f32 -1.442695, %v2510_v25 }
 0x5f9   :  { %v4987_v59 = vpop.eup %4986  ;;  %v2586_v48 = vadd.f32 1.0, %v4985_v49  ;;  %5006 = vrcp.f32 %v2584_v7 }
 0x5fa   :  { %v4989_v1 = vpop.eup %4988  ;;  %v2587_v36 = vadd.f32 1.0, %v4987_v59  ;;  %5008 = vrcp.f32 %v2585_v55  ;;  %v2671_v55 = vrot.slane %v6958_v58, 7  ;;  %v2675_v58 = vrot.slane %v6974_v33, 7 }
 0x5fb   :  { %v4991_v29 = vpop.eup %4990  ;;  %v2588_v54 = vadd.f32 1.0, %v4989_v1  ;;  %5010 = vrcp.f32 %v2586_v48 }
 0x5fc   :  { %v4993_v22 = vpop.eup %4992  ;;  %v2589_v40 = vadd.f32 1.0, %v4991_v29  ;;  %5012 = vrcp.f32 %v2587_v36  ;;  %v2673_v36 = vrot.slane %v6966_v15, 7 }
 0x5fd   :  { %v4995_v30 = vpop.eup %4994  ;;  %v2590_v10 = vadd.f32 1.0, %v4993_v22  ;;  %5014 = vrcp.f32 %v2588_v54  ;;  %v2674_v22 = vrot.slane %v6970_v60, 7  ;;  %v2677_v60 = vrot.slane %v6982_v62, 7 }
 0x5fe   :  { %v4997_v18 = vpop.eup %4996  ;;  %5016 = vrcp.f32 %v2589_v40  ;;  %v2639_v35 = vadd.f32 1.0, %v4995_v30 }
 0x5ff   :  { %v4999_v27 = vpop.eup %4998  ;;  %5018 = vrcp.f32 %v2590_v10  ;;  %v2640_v13 = vadd.f32 1.0, %v4997_v18 }
 0x600   :  { %v5001_v7 = vpop.eup %5000  ;;  %5020 = vpow2.f32 %v4246_v4  ;;  %v2641_v59 = vadd.f32 1.0, %v4999_v27 }
 0x601   :  { %v5003_v49 = vpop.eup %5002  ;;  %5022 = vpow2.f32 %v4247_v0  ;;  %v2642_v1 = vadd.f32 1.0, %v5001_v7  ;;  %v2676_v0 = vrot.slane %v6978_v45, 7 }
 0x602   :  { %v5005_v48 = vpop.eup %5004  ;;  %5024 = vpow2.f32 %v4248_v11  ;;  %v2643_v29 = vadd.f32 1.0, %v5003_v49 }
 0x603   :  { %v5007_v31 = vpop.eup %5006  ;;  %v2687_v25 = vmul.f32 %v5005_v48, %v2671_v55  ;;  %5026 = vrcp.f32 %v2639_v35 }
 0x604   :  { %v5009_v54 = vpop.eup %5008  ;;  %v2688_v40 = vmul.f32 %v5007_v31, %v2672_v2  ;;  %5028 = vrcp.f32 %v2640_v13 }
 0x605   :  { %v5011_v4 = vpop.eup %5010  ;;  %v2689_v30 = vmul.f32 %v5009_v54, %v2673_v36  ;;  %v7221_v10 = vadd.f32 %v7190_v63, %v2687_v25  ;;  %5030 = vrcp.f32 %v2641_v59  ;;  %v2678_v63 = vrot.slane %v6986_v3, 7 }
 0x606   :  { %v5013_v61 = vpop.eup %5012  ;;  %v2690_v15 = vmul.f32 %v5011_v4, %v2674_v22  ;;  %v7225_v18 = vadd.f32 %v7193_v53, %v2688_v40  ;;  %5032 = vrcp.f32 %v2642_v1 }
 0x607   :  { %v5015_v11 = vpop.eup %5014  ;;  %v2691_v27 = vmul.f32 %v5013_v61, %v2675_v58  ;;  %v7229_v35 = vadd.f32 %v7196_v57, %v2689_v30  ;;  %5034 = vrcp.f32 %v2643_v29 }
 0x608   :  { %v5017_v33 = vpop.eup %5016  ;;  %v2692_v7 = vmul.f32 %v5015_v11, %v2676_v0  ;;  %v7233_v13 = vadd.f32 %v7199_v37, %v2690_v15  ;;  %5036 = vtanh.f32 %v7221_v10 }
 0x609   :  { %v5019_v45 = vpop.eup %5018  ;;  %v2693_v53 = vmul.f32 %v5017_v33, %v2677_v60  ;;  %v7237_v49 = vadd.f32 %v7187_v56, %v2691_v27  ;;  %5038 = vtanh.f32 %v7225_v18 }
 0x60a   :  { %v5021_v62 = vpop.eup %5020  ;;  %v2694_v57 = vmul.f32 %v5019_v45, %v2678_v63  ;;  %v7241_v55 = vadd.f32 %v7203_v5, %v2692_v7  ;;  %5040 = vtanh.f32 %v7229_v35 }
 0x60b   :  { %v5023_v3 = vpop.eup %5022  ;;  %v2644_v59 = vadd.f32 1.0, %v5021_v62  ;;  %v7245_v37 = vadd.f32 %v7206_v17, %v2693_v53  ;;  %5042 = vtanh.f32 %v7233_v13 }
 0x60c   :  { %v5025_v48 = vpop.eup %5024  ;;  %v2645_v2 = vadd.f32 1.0, %v5023_v3  ;;  %v7249_v56 = vadd.f32 %v7209_v52, %v2694_v57  ;;  %5044 = vtanh.f32 %v7237_v49 }
 0x60d   :  { %v5027_v1 = vpop.eup %5026  ;;  %v2646_v31 = vadd.f32 1.0, %v5025_v48  ;;  %5046 = vrcp.f32 %v2644_v59 }
 0x60e   :  { %v5029_v5 = vpop.eup %5028  ;;  %5048 = vrcp.f32 %v2645_v2 }
 0x60f   :  { %v5031_v36 = vpop.eup %5030  ;;  %5050 = vrcp.f32 %v2646_v31 }
 0x610   :  { %v5033_v25 = vpop.eup %5032  ;;  %5052 = vtanh.f32 %v7241_v55 }
 0x611   :  { %v5035_v17 = vpop.eup %5034  ;;  %5054 = vtanh.f32 %v7245_v37 }
 0x612   :  { %v5037_v29 = vpop.eup %5036  ;;  %5056 = vtanh.f32 %v7249_v56 }
 0x613   :  { %v5039_v52 = vpop.eup %5038  ;;  %v2719_v54 = vmul.f32 %v5037_v29, %v5027_v1 }
 0x614   :  { %v5041_v22 = vpop.eup %5040  ;;  %v2720_v40 = vmul.f32 %v5039_v52, %v5029_v5 }
 0x615   :  { %v5043_v4 = vpop.eup %5042  ;;  %v2721_v58 = vmul.f32 %v5041_v22, %v5031_v36  ;;  %2727 = vst [vmem:[%s7878_s4] sm:$0x10] %v2719_v54  ;;  %v2735_v30 = vpack.c.bf16 %v2719_v54, %v2719_v54 }
 0x616   :  { %v5045_v61 = vpop.eup %5044  ;;  %v2722_v0 = vmul.f32 %v5043_v4, %v5033_v25  ;;  %2728 = vst [vmem:[%s7878_s4 + $0x8] sm:$0x10] %v2720_v40  ;;  %v2736_v15 = vpack.c.bf16 %v2720_v40, %v2720_v40 }
 0x617   :  { %v5047_v11 = vpop.eup %5046  ;;  %v2723_v60 = vmul.f32 %v5045_v61, %v5035_v17  ;;  %2729 = vst [vmem:[%s7878_s4 + $0x10] sm:$0x10] %v2721_v58  ;;  %v2737_v27 = vpack.c.bf16 %v2721_v58, %v2721_v58  ;;  %v2751_v33 = vunpack.c.l.b16 %v2735_v30 }
 0x618   :  { %v5049_v63 = vpop.eup %5048  ;;  %2730 = vst [vmem:[%s7878_s4 + $0x18] sm:$0x10] %v2722_v0  ;;  %v2738_v7 = vpack.c.bf16 %v2722_v0, %v2722_v0  ;;  %v2752_v45 = vunpack.c.l.b16 %v2736_v15 }
 0x619   :  { %v5051_v53 = vpop.eup %5050  ;;  %2731 = vst [vmem:[%s7878_s4 + $0x20] sm:$0x10] %v2723_v60  ;;  %v2739_v62 = vpack.c.bf16 %v2723_v60, %v2723_v60  ;;  %v2753_v57 = vunpack.c.l.b16 %v2737_v27  ;;  %v2759_v3 = vrot.slane %v2751_v33, 4 }
 0x61a   :  { %v5053_v59 = vpop.eup %5052  ;;  %v2754_v48 = vunpack.c.l.b16 %v2738_v7  ;;  %v2760_v2 = vrot.slane %v2752_v45, 3 }
 0x61b   :  { %v5055_v1 = vpop.eup %5054  ;;  %v2724_v31 = vmul.f32 %v5053_v59, %v5047_v11  ;;  %v2762_v5 = vrot.slane %v2753_v57, 2  ;;  %v2755_v22 = vunpack.c.l.b16 %v2739_v62  ;;  %v7289_v62 = vld [vmem:[%s7875_s2] ss:$16 sps:$4 sm:$0xff]   ;;  %v7295_v57 = vld [vmem:[%s7875_s2 + $0x8] ss:$16 sps:$4 sm:$0xff]  }
 0x61c   :  { %v5057_v36 = vpop.eup %5056  ;;  %v2725_v25 = vmul.f32 %v5055_v1, %v5049_v63  ;;  %v2761_v17 = vsel %vm985_vm0, %v2760_v2, %v2759_v3  ;;  %v2764_v29 = vrot.slane %v2754_v48, 1  ;;  %v7301_v3 = vld [vmem:[%s7875_s2 + $0x24] ss:$16 sps:$4 sm:$0xff]   ;;  %v7307_v59 = vld [vmem:[%s7875_s2 + $0x2c] ss:$16 sps:$4 sm:$0xff]  }
 0x61d   :  { %v2726_v52 = vmul.f32 %v5057_v36, %v5051_v53  ;;  %2732 = vst [vmem:[%s7878_s4 + $0x28] sm:$0x10] %v2724_v31  ;;  %v2740_v54 = vpack.c.bf16 %v2724_v31, %v2724_v31  ;;  %v2763_v40 = vsel %vm988_vm1, %v2762_v5, %v2761_v17  ;;  %v7315_v48 = vld [vmem:[%s7875_s2 + $0x20] ss:$16 sps:$4 sm:$0xff]   ;;  %v7321_v2 = vld [vmem:[%s7875_s2 + $0x28] ss:$16 sps:$4 sm:$0xff]  }
 0x61e   :  { %2733 = vst [vmem:[%s7878_s4 + $0x30] sm:$0x10] %v2725_v25  ;;  %v2741_v4 = vpack.c.bf16 %v2725_v25, %v2725_v25  ;;  %v2765_v58 = vsel %vm991_vm2, %v2764_v29, %v2763_v40  ;;  %v7327_v1 = vld [vmem:[%s7875_s2 + $0x44] ss:$16 sps:$4 sm:$0xff]   ;;  %v7333_v31 = vld [vmem:[%s7875_s2 + $0x4c] ss:$16 sps:$4 sm:$0xff]  }
 0x61f   :  { %2734 = vst [vmem:[%s7878_s4 + $0x38] sm:$0x10] %v2726_v52  ;;  %v2742_v30 = vpack.c.bf16 %v2726_v52, %v2726_v52  ;;  %v2756_v61 = vunpack.c.l.b16 %v2740_v54  ;;  %v2766_v0 = vsel %vm994_vm3, %v2755_v22, %v2765_v58  ;;  %v7339_v5 = vld [vmem:[%s7875_s2 + $0x40] ss:$16 sps:$4 sm:$0xff]   ;;  %v7345_v36 = vld [vmem:[%s7875_s2 + $0x48] ss:$16 sps:$4 sm:$0xff]  }
 0x620   :  { %v2757_v15 = vunpack.c.l.b16 %v2741_v4  ;;  %v7351_v25 = vld [vmem:[%s7875_s2 + $0x64] ss:$16 sps:$4 sm:$0xff]   ;;  %v7357_v17 = vld [vmem:[%s7875_s2 + $0x6c] ss:$16 sps:$4 sm:$0xff]   ;;  %v7363_v29 = vld [vmem:[%s7875_s2 + $0x60] ss:$16 sps:$4 sm:$0xff]  }
 0x621   :  { %v2758_v11 = vunpack.c.l.b16 %v2742_v30  ;;  %v2767_v60 = vrot.slane %v2756_v61, 7  ;;  %v7369_v52 = vld [vmem:[%s7875_s2 + $0x68] ss:$16 sps:$4 sm:$0xff]   ;;  %v8124_v58 = vld [vmem:[#allocation14_spill] sm:$0xff] }
 0x622   :  { %v2769_v27 = vrot.slane %v2757_v15, 6  ;;  %v8125_v61 = vld [vmem:[#allocation15_spill] sm:$0xff]  ;;  %v8126_v15 = vld [vmem:[#allocation16_spill] sm:$0xff] }
 0x623   :  { %v2768_v33 = vsel %vm997_vm4, %v2767_v60, %v2766_v0  ;;  %v2771_v63 = vrot.slane %v2758_v11, 5  ;;  %v8127_v60 = vld [vmem:[#allocation17_spill] sm:$0xff] }
 0x624   :  { %v2770_v7 = vsel %vm1000_vm5, %v2769_v27, %v2768_v33 }
 0x625   :  { %v2772_v45 = vsel %vm1003_vm6, %v2771_v63, %v2770_v7  ;;  %v8128_v7 = vld [vmem:[#allocation18_spill] sm:$0xff] }
 0x626   :  { %v2773_v53 = vpack.c.b16 %v2772_v45, %v2772_v45 }
 0x628   :  { %2808 = vmatmul.mubr.bf16.vlgmr.msra.gmra.mrb[36].mxu0 %v2773_v53  ;;  %2849 = vmatmul.mubr.bf16.vlgmr.msra.gmra.mrb[36].mxu1 %v2773_v53  ;;  %v8129_v53 = vld [vmem:[#allocation20_spill] sm:$0xff] }
 0x629   :  { %3218 = vmatpush1.bf16.msra.mxu0 %v7289_v62  ;;  %3259 = vmatpush1.bf16.msra.mxu1 %v7295_v57 }
 0x62a   :  { %3219 = vmatprep.subr.bf16.mxu0 %v7301_v3  ;;  %3260 = vmatprep.subr.bf16.mxu1 %v7307_v59 }
 0x62b   :  { %3249 = vmatprep.mubr.bf16.mxu0 %v8042_v9  ;;  %3290 = vmatprep.mubr.bf16.mxu1 %v8042_v9 }
 0x62d   :  { %3220 = vmatpush1.bf16.msra.mxu0 %v7315_v48  ;;  %3261 = vmatpush1.bf16.msra.mxu1 %v7321_v2 }
 0x62e   :  { %3221 = vmatprep.subr.bf16.mxu0 %v7327_v1  ;;  %3262 = vmatprep.subr.bf16.mxu1 %v7333_v31 }
 0x631   :  { %3222 = vmatpush1.bf16.msra.mxu0 %v7339_v5  ;;  %3263 = vmatpush1.bf16.msra.mxu1 %v7345_v36 }
 0x632   :  { %3223 = vmatprep.subr.bf16.mxu0 %v7351_v25  ;;  %3264 = vmatprep.subr.bf16.mxu1 %v7357_v17 }
 0x635   :  { %3224 = vmatpush1.bf16.msra.mxu0 %v7363_v29  ;;  %3265 = vmatpush1.bf16.msra.mxu1 %v7369_v52 }
 0x636   :  { %3225 = vmatprep.subr.bf16.mxu0 %v7042_v14  ;;  %3266 = vmatprep.subr.bf16.mxu1 %v7048_v12  ;;  %v8122_v14 = vld [vmem:[#allocation13_spill] sm:$0xff]  ;;  %v8123_v12 = vld [vmem:[#allocation27_spill] sm:$0xff] }
 0x639   :  { %3226 = vmatpush1.bf16.msra.mxu0 %v7054_v19  ;;  %3267 = vmatpush1.bf16.msra.mxu1 %v7060_v42  ;;  %v5520_v19 = vld [vmem:[%s7875_s2 + $0x4] ss:$16 sps:$4 sm:$0xff]   ;;  %v5521_v42 = vld [vmem:[%s7875_s2 + $0xc] ss:$16 sps:$4 sm:$0xff]  }
 0x63a   :  { %3227 = vmatprep.subr.bf16.mxu0 %v7066_v38  ;;  %3268 = vmatprep.subr.bf16.mxu1 %v7072_v41 }
 0x63d   :  { %3228 = vmatpush1.bf16.msra.mxu0 %v7078_v46  ;;  %3269 = vmatpush1.bf16.msra.mxu1 %v7084_v47 }
 0x63e   :  { %3229 = vmatprep.subr.bf16.mxu0 %v7090_v20  ;;  %3270 = vmatprep.subr.bf16.mxu1 %v7096_v24 }
 0x641   :  { %3230 = vmatpush1.bf16.msra.mxu0 %v7102_v51  ;;  %3271 = vmatpush1.bf16.msra.mxu1 %v7108_v34 }
 0x642   :  { %3231 = vmatprep.subr.bf16.mxu0 %v7114_v32  ;;  %3272 = vmatprep.subr.bf16.mxu1 %v7120_v23 }
 0x645   :  { %3232 = vmatpush1.bf16.msra.mxu0 %v8122_v14  ;;  %3273 = vmatpush1.bf16.msra.mxu1 %v8123_v12 }
 0x646   :  { %3659 = vmatprep.subr.bf16.mxu0 %v5520_v19  ;;  %3700 = vmatprep.subr.bf16.mxu1 %v5521_v42  ;;  %v8130_v19 = vld [vmem:[#allocation21_spill] sm:$0xff] }
 0x6fb   :  { %v2809_v38 = vpop.f32.mrb[36].mxu0  ;;  %v7394_v41 = vpop.f32.mrb[36].mxu1 }
 0x6fc   :  { %v2861_v46 = vrot.slane %v2809_v38, 3  ;;  %v2865_v47 = vrot.slane %v2809_v38, 4  ;;  %v2869_v20 = vrot.slane %v2809_v38, 5  ;;  %v2873_v24 = vrot.slane %v2809_v38, 6  ;;  %v7396_v51 = vpop.f32.mrb[37].mxu0  ;;  %v7398_v34 = vpop.f32.mrb[37].mxu1 }
 0x6fd   :  { %v2877_v32 = vrot.slane %v2809_v38, 7  ;;  %v2881_v23 = vrot.slane %v2809_v38, 1  ;;  %v2885_v54 = vrot.slane %v2809_v38, 2  ;;  %v2941_v22 = vadd.f32 %v2809_v38, %v8104_v8  ;;  %v2813_v40 = vpop.f32.mrb[38].mxu0  ;;  %v2854_v4 = vpop.f32.mrb[38].mxu1 }
 0x6fe   :  { %v2921_v30 = vadd.f32 %v2861_v46, %v8124_v58  ;;  %v2925_v0 = vadd.f32 %v2865_v47, %v8125_v61  ;;  %v2929_v11 = vadd.f32 %v2869_v20, %v8126_v15  ;;  %v2933_v27 = vadd.f32 %v2873_v24, %v8127_v60  ;;  %v2814_v33 = vpop.f32.mrb[39].mxu0  ;;  %v2855_v63 = vpop.f32.mrb[39].mxu1 }
 0x6ff   :  { %v2937_v45 = vadd.f32 %v2877_v32, %v8128_v7  ;;  %v2945_v14 = vadd.f32 %v2881_v23, %v8129_v53  ;;  %v4254_v12 = vmul.f32 -1.442695, %v2941_v22  ;;  %v2949_v42 = vadd.f32 %v2885_v54, %v8130_v19  ;;  %v8133_v33 = vld [vmem:[#allocation25_spill] sm:$0xff]  ;;  %v8140_v7 = vld [vmem:[#allocation31_spill] sm:$0xff] }
 0x700   :  { %v4249_v38 = vmul.f32 -1.442695, %v2921_v30  ;;  %v4250_v40 = vmul.f32 -1.442695, %v2925_v0  ;;  %v4251_v4 = vmul.f32 -1.442695, %v2929_v11 }
 0x701   :  { %v4252_v8 = vmul.f32 -1.442695, %v2933_v27  ;;  %5058 = vpow2.f32 %v4254_v12  ;;  %v4253_v46 = vmul.f32 -1.442695, %v2937_v45  ;;  %v2863_v47 = vrot.slane %v7394_v41, 3  ;;  %v8131_v30 = vld [vmem:[#allocation22_spill] sm:$0xff] }
 0x702   :  { %5060 = vpow2.f32 %v4249_v38  ;;  %v2867_v20 = vrot.slane %v7394_v41, 4  ;;  %v4255_v24 = vmul.f32 -1.442695, %v2945_v14  ;;  %v2871_v32 = vrot.slane %v7394_v41, 5  ;;  %v8132_v11 = vld [vmem:[#allocation24_spill] sm:$0xff]  ;;  %v8135_v12 = vld [vmem:[#allocation26_spill] sm:$0xff] }
 0x703   :  { %5062 = vpow2.f32 %v4250_v40  ;;  %v4256_v23 = vmul.f32 -1.442695, %v2949_v42  ;;  %v2875_v22 = vrot.slane %v7394_v41, 6  ;;  %v2879_v54 = vrot.slane %v7394_v41, 7  ;;  %v8134_v45 = vld [vmem:[#allocation28_spill] sm:$0xff] }
 0x704   :  { %5064 = vpow2.f32 %v4251_v4  ;;  %v2923_v0 = vadd.f32 %v2863_v47, %v8131_v30  ;;  %v2927_v27 = vadd.f32 %v2867_v20, %v8132_v11  ;;  %v2931_v63 = vadd.f32 %v2871_v32, %v8133_v33  ;;  %v8139_v30 = vld [vmem:[#allocation29_spill] sm:$0xff] }
 0x705   :  { %5066 = vpow2.f32 %v4252_v8  ;;  %v2935_v14 = vadd.f32 %v2875_v22, %v8134_v45  ;;  %v2939_v38 = vadd.f32 %v2879_v54, %v8135_v12  ;;  %v2883_v32 = vrot.slane %v7394_v41, 1  ;;  %v8137_v45 = vld [vmem:[#allocation23_spill] sm:$0xff] }
 0x706   :  { %5068 = vpow2.f32 %v4253_v46  ;;  %v2862_v46 = vrot.slane %v7396_v51, 3  ;;  %v2878_v12 = vrot.slane %v7396_v51, 7 }
 0x707   :  { %5070 = vpow2.f32 %v4255_v24 }
 0x708   :  { %5072 = vpow2.f32 %v4256_v23  ;;  %v2866_v23 = vrot.slane %v7396_v51, 4 }
 0x709   :  { %5074 = vtanh.f32 %v2923_v0  ;;  %v8136_v0 = vld [vmem:[#allocation35_spill] sm:$0xff] }
 0x70a   :  { %5076 = vtanh.f32 %v2927_v27  ;;  %v2943_v27 = vadd.f32 %v7394_v41, %v8136_v0  ;;  %v8138_v0 = vld [vmem:[#allocation36_spill] sm:$0xff]  ;;  %v2926_v19 = vadd.f32 %v2866_v23, %v8139_v30  ;;  %v8144_v30 = vld [vmem:[#allocation37_spill] sm:$0xff] }
 0x70b   :  { %v5059_v42 = vpop.eup %5058  ;;  %5078 = vtanh.f32 %v2931_v63  ;;  %v2870_v63 = vrot.slane %v7396_v51, 5  ;;  %v2947_v11 = vadd.f32 %v2883_v32, %v8138_v0  ;;  %v8143_v32 = vld [vmem:[#allocation34_spill] sm:$0xff] }
 0x70c   :  { %v5061_v8 = vpop.eup %5060  ;;  %v2982_v40 = vadd.f32 1.0, %v5059_v42  ;;  %5080 = vtanh.f32 %v2935_v14  ;;  %v2938_v0 = vadd.f32 %v2878_v12, %v8143_v32 }
 0x70d   :  { %v5063_v4 = vpop.eup %5062  ;;  %v2977_v47 = vadd.f32 1.0, %v5061_v8  ;;  %5082 = vtanh.f32 %v2939_v38  ;;  %v2887_v38 = vrot.slane %v7394_v41, 2  ;;  %v2874_v8 = vrot.slane %v7396_v51, 6 }
 0x70e   :  { %v5065_v20 = vpop.eup %5064  ;;  %v2978_v24 = vadd.f32 1.0, %v5063_v4  ;;  %5084 = vrcp.f32 %v2982_v40  ;;  %v2882_v41 = vrot.slane %v7396_v51, 1  ;;  %v2930_v60 = vadd.f32 %v2870_v63, %v8140_v7 }
 0x70f   :  { %v5067_v22 = vpop.eup %5066  ;;  %v2979_v54 = vadd.f32 1.0, %v5065_v20  ;;  %5086 = vrcp.f32 %v2977_v47  ;;  %v2922_v20 = vadd.f32 %v2862_v46, %v8137_v45  ;;  %v2886_v46 = vrot.slane %v7396_v51, 2  ;;  %v8142_v45 = vld [vmem:[#allocation33_spill] sm:$0xff] }
 0x710   :  { %v5069_v14 = vpop.eup %5068  ;;  %v2980_v42 = vadd.f32 1.0, %v5067_v22  ;;  %5088 = vrcp.f32 %v2978_v24  ;;  %v2942_v63 = vadd.f32 %v7396_v51, %v8144_v30  ;;  %v4258_v7 = vmul.f32 -1.442695, %v2926_v19 }
 0x711   :  { %v5071_v40 = vpop.eup %5070  ;;  %v2981_v4 = vadd.f32 1.0, %v5069_v14  ;;  %5090 = vrcp.f32 %v2979_v54  ;;  %v8141_v54 = vld [vmem:[#allocation39_spill] sm:$0xff]  ;;  %v4257_v23 = vmul.f32 -1.442695, %v2922_v20  ;;  %v2950_v12 = vadd.f32 %v2886_v46, %v8040_v16 }
 0x712   :  { %v5073_v47 = vpop.eup %5072  ;;  %v2983_v33 = vadd.f32 1.0, %v5071_v40  ;;  %5092 = vrcp.f32 %v2980_v42  ;;  %v2951_v15 = vadd.f32 %v2887_v38, %v8141_v54  ;;  %v2934_v40 = vadd.f32 %v2874_v8, %v8142_v45  ;;  %v8145_v54 = vld [vmem:[#allocation38_spill] sm:$0xff] }
 0x713   :  { %v5075_v22 = vpop.eup %5074  ;;  %v2984_v24 = vadd.f32 1.0, %v5073_v47  ;;  %5094 = vrcp.f32 %v2981_v4  ;;  %v2864_v47 = vrot.slane %v7398_v34, 3  ;;  %v2946_v61 = vadd.f32 %v2882_v41, %v8145_v54 }
 0x714   :  { %v5077_v14 = vpop.eup %5076  ;;  %5096 = vrcp.f32 %v2983_v33  ;;  %v2868_v33 = vrot.slane %v7398_v34, 4  ;;  %v4259_v8 = vmul.f32 -1.442695, %v2930_v60  ;;  %v4260_v20 = vmul.f32 -1.442695, %v2934_v40 }
 0x715   :  { %v5079_v42 = vpop.eup %5078  ;;  %5098 = vrcp.f32 %v2984_v24  ;;  %v2872_v24 = vrot.slane %v7398_v34, 5  ;;  %v4261_v51 = vmul.f32 -1.442695, %v2938_v0  ;;  %v2880_v19 = vrot.slane %v7398_v34, 7 }
 0x716   :  { %v5081_v4 = vpop.eup %5080  ;;  %5100 = vtanh.f32 %v2943_v27  ;;  %v2876_v27 = vrot.slane %v7398_v34, 6  ;;  %v2924_v30 = vadd.f32 %v2864_v47, %v8041_v6  ;;  %v4262_v60 = vmul.f32 -1.442695, %v2942_v63 }
 0x717   :  { %v5083_v38 = vpop.eup %5082  ;;  %5102 = vtanh.f32 %v2947_v11  ;;  %v2928_v41 = vadd.f32 %v2868_v33, %v8071_v44  ;;  %v4263_v46 = vmul.f32 -1.442695, %v2946_v61  ;;  %v2932_v40 = vadd.f32 %v2872_v24, %v8096_v26 }
 0x718   :  { %v5085_v45 = vpop.eup %5084  ;;  %5104 = vtanh.f32 %v2951_v15  ;;  %v4264_v16 = vmul.f32 -1.442695, %v2950_v12  ;;  %v2936_v47 = vadd.f32 %v2876_v27, %v6070_v21  ;;  %v4265_v63 = vmul.f32 -1.442695, %v2924_v30 }
 0x719   :  { %v5087_v32 = vpop.eup %5086  ;;  %5106 = vpow2.f32 %v4257_v23  ;;  %v4266_v61 = vmul.f32 -1.442695, %v2928_v41 }
 0x71a   :  { %v5089_v11 = vpop.eup %5088  ;;  %v7446_v58 = vmul.f32 %v5087_v32, %v5075_v22  ;;  %5108 = vpow2.f32 %v4258_v7  ;;  %v2940_v7 = vadd.f32 %v2880_v19, %v6084_v50  ;;  %v4268_v12 = vmul.f32 -1.442695, %v2936_v47 }
 0x71b   :  { %v5091_v15 = vpop.eup %5090  ;;  %v7449_v54 = vmul.f32 %v5089_v11, %v5077_v14  ;;  %5110 = vpow2.f32 %v4259_v8 }
 0x71c   :  { %v5093_v23 = vpop.eup %5092  ;;  %v7452_v0 = vmul.f32 %v5091_v15, %v5079_v42  ;;  %5112 = vpow2.f32 %v4260_v20  ;;  %v4267_v42 = vmul.f32 -1.442695, %v2932_v40 }
 0x71d   :  { %v5095_v22 = vpop.eup %5094  ;;  %v7455_v32 = vmul.f32 %v5093_v23, %v5081_v4  ;;  %5114 = vpow2.f32 %v4261_v51  ;;  %v4269_v4 = vmul.f32 -1.442695, %v2940_v7  ;;  %v2944_v23 = vadd.f32 %v7398_v34, %v6151_v28 }
 0x71e   :  { %v5097_v14 = vpop.eup %5096  ;;  %v7458_v33 = vmul.f32 %v5095_v22, %v5083_v38  ;;  %5116 = vpow2.f32 %v4262_v60  ;;  %v2884_v38 = vrot.slane %v7398_v34, 1 }
 0x71f   :  { %v5099_v8 = vpop.eup %5098  ;;  %5118 = vpow2.f32 %v4263_v46 }
 0x720   :  { %v5101_v24 = vpop.eup %5100  ;;  %5120 = vpow2.f32 %v4264_v16  ;;  %v2888_v16 = vrot.slane %v7398_v34, 2  ;;  %v2948_v7 = vadd.f32 %v2884_v38, %v6158_v43 }
 0x721   :  { %v5103_v20 = vpop.eup %5102  ;;  %v7460_v27 = vmul.f32 %v5101_v24, %v5085_v45  ;;  %5122 = vpow2.f32 %v4265_v63 }
 0x722   :  { %v5105_v51 = vpop.eup %5104  ;;  %5124 = vpow2.f32 %v4266_v61  ;;  %v7462_v19 = vmul.f32 %v5103_v20, %v5097_v14  ;;  %v2952_v61 = vadd.f32 %v2888_v16, %v6165_v39  ;;  %v4270_v20 = vmul.f32 -1.442695, %v2944_v23 }
 0x723   :  { %v5107_v30 = vpop.eup %5106  ;;  %5126 = vpow2.f32 %v4267_v42  ;;  %v7465_v11 = vmul.f32 %v5105_v51, %v5099_v8  ;;  %v4271_v34 = vmul.f32 -1.442695, %v2948_v7  ;;  %v3114_v23 = vrot.slane %v7225_v18, 7 }
 0x724   :  { %v5109_v60 = vpop.eup %5108  ;;  %v3025_v41 = vadd.f32 1.0, %v5107_v30  ;;  %5128 = vpow2.f32 %v4268_v12 }
 0x725   :  { %v5111_v15 = vpop.eup %5110  ;;  %v3026_v45 = vadd.f32 1.0, %v5109_v60  ;;  %5130 = vpow2.f32 %v4269_v4  ;;  %v4272_v60 = vmul.f32 -1.442695, %v2952_v61 }
 0x726   :  { %v5113_v46 = vpop.eup %5112  ;;  %v3027_v40 = vadd.f32 1.0, %v5111_v15  ;;  %5132 = vrcp.f32 %v3025_v41 }
 0x727   :  { %v5115_v47 = vpop.eup %5114  ;;  %v3028_v22 = vadd.f32 1.0, %v5113_v46  ;;  %5134 = vrcp.f32 %v3026_v45  ;;  %v3113_v46 = vrot.slane %v7221_v10, 7  ;;  %v3117_v10 = vrot.slane %v7237_v49, 7 }
 0x728   :  { %v5117_v63 = vpop.eup %5116  ;;  %v3029_v14 = vadd.f32 1.0, %v5115_v47  ;;  %5136 = vrcp.f32 %v3027_v40 }
 0x729   :  { %v5119_v8 = vpop.eup %5118  ;;  %v3030_v42 = vadd.f32 1.0, %v5117_v63  ;;  %5138 = vrcp.f32 %v3028_v22  ;;  %v3115_v63 = vrot.slane %v7229_v35, 7 }
 0x72a   :  { %v5121_v24 = vpop.eup %5120  ;;  %v3031_v12 = vadd.f32 1.0, %v5119_v8  ;;  %5140 = vrcp.f32 %v3029_v14 }
 0x72b   :  { %v5123_v4 = vpop.eup %5122  ;;  %v3032_v51 = vadd.f32 1.0, %v5121_v24  ;;  %5142 = vrcp.f32 %v3030_v42  ;;  %v3116_v42 = vrot.slane %v7233_v13, 7  ;;  %v3119_v13 = vrot.slane %v7245_v37, 7 }
 0x72c   :  { %v5125_v30 = vpop.eup %5124  ;;  %5144 = vrcp.f32 %v3031_v12  ;;  %v3081_v41 = vadd.f32 1.0, %v5123_v4 }
 0x72d   :  { %v5127_v38 = vpop.eup %5126  ;;  %5146 = vrcp.f32 %v3032_v51  ;;  %v3082_v16 = vadd.f32 1.0, %v5125_v30  ;;  %v3118_v51 = vrot.slane %v7241_v55, 7 }
 0x72e   :  { %v5129_v15 = vpop.eup %5128  ;;  %5148 = vpow2.f32 %v4270_v20  ;;  %v3083_v40 = vadd.f32 1.0, %v5127_v38 }
 0x72f   :  { %v5131_v45 = vpop.eup %5130  ;;  %5150 = vpow2.f32 %v4271_v34  ;;  %v3084_v22 = vadd.f32 1.0, %v5129_v15 }
 0x730   :  { %v5133_v47 = vpop.eup %5132  ;;  %5152 = vpow2.f32 %v4272_v60  ;;  %v3085_v61 = vadd.f32 1.0, %v5131_v45 }
 0x731   :  { %v5135_v7 = vpop.eup %5134  ;;  %v3129_v14 = vmul.f32 %v5133_v47, %v3113_v46  ;;  %5154 = vrcp.f32 %v3081_v41 }
 0x732   :  { %v5137_v8 = vpop.eup %5136  ;;  %v3130_v24 = vmul.f32 %v5135_v7, %v3114_v23  ;;  %5156 = vrcp.f32 %v3082_v16 }
 0x733   :  { %v5139_v12 = vpop.eup %5138  ;;  %v3131_v20 = vmul.f32 %v5137_v8, %v3115_v63  ;;  %v7478_v4 = vadd.f32 %v7446_v58, %v3129_v14  ;;  %5158 = vrcp.f32 %v3083_v40  ;;  %v3120_v58 = vrot.slane %v7249_v56, 7 }
 0x734   :  { %v5141_v18 = vpop.eup %5140  ;;  %v3132_v35 = vmul.f32 %v5139_v12, %v3116_v42  ;;  %v7482_v34 = vadd.f32 %v7449_v54, %v3130_v24  ;;  %5160 = vrcp.f32 %v3084_v22 }
 0x735   :  { %v5143_v30 = vpop.eup %5142  ;;  %v7486_v60 = vadd.f32 %v7452_v0, %v3131_v20  ;;  %5162 = vrcp.f32 %v3085_v61  ;;  %v3133_v49 = vmul.f32 %v5141_v18, %v3117_v10 }
 0x736   :  { %v5145_v38 = vpop.eup %5144  ;;  %v3134_v41 = vmul.f32 %v5143_v30, %v3118_v51  ;;  %v7490_v15 = vadd.f32 %v7455_v32, %v3132_v35  ;;  %5164 = vtanh.f32 %v7478_v4 }
 0x737   :  { %v5147_v55 = vpop.eup %5146  ;;  %v3135_v54 = vmul.f32 %v5145_v38, %v3119_v13  ;;  %v7494_v16 = vadd.f32 %v7458_v33, %v3133_v49  ;;  %5166 = vtanh.f32 %v7482_v34 }
 0x738   :  { %v5149_v37 = vpop.eup %5148  ;;  %v3136_v0 = vmul.f32 %v5147_v55, %v3120_v58  ;;  %v7498_v45 = vadd.f32 %v7460_v27, %v3134_v41  ;;  %5168 = vtanh.f32 %v7486_v60 }
 0x739   :  { %v5151_v56 = vpop.eup %5150  ;;  %v3086_v46 = vadd.f32 1.0, %v5149_v37  ;;  %v7502_v32 = vadd.f32 %v7462_v19, %v3135_v54  ;;  %5170 = vtanh.f32 %v7490_v15 }
 0x73a   :  { %v5153_v40 = vpop.eup %5152  ;;  %v3087_v47 = vadd.f32 1.0, %v5151_v56  ;;  %v7506_v33 = vadd.f32 %v7465_v11, %v3136_v0  ;;  %5172 = vtanh.f32 %v7494_v16 }
 0x73b   :  { %v5155_v23 = vpop.eup %5154  ;;  %v3088_v22 = vadd.f32 1.0, %v5153_v40  ;;  %5174 = vrcp.f32 %v3086_v46 }
 0x73c   :  { %v5157_v27 = vpop.eup %5156  ;;  %5176 = vrcp.f32 %v3087_v47 }
 0x73d   :  { %v5159_v7 = vpop.eup %5158  ;;  %5178 = vrcp.f32 %v3088_v22 }
 0x73e   :  { %v5161_v63 = vpop.eup %5160  ;;  %5180 = vtanh.f32 %v7498_v45 }
 0x73f   :  { %v5163_v19 = vpop.eup %5162  ;;  %5182 = vtanh.f32 %v7502_v32 }
 0x740   :  { %v5165_v14 = vpop.eup %5164  ;;  %5184 = vtanh.f32 %v7506_v33 }
 0x741   :  { %v5167_v11 = vpop.eup %5166  ;;  %v3161_v61 = vmul.f32 %v5165_v14, %v5155_v23 }
 0x742   :  { %v5169_v8 = vpop.eup %5168  ;;  %v3162_v42 = vmul.f32 %v5167_v11, %v5157_v27 }
 0x743   :  { %v5171_v24 = vpop.eup %5170  ;;  %v3163_v12 = vmul.f32 %v5169_v8, %v5159_v7  ;;  %3169 = vst [vmem:[%s7878_s4] sm:$0x20] %v3161_v61  ;;  %v3177_v10 = vpack.c.bf16 %v3161_v61, %v3161_v61 }
 0x744   :  { %v5173_v20 = vpop.eup %5172  ;;  %v3164_v18 = vmul.f32 %v5171_v24, %v5161_v63  ;;  %3170 = vst [vmem:[%s7878_s4 + $0x8] sm:$0x20] %v3162_v42  ;;  %v3178_v51 = vpack.c.bf16 %v3162_v42, %v3162_v42 }
 0x745   :  { %v5175_v35 = vpop.eup %5174  ;;  %v3165_v30 = vmul.f32 %v5173_v20, %v5163_v19  ;;  %3171 = vst [vmem:[%s7878_s4 + $0x10] sm:$0x20] %v3163_v12  ;;  %v3179_v13 = vpack.c.bf16 %v3163_v12, %v3163_v12  ;;  %v3193_v49 = vunpack.c.l.b16 %v3177_v10 }
 0x746   :  { %v5177_v38 = vpop.eup %5176  ;;  %3172 = vst [vmem:[%s7878_s4 + $0x18] sm:$0x20] %v3164_v18  ;;  %v3180_v58 = vpack.c.bf16 %v3164_v18, %v3164_v18  ;;  %v3194_v41 = vunpack.c.l.b16 %v3178_v51 }
 0x747   :  { %v5179_v55 = vpop.eup %5178  ;;  %3173 = vst [vmem:[%s7878_s4 + $0x20] sm:$0x20] %v3165_v30  ;;  %v3181_v54 = vpack.c.bf16 %v3165_v30, %v3165_v30  ;;  %v3195_v37 = vunpack.c.l.b16 %v3179_v13  ;;  %v3201_v0 = vrot.slane %v3193_v49, 5 }
 0x748   :  { %v5181_v56 = vpop.eup %5180  ;;  %v3196_v46 = vunpack.c.l.b16 %v3180_v58  ;;  %v3202_v40 = vrot.slane %v3194_v41, 4 }
 0x749   :  { %v5183_v47 = vpop.eup %5182  ;;  %v3166_v23 = vmul.f32 %v5181_v56, %v5175_v35  ;;  %v3197_v22 = vunpack.c.l.b16 %v3181_v54  ;;  %v3204_v27 = vrot.slane %v3195_v37, 3 }
 0x74a   :  { %v5185_v7 = vpop.eup %5184  ;;  %v3167_v63 = vmul.f32 %v5183_v47, %v5177_v38  ;;  %v3203_v19 = vsel %vm985_vm0, %v3202_v40, %v3201_v0  ;;  %v3206_v14 = vrot.slane %v3196_v46, 2 }
 0x74b   :  { %v3168_v11 = vmul.f32 %v5185_v7, %v5179_v55  ;;  %3174 = vst [vmem:[%s7878_s4 + $0x28] sm:$0x20] %v3166_v23  ;;  %v3182_v61 = vpack.c.bf16 %v3166_v23, %v3166_v23  ;;  %v3205_v8 = vsel %vm988_vm1, %v3204_v27, %v3203_v19  ;;  %v3208_v42 = vrot.slane %v3197_v22, 1  ;;  %v5537_v55 = vld [vmem:[%s7875_s2 + $0xe8] ss:$16 sps:$4 sm:$0xff]  }
 0x74c   :  { %3175 = vst [vmem:[%s7878_s4 + $0x30] sm:$0x20] %v3167_v63  ;;  %v3183_v24 = vpack.c.bf16 %v3167_v63, %v3167_v63  ;;  %v3207_v12 = vsel %vm991_vm2, %v3206_v14, %v3205_v8  ;;  %v8147_v8 = vld [vmem:[#allocation15_spill] sm:$0xff] }
 0x74d   :  { %3176 = vst [vmem:[%s7878_s4 + $0x38] sm:$0x20] %v3168_v11  ;;  %v3184_v10 = vpack.c.bf16 %v3168_v11, %v3168_v11  ;;  %v3198_v20 = vunpack.c.l.b16 %v3182_v61  ;;  %v3209_v18 = vsel %vm994_vm3, %v3208_v42, %v3207_v12  ;;  %v8146_v11 = vld [vmem:[#allocation14_spill] sm:$0xff] }
 0x74e   :  { %v3199_v51 = vunpack.c.l.b16 %v3183_v24  ;;  %v8148_v24 = vld [vmem:[#allocation16_spill] sm:$0xff] }
 0x74f   :  { %v3200_v35 = vunpack.c.l.b16 %v3184_v10  ;;  %v3210_v30 = vsel %vm997_vm4, %v3198_v20, %v3209_v18  ;;  %v8149_v10 = vld [vmem:[#allocation17_spill] sm:$0xff] }
 0x750   :  { %v3211_v13 = vrot.slane %v3199_v51, 7 }
 0x751   :  { %v3213_v49 = vrot.slane %v3200_v35, 6  ;;  %v8150_v35 = vld [vmem:[#allocation18_spill] sm:$0xff] }
 0x752   :  { %v3212_v38 = vsel %vm1000_vm5, %v3211_v13, %v3210_v30  ;;  %v8151_v13 = vld [vmem:[#allocation19_spill] sm:$0xff] }
 0x753   :  { %v3214_v58 = vsel %vm1003_vm6, %v3213_v49, %v3212_v38 }
 0x754   :  { %v3215_v41 = vpack.c.b16 %v3214_v58, %v3214_v58  ;;  %v8152_v58 = vld [vmem:[#allocation21_spill] sm:$0xff] }
 0x756   :  { %3250 = vmatmul.mubr.bf16.vlgmr.msra.gmra.mrb[40].mxu0 %v3215_v41  ;;  %3291 = vmatmul.mubr.bf16.vlgmr.msra.gmra.mrb[40].mxu1 %v3215_v41 }
 0x757   :  { %3660 = vmatpush1.bf16.msra.mxu0 %v7289_v62  ;;  %3701 = vmatpush1.bf16.msra.mxu1 %v7295_v57  ;;  %v5523_v62 = vld [vmem:[%s7875_s2 + $0x8c] ss:$16 sps:$4 sm:$0xff]   ;;  %v5524_v57 = vld [vmem:[%s7875_s2 + $0x80] ss:$16 sps:$4 sm:$0xff]  }
 0x758   :  { %3661 = vmatprep.subr.bf16.mxu0 %v7301_v3  ;;  %3702 = vmatprep.subr.bf16.mxu1 %v7307_v59  ;;  %v5525_v3 = vld [vmem:[%s7875_s2 + $0x88] ss:$16 sps:$4 sm:$0xff]   ;;  %v5526_v59 = vld [vmem:[%s7875_s2 + $0xa4] ss:$16 sps:$4 sm:$0xff]  }
 0x759   :  { %3691 = vmatprep.mubr.bf16.mxu0 %v8042_v9  ;;  %3732 = vmatprep.mubr.bf16.mxu1 %v8042_v9  ;;  %v5522_v9 = vld [vmem:[%s7875_s2 + $0x84] ss:$16 sps:$4 sm:$0xff]  }
 0x75b   :  { %3662 = vmatpush1.bf16.msra.mxu0 %v7315_v48  ;;  %3703 = vmatpush1.bf16.msra.mxu1 %v7321_v2  ;;  %v5527_v48 = vld [vmem:[%s7875_s2 + $0xac] ss:$16 sps:$4 sm:$0xff]   ;;  %v5528_v2 = vld [vmem:[%s7875_s2 + $0xa0] ss:$16 sps:$4 sm:$0xff]  }
 0x75c   :  { %3663 = vmatprep.subr.bf16.mxu0 %v7327_v1  ;;  %3704 = vmatprep.subr.bf16.mxu1 %v7333_v31  ;;  %v5529_v1 = vld [vmem:[%s7875_s2 + $0xa8] ss:$16 sps:$4 sm:$0xff]   ;;  %v5530_v31 = vld [vmem:[%s7875_s2 + $0xc4] ss:$16 sps:$4 sm:$0xff]  }
 0x75f   :  { %3664 = vmatpush1.bf16.msra.mxu0 %v7339_v5  ;;  %3705 = vmatpush1.bf16.msra.mxu1 %v7345_v36  ;;  %v5531_v5 = vld [vmem:[%s7875_s2 + $0xcc] ss:$16 sps:$4 sm:$0xff]   ;;  %v5532_v36 = vld [vmem:[%s7875_s2 + $0xc0] ss:$16 sps:$4 sm:$0xff]  }
 0x760   :  { %3665 = vmatprep.subr.bf16.mxu0 %v7351_v25  ;;  %3706 = vmatprep.subr.bf16.mxu1 %v7357_v17  ;;  %v5533_v25 = vld [vmem:[%s7875_s2 + $0xc8] ss:$16 sps:$4 sm:$0xff]   ;;  %v5534_v17 = vld [vmem:[%s7875_s2 + $0xe4] ss:$16 sps:$4 sm:$0xff]  }
 0x763   :  { %3666 = vmatpush1.bf16.msra.mxu0 %v7363_v29  ;;  %3707 = vmatpush1.bf16.msra.mxu1 %v7369_v52  ;;  %v5535_v29 = vld [vmem:[%s7875_s2 + $0xec] ss:$16 sps:$4 sm:$0xff]   ;;  %v5536_v52 = vld [vmem:[%s7875_s2 + $0xe0] ss:$16 sps:$4 sm:$0xff]  }
 0x764   :  { %3667 = vmatprep.subr.bf16.mxu0 %v5522_v9  ;;  %3708 = vmatprep.subr.bf16.mxu1 %v5523_v62 }
 0x767   :  { %3668 = vmatpush1.bf16.msra.mxu0 %v5524_v57  ;;  %3709 = vmatpush1.bf16.msra.mxu1 %v5525_v3 }
 0x768   :  { %3669 = vmatprep.subr.bf16.mxu0 %v5526_v59  ;;  %3710 = vmatprep.subr.bf16.mxu1 %v5527_v48 }
 0x76b   :  { %3670 = vmatpush1.bf16.msra.mxu0 %v5528_v2  ;;  %3711 = vmatpush1.bf16.msra.mxu1 %v5529_v1 }
 0x76c   :  { %3671 = vmatprep.subr.bf16.mxu0 %v5530_v31  ;;  %3712 = vmatprep.subr.bf16.mxu1 %v5531_v5 }
 0x76f   :  { %3672 = vmatpush1.bf16.msra.mxu0 %v5532_v36  ;;  %3713 = vmatpush1.bf16.msra.mxu1 %v5533_v25 }
 0x770   :  { %3673 = vmatprep.subr.bf16.mxu0 %v5534_v17  ;;  %3714 = vmatprep.subr.bf16.mxu1 %v5535_v29  ;;  %v8153_v17 = vld [vmem:[#allocation22_spill] sm:$0xff] }
 0x773   :  { %3674 = vmatpush1.bf16.msra.mxu0 %v5536_v52  ;;  %3715 = vmatpush1.bf16.msra.mxu1 %v5537_v55  ;;  %v8154_v52 = vld [vmem:[#allocation24_spill] sm:$0xff] }
 0x829   :  { %v3251_v54 = vpop.f32.mrb[40].mxu0  ;;  %v7607_v37 = vpop.f32.mrb[40].mxu1 }
 0x82a   :  { %v3303_v0 = vrot.slane %v3251_v54, 2  ;;  %v3307_v56 = vrot.slane %v3251_v54, 3  ;;  %v3311_v46 = vrot.slane %v3251_v54, 4  ;;  %v3315_v40 = vrot.slane %v3251_v54, 5  ;;  %v7609_v47 = vpop.f32.mrb[41].mxu0  ;;  %v7611_v23 = vpop.f32.mrb[41].mxu1 }
 0x82b   :  { %v3319_v22 = vrot.slane %v3251_v54, 6  ;;  %v3323_v27 = vrot.slane %v3251_v54, 7  ;;  %v3327_v7 = vrot.slane %v3251_v54, 1  ;;  %v3387_v63 = vadd.f32 %v3251_v54, %v8129_v53  ;;  %v3255_v19 = vpop.f32.mrb[42].mxu0  ;;  %v3296_v14 = vpop.f32.mrb[42].mxu1  ;;  %v8155_v54 = vld [vmem:[#allocation25_spill] sm:$0xff] }
 0x82c   :  { %v3363_v61 = vadd.f32 %v3303_v0, %v8146_v11  ;;  %v3367_v42 = vadd.f32 %v3307_v56, %v8147_v8  ;;  %v3371_v12 = vadd.f32 %v3311_v46, %v8148_v24  ;;  %v3375_v20 = vadd.f32 %v3315_v40, %v8149_v10  ;;  %v3256_v18 = vpop.f32.mrb[43].mxu0  ;;  %v3297_v51 = vpop.f32.mrb[43].mxu1  ;;  %v8156_v56 = vld [vmem:[#allocation28_spill] sm:$0xff]  ;;  %v8157_v40 = vld [vmem:[#allocation26_spill] sm:$0xff] }
 0x82d   :  { %v3379_v30 = vadd.f32 %v3319_v22, %v8150_v35  ;;  %v3383_v49 = vadd.f32 %v3323_v27, %v8151_v13  ;;  %v4279_v38 = vmul.f32 -1.442695, %v3387_v63  ;;  %v3391_v41 = vadd.f32 %v3327_v7, %v8152_v58 }
 0x82e   :  { %v4273_v9 = vmul.f32 -1.442695, %v3363_v61  ;;  %v4274_v62 = vmul.f32 -1.442695, %v3367_v42  ;;  %v4275_v57 = vmul.f32 -1.442695, %v3371_v12 }
 0x82f   :  { %v4276_v3 = vmul.f32 -1.442695, %v3375_v20  ;;  %5186 = vpow2.f32 %v4279_v38  ;;  %v4277_v59 = vmul.f32 -1.442695, %v3379_v30  ;;  %v3305_v48 = vrot.slane %v7607_v37, 2 }
 0x830   :  { %5188 = vpow2.f32 %v4273_v9  ;;  %v3309_v2 = vrot.slane %v7607_v37, 3  ;;  %v4278_v1 = vmul.f32 -1.442695, %v3383_v49  ;;  %v3313_v31 = vrot.slane %v7607_v37, 4 }
 0x831   :  { %5190 = vpow2.f32 %v4274_v62  ;;  %v4280_v5 = vmul.f32 -1.442695, %v3391_v41  ;;  %v3317_v36 = vrot.slane %v7607_v37, 5  ;;  %v3321_v25 = vrot.slane %v7607_v37, 6  ;;  %v8158_v62 = vld [vmem:[#allocation35_spill] sm:$0xff] }
 0x832   :  { %5192 = vpow2.f32 %v4275_v57  ;;  %v3365_v29 = vadd.f32 %v3305_v48, %v8153_v17  ;;  %v3369_v55 = vadd.f32 %v3309_v2, %v8154_v52  ;;  %v3373_v0 = vadd.f32 %v3313_v31, %v8155_v54 }
 0x833   :  { %5194 = vpow2.f32 %v4276_v3  ;;  %v3377_v46 = vadd.f32 %v3317_v36, %v8156_v56  ;;  %v3381_v22 = vadd.f32 %v3321_v25, %v8157_v40  ;;  %v3325_v19 = vrot.slane %v7607_v37, 7 }
 0x834   :  { %5196 = vpow2.f32 %v4277_v59  ;;  %v3304_v42 = vrot.slane %v7609_v47, 2  ;;  %v3308_v18 = vrot.slane %v7609_v47, 3  ;;  %v3329_v49 = vrot.slane %v7607_v37, 1 }
 0x835   :  { %5198 = vpow2.f32 %v4278_v1  ;;  %v3312_v38 = vrot.slane %v7609_v47, 4  ;;  %v3385_v57 = vadd.f32 %v3325_v19, %v8158_v62  ;;  %v3316_v3 = vrot.slane %v7609_v47, 5  ;;  %v8159_v1 = vld [vmem:[#allocation23_spill] sm:$0xff] }
 0x836   :  { %5200 = vpow2.f32 %v4280_v5  ;;  %v3320_v2 = vrot.slane %v7609_v47, 6  ;;  %v3364_v31 = vadd.f32 %v3304_v42, %v8159_v1  ;;  %v3324_v25 = vrot.slane %v7609_v47, 7 }
 0x837   :  { %5202 = vtanh.f32 %v3365_v29  ;;  %v8160_v29 = vld [vmem:[#allocation29_spill] sm:$0xff]  ;;  %v3328_v42 = vrot.slane %v7609_v47, 1 }
 0x838   :  { %5204 = vtanh.f32 %v3369_v55  ;;  %v3368_v55 = vadd.f32 %v3308_v18, %v8160_v29 }
 0x839   :  { %v5187_v27 = vpop.eup %5186  ;;  %5206 = vtanh.f32 %v3373_v0 }
 0x83a   :  { %v5189_v7 = vpop.eup %5188  ;;  %v3425_v63 = vadd.f32 1.0, %v5187_v27  ;;  %5208 = vtanh.f32 %v3377_v46 }
 0x83b   :  { %v5191_v14 = vpop.eup %5190  ;;  %v3419_v61 = vadd.f32 1.0, %v5189_v7  ;;  %5210 = vtanh.f32 %v3381_v22  ;;  %v8161_v22 = vld [vmem:[#allocation36_spill] sm:$0xff]  ;;  %v8162_v7 = vld [vmem:[#allocation31_spill] sm:$0xff] }
 0x83c   :  { %v5193_v12 = vpop.eup %5192  ;;  %v3420_v20 = vadd.f32 1.0, %v5191_v14  ;;  %5212 = vrcp.f32 %v3425_v63  ;;  %v3389_v27 = vadd.f32 %v7607_v37, %v8161_v22  ;;  %v3372_v63 = vadd.f32 %v3312_v38, %v8162_v7  ;;  %v8163_v14 = vld [vmem:[#allocation39_spill] sm:$0xff]  ;;  %v8166_v37 = vld [vmem:[#allocation37_spill] sm:$0xff] }
 0x83d   :  { %v5195_v51 = vpop.eup %5194  ;;  %v3421_v30 = vadd.f32 1.0, %v5193_v12  ;;  %5214 = vrcp.f32 %v3419_v61  ;;  %v3393_v61 = vadd.f32 %v3329_v49, %v8163_v14  ;;  %v8164_v12 = vld [vmem:[#allocation33_spill] sm:$0xff]  ;;  %v4282_v38 = vmul.f32 -1.442695, %v3368_v55  ;;  %v8167_v49 = vld [vmem:[#allocation38_spill] sm:$0xff] }
 0x83e   :  { %v5197_v41 = vpop.eup %5196  ;;  %v3422_v9 = vadd.f32 1.0, %v5195_v51  ;;  %5216 = vrcp.f32 %v3420_v20  ;;  %v3376_v20 = vadd.f32 %v3316_v3, %v8164_v12  ;;  %v3388_v14 = vadd.f32 %v7609_v47, %v8167_v49 }
 0x83f   :  { %v5199_v59 = vpop.eup %5198  ;;  %v3423_v48 = vadd.f32 1.0, %v5197_v41  ;;  %5218 = vrcp.f32 %v3421_v30  ;;  %v8165_v30 = vld [vmem:[#allocation34_spill] sm:$0xff]  ;;  %v4281_v41 = vmul.f32 -1.442695, %v3364_v31  ;;  %v4283_v3 = vmul.f32 -1.442695, %v3372_v63 }
 0x840   :  { %v5201_v5 = vpop.eup %5200  ;;  %v3424_v36 = vadd.f32 1.0, %v5199_v59  ;;  %5220 = vrcp.f32 %v3422_v9  ;;  %v3380_v18 = vadd.f32 %v3320_v2, %v8165_v30  ;;  %v3306_v9 = vrot.slane %v7611_v23, 2  ;;  %v8168_v2 = vld [vmem:[#allocation40_spill] sm:$0xff] }
 0x841   :  { %v5203_v0 = vpop.eup %5202  ;;  %v3426_v46 = vadd.f32 1.0, %v5201_v5  ;;  %5222 = vrcp.f32 %v3423_v48  ;;  %v3384_v48 = vadd.f32 %v3324_v25, %v8166_v37  ;;  %v3310_v5 = vrot.slane %v7611_v23, 3 }
 0x842   :  { %v5205_v19 = vpop.eup %5204  ;;  %5224 = vrcp.f32 %v3424_v36  ;;  %v3392_v31 = vadd.f32 %v3328_v42, %v8168_v2  ;;  %v4284_v30 = vmul.f32 -1.442695, %v3376_v20  ;;  %v4285_v25 = vmul.f32 -1.442695, %v3380_v18 }
 0x843   :  { %v5207_v51 = vpop.eup %5206  ;;  %5226 = vrcp.f32 %v3426_v46  ;;  %v3314_v46 = vrot.slane %v7611_v23, 4  ;;  %v3322_v55 = vrot.slane %v7611_v23, 6  ;;  %v4286_v47 = vmul.f32 -1.442695, %v3384_v48 }
 0x844   :  { %v5209_v59 = vpop.eup %5208  ;;  %5228 = vtanh.f32 %v3385_v57  ;;  %v3318_v57 = vrot.slane %v7611_v23, 5  ;;  %v3370_v63 = vadd.f32 %v3310_v5, %v8071_v44  ;;  %v4287_v42 = vmul.f32 -1.442695, %v3388_v14 }
 0x845   :  { %v5211_v36 = vpop.eup %5210  ;;  %5230 = vtanh.f32 %v3389_v27  ;;  %v3366_v27 = vadd.f32 %v3306_v9, %v8041_v6  ;;  %v3374_v20 = vadd.f32 %v3314_v46, %v8096_v26  ;;  %v4288_v2 = vmul.f32 -1.442695, %v3392_v31 }
 0x846   :  { %v5213_v12 = vpop.eup %5212  ;;  %5232 = vtanh.f32 %v3393_v61  ;;  %v3378_v9 = vadd.f32 %v3318_v57, %v6070_v21  ;;  %v3382_v48 = vadd.f32 %v3322_v55, %v6084_v50  ;;  %v4290_v14 = vmul.f32 -1.442695, %v3370_v63 }
 0x847   :  { %v5215_v7 = vpop.eup %5214  ;;  %5234 = vpow2.f32 %v4281_v41  ;;  %v3326_v55 = vrot.slane %v7611_v23, 7 }
 0x848   :  { %v5217_v37 = vpop.eup %5216  ;;  %v7659_v29 = vmul.f32 %v5215_v7, %v5203_v0  ;;  %5236 = vpow2.f32 %v4282_v38  ;;  %v4289_v38 = vmul.f32 -1.442695, %v3366_v27 }
 0x849   :  { %v5219_v61 = vpop.eup %5218  ;;  %v7662_v49 = vmul.f32 %v5217_v37, %v5205_v19  ;;  %5238 = vpow2.f32 %v4283_v3 }
 0x84a   :  { %v5221_v41 = vpop.eup %5220  ;;  %v7665_v18 = vmul.f32 %v5219_v61, %v5207_v51  ;;  %5240 = vpow2.f32 %v4284_v30  ;;  %v4291_v51 = vmul.f32 -1.442695, %v3374_v20  ;;  %v4292_v30 = vmul.f32 -1.442695, %v3378_v9 }
 0x84b   :  { %v5223_v0 = vpop.eup %5222  ;;  %v7668_v7 = vmul.f32 %v5221_v41, %v5209_v59  ;;  %5242 = vpow2.f32 %v4285_v25  ;;  %v4293_v59 = vmul.f32 -1.442695, %v3382_v48  ;;  %v3390_v48 = vadd.f32 %v7611_v23, %v6158_v43 }
 0x84c   :  { %v5225_v19 = vpop.eup %5224  ;;  %v7671_v37 = vmul.f32 %v5223_v0, %v5211_v36  ;;  %5244 = vpow2.f32 %v4286_v47 }
 0x84d   :  { %v5227_v5 = vpop.eup %5226  ;;  %5246 = vpow2.f32 %v4287_v42 }
 0x84e   :  { %v5229_v3 = vpop.eup %5228  ;;  %5248 = vpow2.f32 %v4288_v2  ;;  %v3330_v2 = vrot.slane %v7611_v23, 1 }
 0x84f   :  { %v5231_v46 = vpop.eup %5230  ;;  %v7673_v31 = vmul.f32 %v5229_v3, %v5225_v19  ;;  %5250 = vpow2.f32 %v4289_v38 }
 0x850   :  { %v5233_v57 = vpop.eup %5232  ;;  %v7675_v25 = vmul.f32 %v5231_v46, %v5213_v12  ;;  %5252 = vpow2.f32 %v4290_v14  ;;  %v3386_v12 = vadd.f32 %v3326_v55, %v6151_v28  ;;  %v3394_v14 = vadd.f32 %v3330_v2, %v6165_v39 }
 0x851   :  { %v5235_v36 = vpop.eup %5234  ;;  %5254 = vpow2.f32 %v4291_v51  ;;  %v7678_v27 = vmul.f32 %v5233_v57, %v5227_v5  ;;  %v4295_v55 = vmul.f32 -1.442695, %v3390_v48 }
 0x852   :  { %v5237_v47 = vpop.eup %5236  ;;  %v3467_v63 = vadd.f32 1.0, %v5235_v36  ;;  %5256 = vpow2.f32 %v4292_v30  ;;  %v4294_v46 = vmul.f32 -1.442695, %v3386_v12  ;;  %v3556_v12 = vrot.slane %v7482_v34, 7 }
 0x853   :  { %v5239_v61 = vpop.eup %5238  ;;  %v3468_v42 = vadd.f32 1.0, %v5237_v47  ;;  %5258 = vpow2.f32 %v4293_v59  ;;  %v4296_v47 = vmul.f32 -1.442695, %v3394_v14 }
 0x854   :  { %v5241_v20 = vpop.eup %5240  ;;  %v3469_v41 = vadd.f32 1.0, %v5239_v61  ;;  %5260 = vrcp.f32 %v3467_v63 }
 0x855   :  { %v5243_v9 = vpop.eup %5242  ;;  %v3470_v0 = vadd.f32 1.0, %v5241_v20  ;;  %5262 = vrcp.f32 %v3468_v42  ;;  %v3555_v20 = vrot.slane %v7478_v4, 7  ;;  %v3559_v4 = vrot.slane %v7494_v16, 7 }
 0x856   :  { %v5245_v38 = vpop.eup %5244  ;;  %v3471_v19 = vadd.f32 1.0, %v5243_v9  ;;  %5264 = vrcp.f32 %v3469_v41 }
 0x857   :  { %v5247_v5 = vpop.eup %5246  ;;  %v3472_v51 = vadd.f32 1.0, %v5245_v38  ;;  %5266 = vrcp.f32 %v3470_v0  ;;  %v3557_v38 = vrot.slane %v7486_v60, 7 }
 0x858   :  { %v5249_v3 = vpop.eup %5248  ;;  %v3473_v30 = vadd.f32 1.0, %v5247_v5  ;;  %5268 = vrcp.f32 %v3471_v19 }
 0x859   :  { %v5251_v59 = vpop.eup %5250  ;;  %v3474_v57 = vadd.f32 1.0, %v5249_v3  ;;  %5270 = vrcp.f32 %v3472_v51  ;;  %v3558_v51 = vrot.slane %v7490_v15, 7  ;;  %v3561_v15 = vrot.slane %v7502_v32, 7 }
 0x85a   :  { %v5253_v36 = vpop.eup %5252  ;;  %5272 = vrcp.f32 %v3473_v30  ;;  %v3523_v63 = vadd.f32 1.0, %v5251_v59 }
 0x85b   :  { %v5255_v23 = vpop.eup %5254  ;;  %5274 = vrcp.f32 %v3474_v57  ;;  %v3524_v2 = vadd.f32 1.0, %v5253_v36  ;;  %v3560_v57 = vrot.slane %v7498_v45, 7 }
 0x85c   :  { %v5257_v61 = vpop.eup %5256  ;;  %5276 = vpow2.f32 %v4294_v46  ;;  %v3525_v41 = vadd.f32 1.0, %v5255_v23 }
 0x85d   :  { %v5259_v42 = vpop.eup %5258  ;;  %5278 = vpow2.f32 %v4295_v55  ;;  %v3526_v0 = vadd.f32 1.0, %v5257_v61 }
 0x85e   :  { %v5261_v9 = vpop.eup %5260  ;;  %5280 = vpow2.f32 %v4296_v47  ;;  %v3527_v14 = vadd.f32 1.0, %v5259_v42 }
 0x85f   :  { %v5263_v48 = vpop.eup %5262  ;;  %v3571_v19 = vmul.f32 %v5261_v9, %v3555_v20  ;;  %5282 = vrcp.f32 %v3523_v63 }
 0x860   :  { %v5265_v5 = vpop.eup %5264  ;;  %v3572_v3 = vmul.f32 %v5263_v48, %v3556_v12  ;;  %5284 = vrcp.f32 %v3524_v2 }
 0x861   :  { %v5267_v30 = vpop.eup %5266  ;;  %v3573_v46 = vmul.f32 %v5265_v5, %v3557_v38  ;;  %v7691_v59 = vadd.f32 %v7659_v29, %v3571_v19  ;;  %5286 = vrcp.f32 %v3525_v41  ;;  %v3562_v29 = vrot.slane %v7506_v33, 7 }
 0x862   :  { %v5269_v34 = vpop.eup %5268  ;;  %v3574_v60 = vmul.f32 %v5267_v30, %v3558_v51  ;;  %v7695_v55 = vadd.f32 %v7662_v49, %v3572_v3  ;;  %5288 = vrcp.f32 %v3526_v0 }
 0x863   :  { %v5271_v36 = vpop.eup %5270  ;;  %v7699_v47 = vadd.f32 %v7665_v18, %v3573_v46  ;;  %5290 = vrcp.f32 %v3527_v14  ;;  %v3575_v16 = vmul.f32 %v5269_v34, %v3559_v4 }
 0x864   :  { %v5273_v23 = vpop.eup %5272  ;;  %v3576_v63 = vmul.f32 %v5271_v36, %v3560_v57  ;;  %v7703_v61 = vadd.f32 %v7668_v7, %v3574_v60  ;;  %5292 = vtanh.f32 %v7691_v59 }
 0x865   :  { %v5275_v45 = vpop.eup %5274  ;;  %v3577_v49 = vmul.f32 %v5273_v23, %v3561_v15  ;;  %v7707_v2 = vadd.f32 %v7671_v37, %v3575_v16  ;;  %5294 = vtanh.f32 %v7695_v55 }
 0x866   :  { %v5277_v32 = vpop.eup %5276  ;;  %v3578_v18 = vmul.f32 %v5275_v45, %v3562_v29  ;;  %v7711_v42 = vadd.f32 %v7673_v31, %v3576_v63  ;;  %5296 = vtanh.f32 %v7699_v47 }
 0x867   :  { %v5279_v33 = vpop.eup %5278  ;;  %v3528_v20 = vadd.f32 1.0, %v5277_v32  ;;  %v7715_v7 = vadd.f32 %v7675_v25, %v3577_v49  ;;  %5298 = vtanh.f32 %v7703_v61 }
 0x868   :  { %v5281_v41 = vpop.eup %5280  ;;  %v3529_v9 = vadd.f32 1.0, %v5279_v33  ;;  %v7719_v37 = vadd.f32 %v7678_v27, %v3578_v18  ;;  %5300 = vtanh.f32 %v7707_v2 }
 0x869   :  { %v5283_v12 = vpop.eup %5282  ;;  %v3530_v0 = vadd.f32 1.0, %v5281_v41  ;;  %5302 = vrcp.f32 %v3528_v20 }
 0x86a   :  { %v5285_v31 = vpop.eup %5284  ;;  %5304 = vrcp.f32 %v3529_v9 }
 0x86b   :  { %v5287_v48 = vpop.eup %5286  ;;  %5306 = vrcp.f32 %v3530_v0 }
 0x86c   :  { %v5289_v38 = vpop.eup %5288  ;;  %5308 = vtanh.f32 %v7711_v42 }
 0x86d   :  { %v5291_v25 = vpop.eup %5290  ;;  %5310 = vtanh.f32 %v7715_v7 }
 0x86e   :  { %v5293_v19 = vpop.eup %5292  ;;  %5312 = vtanh.f32 %v7719_v37 }
 0x86f   :  { %v5295_v27 = vpop.eup %5294  ;;  %v3603_v14 = vmul.f32 %v5293_v19, %v5283_v12 }
 0x870   :  { %v5297_v5 = vpop.eup %5296  ;;  %v3604_v51 = vmul.f32 %v5295_v27, %v5285_v31 }
 0x871   :  { %v5299_v3 = vpop.eup %5298  ;;  %v3605_v30 = vmul.f32 %v5297_v5, %v5287_v48  ;;  %3611 = vst [vmem:[%s7878_s4] sm:$0x40] %v3603_v14  ;;  %v3619_v4 = vpack.c.bf16 %v3603_v14, %v3603_v14 }
 0x872   :  { %v5301_v46 = vpop.eup %5300  ;;  %v3606_v34 = vmul.f32 %v5299_v3, %v5289_v38  ;;  %3612 = vst [vmem:[%s7878_s4 + $0x8] sm:$0x40] %v3604_v51  ;;  %v3620_v57 = vpack.c.bf16 %v3604_v51, %v3604_v51 }
 0x873   :  { %v5303_v60 = vpop.eup %5302  ;;  %v3607_v36 = vmul.f32 %v5301_v46, %v5291_v25  ;;  %3613 = vst [vmem:[%s7878_s4 + $0x10] sm:$0x40] %v3605_v30  ;;  %v3621_v15 = vpack.c.bf16 %v3605_v30, %v3605_v30  ;;  %v3635_v16 = vunpack.c.l.b16 %v3619_v4 }
 0x874   :  { %v5305_v23 = vpop.eup %5304  ;;  %3614 = vst [vmem:[%s7878_s4 + $0x18] sm:$0x40] %v3606_v34  ;;  %v3622_v29 = vpack.c.bf16 %v3606_v34, %v3606_v34  ;;  %v3636_v63 = vunpack.c.l.b16 %v3620_v57 }
 0x875   :  { %v5307_v45 = vpop.eup %5306  ;;  %3615 = vst [vmem:[%s7878_s4 + $0x20] sm:$0x40] %v3607_v36  ;;  %v3623_v49 = vpack.c.bf16 %v3607_v36, %v3607_v36  ;;  %v3637_v32 = vunpack.c.l.b16 %v3621_v15  ;;  %v3643_v18 = vrot.slane %v3635_v16, 6 }
 0x876   :  { %v5309_v33 = vpop.eup %5308  ;;  %v3638_v20 = vunpack.c.l.b16 %v3622_v29  ;;  %v3644_v41 = vrot.slane %v3636_v63, 5 }
 0x877   :  { %v5311_v9 = vpop.eup %5310  ;;  %v3608_v12 = vmul.f32 %v5309_v33, %v5303_v60  ;;  %v3639_v0 = vunpack.c.l.b16 %v3623_v49  ;;  %v3646_v31 = vrot.slane %v3637_v32, 4 }
 0x878   :  { %v5313_v48 = vpop.eup %5312  ;;  %v3609_v38 = vmul.f32 %v5311_v9, %v5305_v23  ;;  %v3645_v25 = vsel %vm985_vm0, %v3644_v41, %v3643_v18  ;;  %v3648_v19 = vrot.slane %v3638_v20, 3 }
 0x879   :  { %v3610_v27 = vmul.f32 %v5313_v48, %v5307_v45  ;;  %3616 = vst [vmem:[%s7878_s4 + $0x28] sm:$0x40] %v3608_v12  ;;  %v3624_v14 = vpack.c.bf16 %v3608_v12, %v3608_v12  ;;  %v3647_v5 = vsel %vm988_vm1, %v3646_v31, %v3645_v25  ;;  %v3650_v51 = vrot.slane %v3639_v0, 2 }
 0x87a   :  { %3617 = vst [vmem:[%s7878_s4 + $0x30] sm:$0x40] %v3609_v38  ;;  %v3625_v3 = vpack.c.bf16 %v3609_v38, %v3609_v38  ;;  %v3649_v30 = vsel %vm991_vm2, %v3648_v19, %v3647_v5 }
 0x87b   :  { %3618 = vst [vmem:[%s7878_s4 + $0x38] sm:$0x40] %v3610_v27  ;;  %v3626_v4 = vpack.c.bf16 %v3610_v27, %v3610_v27  ;;  %v3640_v46 = vunpack.c.l.b16 %v3624_v14  ;;  %v3651_v34 = vsel %vm994_vm3, %v3650_v51, %v3649_v30 }
 0x87c   :  { %v3641_v36 = vunpack.c.l.b16 %v3625_v3 }
 0x87d   :  { %v3642_v57 = vunpack.c.l.b16 %v3626_v4  ;;  %v3652_v60 = vrot.slane %v3640_v46, 1 }
 0x87f   :  { %v3653_v15 = vsel %vm997_vm4, %v3652_v60, %v3651_v34  ;;  %v3655_v16 = vrot.slane %v3642_v57, 7 }
 0x880   :  { %v3654_v23 = vsel %vm1000_vm5, %v3641_v36, %v3653_v15 }
 0x881   :  { %v3656_v29 = vsel %vm1003_vm6, %v3655_v16, %v3654_v23 }
 0x882   :  { %v3657_v63 = vpack.c.b16 %v3656_v29, %v3656_v29 }
 0x884   :  { %3692 = vmatmul.mubr.bf16.vlgmr.msra.gmra.mrb[44].mxu0 %v3657_v63  ;;  %3733 = vmatmul.mubr.bf16.vlgmr.msra.gmra.mrb[44].mxu1 %v3657_v63 }
 0x957   :  { %v3693_v45 = vpop.f32.mrb[44].mxu0  ;;  %v7756_v49 = vpop.f32.mrb[44].mxu1 }
 0x958   :  { %v3745_v32 = vrot.slane %v3693_v45, 1  ;;  %v3749_v18 = vrot.slane %v3693_v45, 2  ;;  %v3753_v33 = vrot.slane %v3693_v45, 3  ;;  %v3757_v20 = vrot.slane %v3693_v45, 4  ;;  %v7758_v41 = vpop.f32.mrb[45].mxu0  ;;  %v7760_v9 = vpop.f32.mrb[45].mxu1 }
 0x959   :  { %v3761_v12 = vrot.slane %v3693_v45, 5  ;;  %v3765_v0 = vrot.slane %v3693_v45, 6  ;;  %v3769_v31 = vrot.slane %v3693_v45, 7  ;;  %v3833_v48 = vadd.f32 %v3693_v45, %v8152_v58  ;;  %v3697_v38 = vpop.f32.mrb[46].mxu0  ;;  %v3738_v25 = vpop.f32.mrb[46].mxu1 }
 0x95a   :  { %v3805_v19 = vadd.f32 %v3745_v32, %v8146_v11  ;;  %v3809_v27 = vadd.f32 %v3749_v18, %v8147_v8  ;;  %v3813_v14 = vadd.f32 %v3753_v33, %v8148_v24  ;;  %v3817_v5 = vadd.f32 %v3757_v20, %v8149_v10  ;;  %v3698_v51 = vpop.f32.mrb[47].mxu0  ;;  %v3739_v3 = vpop.f32.mrb[47].mxu1 }
 0x95b   :  { %v3821_v30 = vadd.f32 %v3761_v12, %v8150_v35  ;;  %v3825_v4 = vadd.f32 %v3765_v0, %v8151_v13  ;;  %v4304_v46 = vmul.f32 -1.442695, %v3833_v48  ;;  %v3829_v34 = vadd.f32 %v3769_v31, %v8129_v53 }
 0x95c   :  { %v4297_v58 = vmul.f32 -1.442695, %v3805_v19  ;;  %v4298_v57 = vmul.f32 -1.442695, %v3809_v27  ;;  %v4299_v60 = vmul.f32 -1.442695, %v3813_v14 }
 0x95d   :  { %v4300_v36 = vmul.f32 -1.442695, %v3817_v5  ;;  %5314 = vpow2.f32 %v4304_v46  ;;  %v4301_v11 = vmul.f32 -1.442695, %v3821_v30  ;;  %v3747_v8 = vrot.slane %v7756_v49, 1 }
 0x95e   :  { %5316 = vpow2.f32 %v4297_v58  ;;  %v3751_v24 = vrot.slane %v7756_v49, 2  ;;  %v4302_v10 = vmul.f32 -1.442695, %v3825_v4  ;;  %v3755_v35 = vrot.slane %v7756_v49, 3  ;;  %v8169_v58 = vld [vmem:[#allocation29_spill] sm:$0xff] }
 0x95f   :  { %5318 = vpow2.f32 %v4298_v57  ;;  %v4303_v13 = vmul.f32 -1.442695, %v3829_v34  ;;  %v3759_v15 = vrot.slane %v7756_v49, 4  ;;  %v3763_v53 = vrot.slane %v7756_v49, 5 }
 0x960   :  { %5320 = vpow2.f32 %v4299_v60  ;;  %v3807_v16 = vadd.f32 %v3747_v8, %v8153_v17  ;;  %v3811_v23 = vadd.f32 %v3751_v24, %v8154_v52  ;;  %v3815_v29 = vadd.f32 %v3755_v35, %v8155_v54 }
 0x961   :  { %5322 = vpow2.f32 %v4300_v36  ;;  %v3819_v63 = vadd.f32 %v3759_v15, %v8156_v56  ;;  %v3823_v45 = vadd.f32 %v3763_v53, %v8157_v40  ;;  %v3767_v18 = vrot.slane %v7756_v49, 6  ;;  %v8173_v53 = vld [vmem:[#allocation34_spill] sm:$0xff] }
 0x962   :  { %5324 = vpow2.f32 %v4301_v11  ;;  %v3771_v17 = vrot.slane %v7756_v49, 7  ;;  %v3746_v54 = vrot.slane %v7758_v41, 1  ;;  %v3750_v40 = vrot.slane %v7758_v41, 2  ;;  %v8170_v11 = vld [vmem:[#allocation31_spill] sm:$0xff] }
 0x963   :  { %5326 = vpow2.f32 %v4302_v10  ;;  %v3827_v38 = vadd.f32 %v3767_v18, %v8158_v62  ;;  %v3754_v25 = vrot.slane %v7758_v41, 3  ;;  %v3758_v5 = vrot.slane %v7758_v41, 4  ;;  %v8171_v10 = vld [vmem:[#allocation39_spill] sm:$0xff] }
 0x964   :  { %5328 = vpow2.f32 %v4303_v13  ;;  %v3831_v14 = vadd.f32 %v3771_v17, %v8161_v22  ;;  %v3762_v30 = vrot.slane %v7758_v41, 5  ;;  %v3806_v4 = vadd.f32 %v3746_v54, %v8159_v1  ;;  %v8172_v1 = vld [vmem:[#allocation33_spill] sm:$0xff]  ;;  %v8175_v17 = vld [vmem:[#allocation38_spill] sm:$0xff] }
 0x965   :  { %5330 = vtanh.f32 %v3807_v16  ;;  %v3766_v62 = vrot.slane %v7758_v41, 6  ;;  %v3810_v57 = vadd.f32 %v3750_v40, %v8169_v58  ;;  %v3770_v22 = vrot.slane %v7758_v41, 7 }
 0x966   :  { %5332 = vtanh.f32 %v3811_v23  ;;  %v3814_v8 = vadd.f32 %v3754_v25, %v8170_v11  ;;  %v3835_v35 = vadd.f32 %v7756_v49, %v8171_v10  ;;  %v3818_v13 = vadd.f32 %v3758_v5, %v8172_v1 }
 0x967   :  { %v5315_v32 = vpop.eup %5314  ;;  %5334 = vtanh.f32 %v3815_v29  ;;  %v3822_v16 = vadd.f32 %v3762_v30, %v8173_v53  ;;  %v4305_v23 = vmul.f32 -1.442695, %v3806_v4  ;;  %v3748_v29 = vrot.slane %v7760_v9, 1 }
 0x968   :  { %v5317_v33 = vpop.eup %5316  ;;  %v3868_v20 = vadd.f32 1.0, %v5315_v32  ;;  %5336 = vtanh.f32 %v3819_v63  ;;  %v4306_v18 = vmul.f32 -1.442695, %v3810_v57  ;;  %v3830_v49 = vadd.f32 %v3770_v22, %v8175_v17 }
 0x969   :  { %v5319_v52 = vpop.eup %5318  ;;  %v3861_v12 = vadd.f32 1.0, %v5317_v33  ;;  %5338 = vtanh.f32 %v3823_v45  ;;  %v8174_v45 = vld [vmem:[#allocation37_spill] sm:$0xff]  ;;  %v3752_v33 = vrot.slane %v7760_v9, 2  ;;  %v4308_v40 = vmul.f32 -1.442695, %v3818_v13 }
 0x96a   :  { %v5321_v0 = vpop.eup %5320  ;;  %v3862_v56 = vadd.f32 1.0, %v5319_v52  ;;  %5340 = vrcp.f32 %v3868_v20  ;;  %v3826_v32 = vadd.f32 %v3766_v62, %v8174_v45  ;;  %v4307_v52 = vmul.f32 -1.442695, %v3814_v8 }
 0x96b   :  { %v5323_v31 = vpop.eup %5322  ;;  %v3863_v48 = vadd.f32 1.0, %v5321_v0  ;;  %5342 = vrcp.f32 %v3861_v12  ;;  %v3756_v12 = vrot.slane %v7760_v9, 3  ;;  %v8176_v0 = vld [vmem:[#allocation40_spill] sm:$0xff]  ;;  %v3764_v25 = vrot.slane %v7760_v9, 5 }
 0x96c   :  { %v5325_v19 = vpop.eup %5324  ;;  %v3864_v27 = vadd.f32 1.0, %v5323_v31  ;;  %5344 = vrcp.f32 %v3862_v56  ;;  %v3834_v56 = vadd.f32 %v7758_v41, %v8176_v0  ;;  %v3760_v31 = vrot.slane %v7760_v9, 4 }
 0x96d   :  { %v5327_v51 = vpop.eup %5326  ;;  %v3865_v3 = vadd.f32 1.0, %v5325_v19  ;;  %5346 = vrcp.f32 %v3863_v48  ;;  %v3808_v19 = vadd.f32 %v3748_v29, %v8041_v6  ;;  %v4310_v5 = vmul.f32 -1.442695, %v3826_v32 }
 0x96e   :  { %v5329_v46 = vpop.eup %5328  ;;  %v3866_v34 = vadd.f32 1.0, %v5327_v51  ;;  %5348 = vrcp.f32 %v3864_v27  ;;  %v3812_v51 = vadd.f32 %v3752_v33, %v8071_v44  ;;  %v4311_v41 = vmul.f32 -1.442695, %v3830_v49 }
 0x96f   :  { %v5331_v60 = vpop.eup %5330  ;;  %v3867_v36 = vadd.f32 1.0, %v5329_v46  ;;  %5350 = vrcp.f32 %v3865_v3  ;;  %v3816_v4 = vadd.f32 %v3756_v12, %v8096_v26  ;;  %v4312_v62 = vmul.f32 -1.442695, %v3834_v56 }
 0x970   :  { %v5333_v24 = vpop.eup %5332  ;;  %5352 = vrcp.f32 %v3866_v34  ;;  %v3820_v6 = vadd.f32 %v3760_v31, %v6070_v21  ;;  %v3824_v44 = vadd.f32 %v3764_v25, %v6084_v50  ;;  %v4314_v11 = vmul.f32 -1.442695, %v3812_v51 }
 0x971   :  { %v5335_v15 = vpop.eup %5334  ;;  %5354 = vrcp.f32 %v3867_v36  ;;  %v4315_v8 = vmul.f32 -1.442695, %v3816_v4  ;;  %v3768_v50 = vrot.slane %v7760_v9, 6  ;;  %v3836_v0 = vadd.f32 %v7760_v9, %v6165_v39 }
 0x972   :  { %v5337_v63 = vpop.eup %5336  ;;  %5356 = vtanh.f32 %v3827_v38  ;;  %v4309_v38 = vmul.f32 -1.442695, %v3822_v16  ;;  %v4316_v10 = vmul.f32 -1.442695, %v3820_v6  ;;  %v4317_v1 = vmul.f32 -1.442695, %v3824_v44 }
 0x973   :  { %v5339_v20 = vpop.eup %5338  ;;  %5358 = vtanh.f32 %v3831_v14  ;;  %v3999_v44 = vrot.slane %v7699_v47, 7 }
 0x974   :  { %v5341_v54 = vpop.eup %5340  ;;  %5360 = vtanh.f32 %v3835_v35 }
 0x975   :  { %v5343_v48 = vpop.eup %5342  ;;  %5362 = vpow2.f32 %v4305_v23  ;;  %v3772_v23 = vrot.slane %v7760_v9, 7 }
 0x976   :  { %v5345_v27 = vpop.eup %5344  ;;  %v7808_v14 = vmul.f32 %v5343_v48, %v5331_v60  ;;  %5364 = vpow2.f32 %v4306_v18  ;;  %v4313_v60 = vmul.f32 -1.442695, %v3808_v19 }
 0x977   :  { %v5347_v3 = vpop.eup %5346  ;;  %v7811_v30 = vmul.f32 %v5345_v27, %v5333_v24  ;;  %5366 = vpow2.f32 %v4307_v52  ;;  %v3832_v52 = vadd.f32 %v3772_v23, %v6158_v43  ;;  %v4320_v43 = vmul.f32 -1.442695, %v3836_v0 }
 0x978   :  { %v5349_v46 = vpop.eup %5348  ;;  %v7814_v34 = vmul.f32 %v5347_v3, %v5335_v15  ;;  %5368 = vpow2.f32 %v4308_v40 }
 0x979   :  { %v5351_v58 = vpop.eup %5350  ;;  %v7817_v57 = vmul.f32 %v5349_v46, %v5337_v63  ;;  %5370 = vpow2.f32 %v4309_v38  ;;  %v4319_v19 = vmul.f32 -1.442695, %v3832_v52 }
 0x97a   :  { %v5353_v36 = vpop.eup %5352  ;;  %v7820_v22 = vmul.f32 %v5351_v58, %v5339_v20  ;;  %5372 = vpow2.f32 %v4310_v5  ;;  %v3828_v20 = vadd.f32 %v3768_v50, %v6151_v28  ;;  %v4003_v50 = vrot.slane %v7715_v7, 7 }
 0x97b   :  { %v5355_v26 = vpop.eup %5354  ;;  %5374 = vpow2.f32 %v4311_v41  ;;  %v3997_v41 = vrot.slane %v7691_v59, 7  ;;  %v4001_v59 = vrot.slane %v7707_v2, 7  ;;  %v4004_v2 = vrot.slane %v7719_v37, 7 }
 0x97c   :  { %v5357_v24 = vpop.eup %5356  ;;  %5376 = vpow2.f32 %v4312_v62  ;;  %v4318_v38 = vmul.f32 -1.442695, %v3828_v20  ;;  %v3998_v62 = vrot.slane %v7695_v55, 7 }
 0x97d   :  { %v5359_v35 = vpop.eup %5358  ;;  %v7822_v21 = vmul.f32 %v5357_v24, %v5353_v36  ;;  %5378 = vpow2.f32 %v4313_v60 }
 0x97e   :  { %v5361_v13 = vpop.eup %5360  ;;  %v7824_v15 = vmul.f32 %v5359_v35, %v5355_v26  ;;  %5380 = vpow2.f32 %v4314_v11  ;;  %v4000_v11 = vrot.slane %v7703_v61, 7  ;;  %v4002_v35 = vrot.slane %v7711_v42, 7 }
 0x97f   :  { %v5363_v53 = vpop.eup %5362  ;;  %v7827_v16 = vmul.f32 %v5361_v13, %v5341_v54  ;;  %5382 = vpow2.f32 %v4315_v8 }
 0x980   :  { %v5365_v29 = vpop.eup %5364  ;;  %v3909_v63 = vadd.f32 1.0, %v5363_v53  ;;  %5384 = vpow2.f32 %v4316_v10 }
 0x981   :  { %v5367_v45 = vpop.eup %5366  ;;  %v3910_v32 = vadd.f32 1.0, %v5365_v29  ;;  %5386 = vpow2.f32 %v4317_v1 }
 0x982   :  { %v5369_v18 = vpop.eup %5368  ;;  %v3911_v33 = vadd.f32 1.0, %v5367_v45  ;;  %5388 = vrcp.f32 %v3909_v63 }
 0x983   :  { %v5371_v17 = vpop.eup %5370  ;;  %v3912_v49 = vadd.f32 1.0, %v5369_v18  ;;  %5390 = vrcp.f32 %v3910_v32 }
 0x984   :  { %v5373_v12 = vpop.eup %5372  ;;  %v3913_v54 = vadd.f32 1.0, %v5371_v17  ;;  %5392 = vrcp.f32 %v3911_v33 }
 0x985   :  { %v5375_v56 = vpop.eup %5374  ;;  %v3914_v40 = vadd.f32 1.0, %v5373_v12  ;;  %5394 = vrcp.f32 %v3912_v49 }
 0x986   :  { %v5377_v31 = vpop.eup %5376  ;;  %v3915_v48 = vadd.f32 1.0, %v5375_v56  ;;  %5396 = vrcp.f32 %v3913_v54 }
 0x987   :  { %v5379_v25 = vpop.eup %5378  ;;  %v3916_v28 = vadd.f32 1.0, %v5377_v31  ;;  %5398 = vrcp.f32 %v3914_v40 }
 0x988   :  { %v5381_v27 = vpop.eup %5380  ;;  %5400 = vrcp.f32 %v3915_v48  ;;  %v3965_v51 = vadd.f32 1.0, %v5379_v25 }
 0x989   :  { %v5383_v5 = vpop.eup %5382  ;;  %5402 = vrcp.f32 %v3916_v28  ;;  %v3966_v39 = vadd.f32 1.0, %v5381_v27 }
 0x98a   :  { %v5385_v3 = vpop.eup %5384  ;;  %5404 = vpow2.f32 %v4318_v38  ;;  %v3967_v4 = vadd.f32 1.0, %v5383_v5 }
 0x98b   :  { %v5387_v9 = vpop.eup %5386  ;;  %5406 = vpow2.f32 %v4319_v19  ;;  %v3968_v6 = vadd.f32 1.0, %v5385_v3 }
 0x98c   :  { %v5389_v46 = vpop.eup %5388  ;;  %5408 = vpow2.f32 %v4320_v43  ;;  %v3969_v33 = vadd.f32 1.0, %v5387_v9 }
 0x98d   :  { %v5391_v58 = vpop.eup %5390  ;;  %v4013_v60 = vmul.f32 %v5389_v46, %v3997_v41  ;;  %5410 = vrcp.f32 %v3965_v51 }
 0x98e   :  { %v5393_v36 = vpop.eup %5392  ;;  %v4014_v26 = vmul.f32 %v5391_v58, %v3998_v62  ;;  %5412 = vrcp.f32 %v3966_v39 }
 0x98f   :  { %v5395_v8 = vpop.eup %5394  ;;  %v4015_v24 = vmul.f32 %v5393_v36, %v3999_v44  ;;  %v4029_v10 = vadd.f32 %v7808_v14, %v4013_v60  ;;  %5414 = vrcp.f32 %v3967_v4 }
 0x990   :  { %v5397_v55 = vpop.eup %5396  ;;  %v4016_v1 = vmul.f32 %v5395_v8, %v4000_v11  ;;  %v4030_v47 = vadd.f32 %v7811_v30, %v4014_v26  ;;  %5416 = vrcp.f32 %v3968_v6 }
 0x991   :  { %v5399_v13 = vpop.eup %5398  ;;  %v4017_v61 = vmul.f32 %v5397_v55, %v4001_v59  ;;  %v4031_v53 = vadd.f32 %v7814_v34, %v4015_v24  ;;  %5418 = vtanh.f32 %v4029_v10 }
 0x992   :  { %v5401_v23 = vpop.eup %5400  ;;  %v4018_v29 = vmul.f32 %v5399_v13, %v4002_v35  ;;  %v4032_v14 = vadd.f32 %v7817_v57, %v4016_v1  ;;  %5420 = vtanh.f32 %v4030_v47 }
 0x993   :  { %v5403_v63 = vpop.eup %5402  ;;  %v4019_v42 = vmul.f32 %v5401_v23, %v4003_v50  ;;  %v4033_v45 = vadd.f32 %v7820_v22, %v4017_v61  ;;  %5422 = vtanh.f32 %v4031_v53 }
 0x994   :  { %v5405_v30 = vpop.eup %5404  ;;  %v4020_v32 = vmul.f32 %v5403_v63, %v4004_v2  ;;  %v4034_v7 = vadd.f32 %v7822_v21, %v4018_v29  ;;  %5424 = vtanh.f32 %v4032_v14 }
 0x995   :  { %v5407_v18 = vpop.eup %5406  ;;  %v4035_v34 = vadd.f32 %v7824_v15, %v4019_v42  ;;  %5426 = vtanh.f32 %v4033_v45  ;;  %v3970_v57 = vadd.f32 1.0, %v5405_v30 }
 0x996   :  { %v5409_v37 = vpop.eup %5408  ;;  %v4036_v20 = vadd.f32 %v7827_v16, %v4020_v32  ;;  %5428 = vtanh.f32 %v4034_v7  ;;  %v3971_v49 = vadd.f32 1.0, %v5407_v18 }
 0x997   :  { %v5411_v17 = vpop.eup %5410  ;;  %5430 = vtanh.f32 %v4035_v34  ;;  %v3972_v52 = vadd.f32 1.0, %v5409_v37 }
 0x998   :  { %v5413_v22 = vpop.eup %5412  ;;  %5432 = vtanh.f32 %v4036_v20 }
 0x999   :  { %v5415_v12 = vpop.eup %5414  ;;  %5434 = vrcp.f32 %v3969_v33 }
 0x99a   :  { %v5417_v21 = vpop.eup %5416  ;;  %5436 = vrcp.f32 %v3970_v57 }
 0x99b   :  { %v5419_v54 = vpop.eup %5418  ;;  %5438 = vrcp.f32 %v3971_v49 }
 0x99c   :  { %v5421_v15 = vpop.eup %5420  ;;  %5440 = vrcp.f32 %v3972_v52  ;;  %v4045_v0 = vmul.f32 %v5419_v54, %v5411_v17 }
 0x99d   :  { %v5423_v56 = vpop.eup %5422  ;;  %v4046_v40 = vmul.f32 %v5421_v15, %v5413_v22 }
 0x99e   :  { %v5425_v16 = vpop.eup %5424  ;;  %v4047_v31 = vmul.f32 %v5423_v56, %v5415_v12  ;;  %4053 = vst [vmem:[%s7878_s4] sm:$0x80] %v4045_v0 }
 0x99f   :  { %v5427_v48 = vpop.eup %5426  ;;  %v4048_v38 = vmul.f32 %v5425_v16, %v5417_v21  ;;  %4054 = vst [vmem:[%s7878_s4 + $0x8] sm:$0x80] %v4046_v40 }
 0x9a0   :  { %v5429_v25 = vpop.eup %5428  ;;  %4055 = vst [vmem:[%s7878_s4 + $0x10] sm:$0x80] %v4047_v31 }
 0x9a1   :  { %v5431_v28 = vpop.eup %5430  ;;  %4056 = vst [vmem:[%s7878_s4 + $0x18] sm:$0x80] %v4048_v38 }
 0x9a2   :  { %v5433_v19 = vpop.eup %5432 }
 0x9a3   :  { %v5435_v27 = vpop.eup %5434 }
 0x9a4   :  { %v5437_v43 = vpop.eup %5436  ;;  %v4049_v5 = vmul.f32 %v5435_v27, %v5427_v48 }
 0x9a5   :  { %v5439_v51 = vpop.eup %5438  ;;  %v4050_v3 = vmul.f32 %v5437_v43, %v5429_v25 }
 0x9a6   :  { %v5441_v39 = vpop.eup %5440  ;;  %v4051_v9 = vmul.f32 %v5439_v51, %v5431_v28  ;;  %4057 = vst [vmem:[%s7878_s4 + $0x20] sm:$0x80] %v4049_v5 }
 0x9a7   :  { %v4052_v41 = vmul.f32 %v5441_v39, %v5433_v19  ;;  %4058 = vst [vmem:[%s7878_s4 + $0x28] sm:$0x80] %v4050_v3 }
 0x9a8   :  { %4059 = vst [vmem:[%s7878_s4 + $0x30] sm:$0x80] %v4051_v9 }
 0x9a9   :  { %4060 = vst [vmem:[%s7878_s4 + $0x38] sm:$0x80] %v4052_v41 }

</bundles_post_ra>
